<compile_context>
chip_gen: v7x
topology: tpu7x:2x2x1
jax: 0.10.0
libtpu: 0.0.40
codegen_flags: <defaults>
</compile_context>

<pallas_src>
import jax
import jax.numpy as jnp
from jax.experimental import pallas as pl
from jax.experimental.pallas import tpu as pltpu


GROUP_N = 8          # Rot2dOnR2(N=8) regular representation size
IN_CHANNELS = 64     # in_channels field size (multiple of GROUP_N); small-shape choice
C0 = 128             # regular_feature_type(gspace, 128, fixparams=False) -> 16 fields * 8
C1 = 768             # regular_feature_type(gspace, 768, fixparams=False) -> 96 fields * 8
NUM_CLASSES = 10
POOL_K, POOL_S = 5, 3
CONV1_K = 5
TAPS = CONV1_K * CONV1_K   # 25 conv1 taps == 25 pooled spatial positions (5x5 map)
TAP_ROWS = 8               # batch rows per tap, padded to the 8-row sublane tile
FC_NP = 128                # fc output channels padded to one lane-dense tile


# --------------------------------------------------------------------- fused kernel
def inception_aux_kernel(a0_ref, w0_ref, s0_ref, t0_ref,
                         w1_ref, s1_ref, t1_ref,
                         wfc_ref, bfc_ref, o_ref, h0_ref):
    """Whole post-pool forward in one kernel; every intermediate stays on-chip.

    a0  : (TAPS*TAP_ROWS, Cin) bf16  pooled input, tap-major, batch padded to 8 rows
    w0  : (Cin, C0)            bf16  conv0 1x1 weight
    w1  : (TAPS*C0, C1)        bf16  conv1 5x5 weight, row index = tap*C0 + cin
    wfc : (C1, FC_NP)          f32   fc weight (zero-padded cols), bfc: (1, FC_NP) f32
    o   : (TAP_ROWS, FC_NP)    f32   logits; rows >= B / cols >= NUM_CLASSES are junk/0
    h0  : (TAPS*TAP_ROWS, C0)  bf16  VMEM scratch for stage-0 activations
    """
    # conv0 (1x1) + InnerBN + ReLU: one GEMM, f32 accumulate, f32 epilogue.
    h0 = jnp.dot(a0_ref[...], w0_ref[...], preferred_element_type=jnp.float32)
    h0 = jnp.maximum(h0 * s0_ref[...] + t0_ref[...], 0.0)
    h0_ref[...] = h0.astype(jnp.bfloat16)          # bf16 stage-0 activations stay in VMEM

    # conv1 (5x5 valid on the 5x5 map -> 1x1) + InnerBN + ReLU:
    # 25 aligned (8, C0) x (C0, C1) tap-GEMMs accumulated in f32.  Padded batch rows
    # (>= B) carry garbage values but are never read by the caller.
    acc = jnp.zeros((TAP_ROWS, C1), jnp.float32)
    for t in range(TAPS):                          # static unroll; all offsets 8/128-aligned
        acc = acc + jnp.dot(h0_ref[t * TAP_ROWS:(t + 1) * TAP_ROWS, :],
                            w1_ref[t * C0:(t + 1) * C0, :],
                            preferred_element_type=jnp.float32)
    y1 = jnp.maximum(acc * s1_ref[...] + t1_ref[...], 0.0)

    # adaptive_avg_pool2d((1,1)) is the identity on a 1x1 map; flatten + fc.
    # fc kept in f32 for fidelity; bias-only epilogue (no scale multiply).
    o_ref[...] = jnp.dot(y1, wfc_ref[...], preferred_element_type=jnp.float32) + bfc_ref[...]


# --------------------------------------------------------------------- parameters
def init_params(key):
    ks = jax.random.split(key, 6)

    def inner_bn(k, c):
        # InnerBatchNorm (eval): per-field gamma/beta shared across the 8 group channels,
        # running mean=0 / var=1 -> per-channel affine (1, c) scale/shift rows, built once.
        k1, k2 = jax.random.split(k)
        nf = c // GROUP_N
        g = 1.0 + 0.1 * jax.random.normal(k1, (nf,), jnp.float32)
        b = 0.1 * jax.random.normal(k2, (nf,), jnp.float32)
        scale = (jnp.repeat(g, GROUP_N) / jnp.sqrt(1.0 + 1e-5)).reshape(1, c)
        shift = jnp.repeat(b, GROUP_N).reshape(1, c)
        return scale, shift

    params = {}
    # TODO(synk): R2Conv's steerable-basis (C8-equivariance) weight constraint is not
    # reproduced; weights are deterministic synthetic tensors with matching shapes.
    w0 = jax.random.normal(ks[0], (IN_CHANNELS, C0), jnp.float32) / (IN_CHANNELS ** 0.5)
    params["w0"] = w0.astype(jnp.bfloat16)                           # (64, 128) bf16, DMA-ready
    params["s0"], params["t0"] = inner_bn(ks[1], C0)

    w1 = jax.random.normal(ks[2], (CONV1_K, CONV1_K, C0, C1), jnp.float32)
    w1 = w1 / ((CONV1_K * CONV1_K * C0) ** 0.5)
    params["w1"] = w1.reshape(TAPS * C0, C1).astype(jnp.bfloat16)    # (3200, 768) bf16

    params["s1"], params["t1"] = inner_bn(ks[3], C1)

    fc_w = 0.001 * jax.random.normal(ks[4], (C1, NUM_CLASSES), jnp.float32)  # fc.stddev=0.001
    fc_b = 0.01 * jax.random.normal(ks[5], (NUM_CLASSES,), jnp.float32)
    params["fc_w"] = jnp.pad(fc_w, ((0, 0), (0, FC_NP - NUM_CLASSES)))       # (768, 128) f32
    params["fc_b"] = jnp.pad(fc_b, (0, FC_NP - NUM_CLASSES)).reshape(1, FC_NP)
    return params


# --------------------------------------------------------------------- forward
def forward(params, x):
    """x: (B, 17, 17, Cin) NHWC (== PyTorch NCHW (B, Cin, 17, 17)) -> logits (B, NUM_CLASSES)."""
    B = x.shape[0]
    assert B <= TAP_ROWS

    # PointwiseAvgPool(k=5, s=3): cheap single XLA op on the small input (pool is not a GEMM).
    pooled = jax.lax.reduce_window(
        x, 0.0, jax.lax.add,
        (1, POOL_K, POOL_K, 1), (1, POOL_S, POOL_S, 1), "VALID") * (1.0 / (POOL_K * POOL_K))
    assert pooled.shape[1] == CONV1_K and pooled.shape[2] == CONV1_K   # canonical 17x17 input

    # Tap-major activation layout, batch padded to the 8-row sublane tile so every
    # in-kernel tap slice is (8, 128)-aligned: row index = tap*8 + b.
    a0 = pooled.reshape(B, TAPS, IN_CHANNELS).transpose(1, 0, 2)       # (25, B, Cin)
    a0 = jnp.pad(a0, ((0, 0), (0, TAP_ROWS - B), (0, 0)))
    a0 = a0.reshape(TAPS * TAP_ROWS, IN_CHANNELS).astype(jnp.bfloat16)

    # Single gridless pallas_call: all operands (~5.2 MiB) resident in VMEM once; no
    # pipelining needed since the call is weight-DMA bound and compute is ~0.1 us.
    # TODO(synk): on v7x the second TensorCore is idle for this tiny fused call; splitting
    # it across cores would need a cross-core reduction for the fc contraction.
    out = pl.pallas_call(
        inception_aux_kernel,
        out_shape=jax.ShapeDtypeStruct((TAP_ROWS, FC_NP), jnp.float32),
        scratch_shapes=[pltpu.VMEM((TAPS * TAP_ROWS, C0), jnp.bfloat16)],
        compiler_params=pltpu.CompilerParams(vmem_limit_bytes=32 * 1024 * 1024),
    )(a0, params["w0"], params["s0"], params["t0"],
      params["w1"], params["s1"], params["t1"],
      params["fc_w"], params["fc_b"])
    return out[:B, :NUM_CLASSES]


# --------------------------------------------------------------------- main
if __name__ == "__main__":
    key = jax.random.PRNGKey(0)
    kx, kp = jax.random.split(key)
    # PyTorch input would be NCHW (2, IN_CHANNELS, 17, 17); kernel layout is NHWC.
    # 17x17 spatial is the canonical InceptionAux input: pool -> 5x5, conv1(5x5) -> 1x1.
    x = jax.random.normal(kx, (2, 17, 17, IN_CHANNELS), jnp.float32)
    params = init_params(kp)

    y = jax.jit(forward)(params, x)
    y = jax.block_until_ready(y)
    assert y.shape == (2, NUM_CLASSES), y.shape
    assert bool(jnp.all(jnp.isfinite(y)))
    print("KERNEL_OK")
</pallas_src>

<mosaic_0001>
module attributes {stable_mosaic.version = 11 : i64} {
  func.func @inception_aux_kernel(%arg0: memref<200x64xbf16, #tpu.memory_space<vmem>>, %arg1: memref<64x128xbf16, #tpu.memory_space<vmem>>, %arg2: memref<1x128xf32, #tpu.memory_space<vmem>>, %arg3: memref<1x128xf32, #tpu.memory_space<vmem>>, %arg4: memref<3200x768xbf16, #tpu.memory_space<vmem>>, %arg5: memref<1x768xf32, #tpu.memory_space<vmem>>, %arg6: memref<1x768xf32, #tpu.memory_space<vmem>>, %arg7: memref<768x128xf32, #tpu.memory_space<vmem>>, %arg8: memref<1x128xf32, #tpu.memory_space<vmem>>, %arg9: memref<8x128xf32, #tpu.memory_space<vmem>>, %arg10: memref<200x128xbf16, #tpu.memory_space<vmem>>) attributes {dimension_semantics = [], scalar_prefetch = 0 : i64, scratch_operands = 1 : i64, tpu.core_type = #tpu.core_type<tc>} {
    %c0 = arith.constant 0 : index
    %c0_0 = arith.constant 0 : index
    %0 = vector.load %arg0[%c0, %c0_0] : memref<200x64xbf16, #tpu.memory_space<vmem>>, vector<200x64xbf16>
    %c0_1 = arith.constant 0 : index
    %c0_2 = arith.constant 0 : index
    %1 = vector.load %arg1[%c0_1, %c0_2] : memref<64x128xbf16, #tpu.memory_space<vmem>>, vector<64x128xbf16>
    %cst = arith.constant dense<0.000000e+00> : vector<200x128xf32>
    %2 = tpu.matmul %0, %1, %cst {dimension_numbers = #tpu.dot_dimension_numbers<[1], [0], [0], [1], [0, 0, 1, 1], [], []>} : vector<200x64xbf16>, vector<64x128xbf16>, vector<200x128xf32> -> vector<200x128xf32>
    %c0_3 = arith.constant 0 : index
    %c0_4 = arith.constant 0 : index
    %3 = vector.load %arg2[%c0_3, %c0_4] : memref<1x128xf32, #tpu.memory_space<vmem>>, vector<1x128xf32>
    %4 = vector.broadcast %3 : vector<1x128xf32> to vector<200x128xf32>
    %5 = arith.mulf %2, %4 : vector<200x128xf32>
    %c0_5 = arith.constant 0 : index
    %c0_6 = arith.constant 0 : index
    %6 = vector.load %arg3[%c0_5, %c0_6] : memref<1x128xf32, #tpu.memory_space<vmem>>, vector<1x128xf32>
    %7 = vector.broadcast %6 : vector<1x128xf32> to vector<200x128xf32>
    %8 = arith.addf %5, %7 : vector<200x128xf32>
    %cst_7 = arith.constant 0.000000e+00 : f32
    %9 = vector.broadcast %cst_7 : f32 to vector<200x128xf32>
    %10 = arith.maximumf %8, %9 : vector<200x128xf32>
    %11 = arith.truncf %10 : vector<200x128xf32> to vector<200x128xbf16>
    %c0_8 = arith.constant 0 : index
    %c0_9 = arith.constant 0 : index
    %12 = vector.load %arg10[%c0_8, %c0_9] : memref<200x128xbf16, #tpu.memory_space<vmem>>, vector<200x128xbf16>
    tpu.vector_store %arg10[%c0_8, %c0_9], %11 {strides = array<i32>} : memref<200x128xbf16, #tpu.memory_space<vmem>>, vector<200x128xbf16>,
    %cst_10 = arith.constant 0.000000e+00 : f32
    %13 = vector.broadcast %cst_10 : f32 to vector<8x768xf32>
    %c0_11 = arith.constant 0 : index
    %c0_12 = arith.constant 0 : index
    %14 = vector.load %arg10[%c0_11, %c0_12] : memref<200x128xbf16, #tpu.memory_space<vmem>>, vector<8x128xbf16>
    %c0_13 = arith.constant 0 : index
    %c0_14 = arith.constant 0 : index
    %15 = vector.load %arg4[%c0_13, %c0_14] : memref<3200x768xbf16, #tpu.memory_space<vmem>>, vector<128x768xbf16>
    %cst_15 = arith.constant dense<0.000000e+00> : vector<8x768xf32>
    %16 = tpu.matmul %14, %15, %cst_15 {dimension_numbers = #tpu.dot_dimension_numbers<[1], [0], [0], [1], [0, 0, 1, 1], [], []>} : vector<8x128xbf16>, vector<128x768xbf16>, vector<8x768xf32> -> vector<8x768xf32>
    %17 = arith.addf %13, %16 : vector<8x768xf32>
    %c8 = arith.constant 8 : index
    %c0_16 = arith.constant 0 : index
    %18 = vector.load %arg10[%c8, %c0_16] : memref<200x128xbf16, #tpu.memory_space<vmem>>, vector<8x128xbf16>
    %c128 = arith.constant 128 : index
    %c0_17 = arith.constant 0 : index
    %19 = vector.load %arg4[%c128, %c0_17] : memref<3200x768xbf16, #tpu.memory_space<vmem>>, vector<128x768xbf16>
    %cst_18 = arith.constant dense<0.000000e+00> : vector<8x768xf32>
    %20 = tpu.matmul %18, %19, %cst_18 {dimension_numbers = #tpu.dot_dimension_numbers<[1], [0], [0], [1], [0, 0, 1, 1], [], []>} : vector<8x128xbf16>, vector<128x768xbf16>, vector<8x768xf32> -> vector<8x768xf32>
    %21 = arith.addf %17, %20 : vector<8x768xf32>
    %c16 = arith.constant 16 : index
    %c0_19 = arith.constant 0 : index
    %22 = vector.load %arg10[%c16, %c0_19] : memref<200x128xbf16, #tpu.memory_space<vmem>>, vector<8x128xbf16>
    %c256 = arith.constant 256 : index
    %c0_20 = arith.constant 0 : index
    %23 = vector.load %arg4[%c256, %c0_20] : memref<3200x768xbf16, #tpu.memory_space<vmem>>, vector<128x768xbf16>
    %cst_21 = arith.constant dense<0.000000e+00> : vector<8x768xf32>
    %24 = tpu.matmul %22, %23, %cst_21 {dimension_numbers = #tpu.dot_dimension_numbers<[1], [0], [0], [1], [0, 0, 1, 1], [], []>} : vector<8x128xbf16>, vector<128x768xbf16>, vector<8x768xf32> -> vector<8x768xf32>
    %25 = arith.addf %21, %24 : vector<8x768xf32>
    %c24 = arith.constant 24 : index
    %c0_22 = arith.constant 0 : index
    %26 = vector.load %arg10[%c24, %c0_22] : memref<200x128xbf16, #tpu.memory_space<vmem>>, vector<8x128xbf16>
    %c384 = arith.constant 384 : index
    %c0_23 = arith.constant 0 : index
    %27 = vector.load %arg4[%c384, %c0_23] : memref<3200x768xbf16, #tpu.memory_space<vmem>>, vector<128x768xbf16>
    %cst_24 = arith.constant dense<0.000000e+00> : vector<8x768xf32>
    %28 = tpu.matmul %26, %27, %cst_24 {dimension_numbers = #tpu.dot_dimension_numbers<[1], [0], [0], [1], [0, 0, 1, 1], [], []>} : vector<8x128xbf16>, vector<128x768xbf16>, vector<8x768xf32> -> vector<8x768xf32>
    %29 = arith.addf %25, %28 : vector<8x768xf32>
    %c32 = arith.constant 32 : index
    %c0_25 = arith.constant 0 : index
    %30 = vector.load %arg10[%c32, %c0_25] : memref<200x128xbf16, #tpu.memory_space<vmem>>, vector<8x128xbf16>
    %c512 = arith.constant 512 : index
    %c0_26 = arith.constant 0 : index
    %31 = vector.load %arg4[%c512, %c0_26] : memref<3200x768xbf16, #tpu.memory_space<vmem>>, vector<128x768xbf16>
    %cst_27 = arith.constant dense<0.000000e+00> : vector<8x768xf32>
    %32 = tpu.matmul %30, %31, %cst_27 {dimension_numbers = #tpu.dot_dimension_numbers<[1], [0], [0], [1], [0, 0, 1, 1], [], []>} : vector<8x128xbf16>, vector<128x768xbf16>, vector<8x768xf32> -> vector<8x768xf32>
    %33 = arith.addf %29, %32 : vector<8x768xf32>
    %c40 = arith.constant 40 : index
    %c0_28 = arith.constant 0 : index
    %34 = vector.load %arg10[%c40, %c0_28] : memref<200x128xbf16, #tpu.memory_space<vmem>>, vector<8x128xbf16>
    %c640 = arith.constant 640 : index
    %c0_29 = arith.constant 0 : index
    %35 = vector.load %arg4[%c640, %c0_29] : memref<3200x768xbf16, #tpu.memory_space<vmem>>, vector<128x768xbf16>
    %cst_30 = arith.constant dense<0.000000e+00> : vector<8x768xf32>
    %36 = tpu.matmul %34, %35, %cst_30 {dimension_numbers = #tpu.dot_dimension_numbers<[1], [0], [0], [1], [0, 0, 1, 1], [], []>} : vector<8x128xbf16>, vector<128x768xbf16>, vector<8x768xf32> -> vector<8x768xf32>
    %37 = arith.addf %33, %36 : vector<8x768xf32>
    %c48 = arith.constant 48 : index
    %c0_31 = arith.constant 0 : index
    %38 = vector.load %arg10[%c48, %c0_31] : memref<200x128xbf16, #tpu.memory_space<vmem>>, vector<8x128xbf16>
    %c768 = arith.constant 768 : index
    %c0_32 = arith.constant 0 : index
    %39 = vector.load %arg4[%c768, %c0_32] : memref<3200x768xbf16, #tpu.memory_space<vmem>>, vector<128x768xbf16>
    %cst_33 = arith.constant dense<0.000000e+00> : vector<8x768xf32>
    %40 = tpu.matmul %38, %39, %cst_33 {dimension_numbers = #tpu.dot_dimension_numbers<[1], [0], [0], [1], [0, 0, 1, 1], [], []>} : vector<8x128xbf16>, vector<128x768xbf16>, vector<8x768xf32> -> vector<8x768xf32>
    %41 = arith.addf %37, %40 : vector<8x768xf32>
    %c56 = arith.constant 56 : index
    %c0_34 = arith.constant 0 : index
    %42 = vector.load %arg10[%c56, %c0_34] : memref<200x128xbf16, #tpu.memory_space<vmem>>, vector<8x128xbf16>
    %c896 = arith.constant 896 : index
    %c0_35 = arith.constant 0 : index
    %43 = vector.load %arg4[%c896, %c0_35] : memref<3200x768xbf16, #tpu.memory_space<vmem>>, vector<128x768xbf16>
    %cst_36 = arith.constant dense<0.000000e+00> : vector<8x768xf32>
    %44 = tpu.matmul %42, %43, %cst_36 {dimension_numbers = #tpu.dot_dimension_numbers<[1], [0], [0], [1], [0, 0, 1, 1], [], []>} : vector<8x128xbf16>, vector<128x768xbf16>, vector<8x768xf32> -> vector<8x768xf32>
    %45 = arith.addf %41, %44 : vector<8x768xf32>
    %c64 = arith.constant 64 : index
    %c0_37 = arith.constant 0 : index
    %46 = vector.load %arg10[%c64, %c0_37] : memref<200x128xbf16, #tpu.memory_space<vmem>>, vector<8x128xbf16>
    %c1024 = arith.constant 1024 : index
    %c0_38 = arith.constant 0 : index
    %47 = vector.load %arg4[%c1024, %c0_38] : memref<3200x768xbf16, #tpu.memory_space<vmem>>, vector<128x768xbf16>
    %cst_39 = arith.constant dense<0.000000e+00> : vector<8x768xf32>
    %48 = tpu.matmul %46, %47, %cst_39 {dimension_numbers = #tpu.dot_dimension_numbers<[1], [0], [0], [1], [0, 0, 1, 1], [], []>} : vector<8x128xbf16>, vector<128x768xbf16>, vector<8x768xf32> -> vector<8x768xf32>
    %49 = arith.addf %45, %48 : vector<8x768xf32>
    %c72 = arith.constant 72 : index
    %c0_40 = arith.constant 0 : index
    %50 = vector.load %arg10[%c72, %c0_40] : memref<200x128xbf16, #tpu.memory_space<vmem>>, vector<8x128xbf16>
    %c1152 = arith.constant 1152 : index
    %c0_41 = arith.constant 0 : index
    %51 = vector.load %arg4[%c1152, %c0_41] : memref<3200x768xbf16, #tpu.memory_space<vmem>>, vector<128x768xbf16>
    %cst_42 = arith.constant dense<0.000000e+00> : vector<8x768xf32>
    %52 = tpu.matmul %50, %51, %cst_42 {dimension_numbers = #tpu.dot_dimension_numbers<[1], [0], [0], [1], [0, 0, 1, 1], [], []>} : vector<8x128xbf16>, vector<128x768xbf16>, vector<8x768xf32> -> vector<8x768xf32>
    %53 = arith.addf %49, %52 : vector<8x768xf32>
    %c80 = arith.constant 80 : index
    %c0_43 = arith.constant 0 : index
    %54 = vector.load %arg10[%c80, %c0_43] : memref<200x128xbf16, #tpu.memory_space<vmem>>, vector<8x128xbf16>
    %c1280 = arith.constant 1280 : index
    %c0_44 = arith.constant 0 : index
    %55 = vector.load %arg4[%c1280, %c0_44] : memref<3200x768xbf16, #tpu.memory_space<vmem>>, vector<128x768xbf16>
    %cst_45 = arith.constant dense<0.000000e+00> : vector<8x768xf32>
    %56 = tpu.matmul %54, %55, %cst_45 {dimension_numbers = #tpu.dot_dimension_numbers<[1], [0], [0], [1], [0, 0, 1, 1], [], []>} : vector<8x128xbf16>, vector<128x768xbf16>, vector<8x768xf32> -> vector<8x768xf32>
    %57 = arith.addf %53, %56 : vector<8x768xf32>
    %c88 = arith.constant 88 : index
    %c0_46 = arith.constant 0 : index
    %58 = vector.load %arg10[%c88, %c0_46] : memref<200x128xbf16, #tpu.memory_space<vmem>>, vector<8x128xbf16>
    %c1408 = arith.constant 1408 : index
    %c0_47 = arith.constant 0 : index
    %59 = vector.load %arg4[%c1408, %c0_47] : memref<3200x768xbf16, #tpu.memory_space<vmem>>, vector<128x768xbf16>
    %cst_48 = arith.constant dense<0.000000e+00> : vector<8x768xf32>
    %60 = tpu.matmul %58, %59, %cst_48 {dimension_numbers = #tpu.dot_dimension_numbers<[1], [0], [0], [1], [0, 0, 1, 1], [], []>} : vector<8x128xbf16>, vector<128x768xbf16>, vector<8x768xf32> -> vector<8x768xf32>
    %61 = arith.addf %57, %60 : vector<8x768xf32>
    %c96 = arith.constant 96 : index
    %c0_49 = arith.constant 0 : index
    %62 = vector.load %arg10[%c96, %c0_49] : memref<200x128xbf16, #tpu.memory_space<vmem>>, vector<8x128xbf16>
    %c1536 = arith.constant 1536 : index
    %c0_50 = arith.constant 0 : index
    %63 = vector.load %arg4[%c1536, %c0_50] : memref<3200x768xbf16, #tpu.memory_space<vmem>>, vector<128x768xbf16>
    %cst_51 = arith.constant dense<0.000000e+00> : vector<8x768xf32>
    %64 = tpu.matmul %62, %63, %cst_51 {dimension_numbers = #tpu.dot_dimension_numbers<[1], [0], [0], [1], [0, 0, 1, 1], [], []>} : vector<8x128xbf16>, vector<128x768xbf16>, vector<8x768xf32> -> vector<8x768xf32>
    %65 = arith.addf %61, %64 : vector<8x768xf32>
    %c104 = arith.constant 104 : index
    %c0_52 = arith.constant 0 : index
    %66 = vector.load %arg10[%c104, %c0_52] : memref<200x128xbf16, #tpu.memory_space<vmem>>, vector<8x128xbf16>
    %c1664 = arith.constant 1664 : index
    %c0_53 = arith.constant 0 : index
    %67 = vector.load %arg4[%c1664, %c0_53] : memref<3200x768xbf16, #tpu.memory_space<vmem>>, vector<128x768xbf16>
    %cst_54 = arith.constant dense<0.000000e+00> : vector<8x768xf32>
    %68 = tpu.matmul %66, %67, %cst_54 {dimension_numbers = #tpu.dot_dimension_numbers<[1], [0], [0], [1], [0, 0, 1, 1], [], []>} : vector<8x128xbf16>, vector<128x768xbf16>, vector<8x768xf32> -> vector<8x768xf32>
    %69 = arith.addf %65, %68 : vector<8x768xf32>
    %c112 = arith.constant 112 : index
    %c0_55 = arith.constant 0 : index
    %70 = vector.load %arg10[%c112, %c0_55] : memref<200x128xbf16, #tpu.memory_space<vmem>>, vector<8x128xbf16>
    %c1792 = arith.constant 1792 : index
    %c0_56 = arith.constant 0 : index
    %71 = vector.load %arg4[%c1792, %c0_56] : memref<3200x768xbf16, #tpu.memory_space<vmem>>, vector<128x768xbf16>
    %cst_57 = arith.constant dense<0.000000e+00> : vector<8x768xf32>
    %72 = tpu.matmul %70, %71, %cst_57 {dimension_numbers = #tpu.dot_dimension_numbers<[1], [0], [0], [1], [0, 0, 1, 1], [], []>} : vector<8x128xbf16>, vector<128x768xbf16>, vector<8x768xf32> -> vector<8x768xf32>
    %73 = arith.addf %69, %72 : vector<8x768xf32>
    %c120 = arith.constant 120 : index
    %c0_58 = arith.constant 0 : index
    %74 = vector.load %arg10[%c120, %c0_58] : memref<200x128xbf16, #tpu.memory_space<vmem>>, vector<8x128xbf16>
    %c1920 = arith.constant 1920 : index
    %c0_59 = arith.constant 0 : index
    %75 = vector.load %arg4[%c1920, %c0_59] : memref<3200x768xbf16, #tpu.memory_space<vmem>>, vector<128x768xbf16>
    %cst_60 = arith.constant dense<0.000000e+00> : vector<8x768xf32>
    %76 = tpu.matmul %74, %75, %cst_60 {dimension_numbers = #tpu.dot_dimension_numbers<[1], [0], [0], [1], [0, 0, 1, 1], [], []>} : vector<8x128xbf16>, vector<128x768xbf16>, vector<8x768xf32> -> vector<8x768xf32>
    %77 = arith.addf %73, %76 : vector<8x768xf32>
    %c128_61 = arith.constant 128 : index
    %c0_62 = arith.constant 0 : index
    %78 = vector.load %arg10[%c128_61, %c0_62] : memref<200x128xbf16, #tpu.memory_space<vmem>>, vector<8x128xbf16>
    %c2048 = arith.constant 2048 : index
    %c0_63 = arith.constant 0 : index
    %79 = vector.load %arg4[%c2048, %c0_63] : memref<3200x768xbf16, #tpu.memory_space<vmem>>, vector<128x768xbf16>
    %cst_64 = arith.constant dense<0.000000e+00> : vector<8x768xf32>
    %80 = tpu.matmul %78, %79, %cst_64 {dimension_numbers = #tpu.dot_dimension_numbers<[1], [0], [0], [1], [0, 0, 1, 1], [], []>} : vector<8x128xbf16>, vector<128x768xbf16>, vector<8x768xf32> -> vector<8x768xf32>
    %81 = arith.addf %77, %80 : vector<8x768xf32>
    %c136 = arith.constant 136 : index
    %c0_65 = arith.constant 0 : index
    %82 = vector.load %arg10[%c136, %c0_65] : memref<200x128xbf16, #tpu.memory_space<vmem>>, vector<8x128xbf16>
    %c2176 = arith.constant 2176 : index
    %c0_66 = arith.constant 0 : index
    %83 = vector.load %arg4[%c2176, %c0_66] : memref<3200x768xbf16, #tpu.memory_space<vmem>>, vector<128x768xbf16>
    %cst_67 = arith.constant dense<0.000000e+00> : vector<8x768xf32>
    %84 = tpu.matmul %82, %83, %cst_67 {dimension_numbers = #tpu.dot_dimension_numbers<[1], [0], [0], [1], [0, 0, 1, 1], [], []>} : vector<8x128xbf16>, vector<128x768xbf16>, vector<8x768xf32> -> vector<8x768xf32>
    %85 = arith.addf %81, %84 : vector<8x768xf32>
    %c144 = arith.constant 144 : index
    %c0_68 = arith.constant 0 : index
    %86 = vector.load %arg10[%c144, %c0_68] : memref<200x128xbf16, #tpu.memory_space<vmem>>, vector<8x128xbf16>
    %c2304 = arith.constant 2304 : index
    %c0_69 = arith.constant 0 : index
    %87 = vector.load %arg4[%c2304, %c0_69] : memref<3200x768xbf16, #tpu.memory_space<vmem>>, vector<128x768xbf16>
    %cst_70 = arith.constant dense<0.000000e+00> : vector<8x768xf32>
    %88 = tpu.matmul %86, %87, %cst_70 {dimension_numbers = #tpu.dot_dimension_numbers<[1], [0], [0], [1], [0, 0, 1, 1], [], []>} : vector<8x128xbf16>, vector<128x768xbf16>, vector<8x768xf32> -> vector<8x768xf32>
    %89 = arith.addf %85, %88 : vector<8x768xf32>
    %c152 = arith.constant 152 : index
    %c0_71 = arith.constant 0 : index
    %90 = vector.load %arg10[%c152, %c0_71] : memref<200x128xbf16, #tpu.memory_space<vmem>>, vector<8x128xbf16>
    %c2432 = arith.constant 2432 : index
    %c0_72 = arith.constant 0 : index
    %91 = vector.load %arg4[%c2432, %c0_72] : memref<3200x768xbf16, #tpu.memory_space<vmem>>, vector<128x768xbf16>
    %cst_73 = arith.constant dense<0.000000e+00> : vector<8x768xf32>
    %92 = tpu.matmul %90, %91, %cst_73 {dimension_numbers = #tpu.dot_dimension_numbers<[1], [0], [0], [1], [0, 0, 1, 1], [], []>} : vector<8x128xbf16>, vector<128x768xbf16>, vector<8x768xf32> -> vector<8x768xf32>
    %93 = arith.addf %89, %92 : vector<8x768xf32>
    %c160 = arith.constant 160 : index
    %c0_74 = arith.constant 0 : index
    %94 = vector.load %arg10[%c160, %c0_74] : memref<200x128xbf16, #tpu.memory_space<vmem>>, vector<8x128xbf16>
    %c2560 = arith.constant 2560 : index
    %c0_75 = arith.constant 0 : index
    %95 = vector.load %arg4[%c2560, %c0_75] : memref<3200x768xbf16, #tpu.memory_space<vmem>>, vector<128x768xbf16>
    %cst_76 = arith.constant dense<0.000000e+00> : vector<8x768xf32>
    %96 = tpu.matmul %94, %95, %cst_76 {dimension_numbers = #tpu.dot_dimension_numbers<[1], [0], [0], [1], [0, 0, 1, 1], [], []>} : vector<8x128xbf16>, vector<128x768xbf16>, vector<8x768xf32> -> vector<8x768xf32>
    %97 = arith.addf %93, %96 : vector<8x768xf32>
    %c168 = arith.constant 168 : index
    %c0_77 = arith.constant 0 : index
    %98 = vector.load %arg10[%c168, %c0_77] : memref<200x128xbf16, #tpu.memory_space<vmem>>, vector<8x128xbf16>
    %c2688 = arith.constant 2688 : index
    %c0_78 = arith.constant 0 : index
    %99 = vector.load %arg4[%c2688, %c0_78] : memref<3200x768xbf16, #tpu.memory_space<vmem>>, vector<128x768xbf16>
    %cst_79 = arith.constant dense<0.000000e+00> : vector<8x768xf32>
    %100 = tpu.matmul %98, %99, %cst_79 {dimension_numbers = #tpu.dot_dimension_numbers<[1], [0], [0], [1], [0, 0, 1, 1], [], []>} : vector<8x128xbf16>, vector<128x768xbf16>, vector<8x768xf32> -> vector<8x768xf32>
    %101 = arith.addf %97, %100 : vector<8x768xf32>
    %c176 = arith.constant 176 : index
    %c0_80 = arith.constant 0 : index
    %102 = vector.load %arg10[%c176, %c0_80] : memref<200x128xbf16, #tpu.memory_space<vmem>>, vector<8x128xbf16>
    %c2816 = arith.constant 2816 : index
    %c0_81 = arith.constant 0 : index
    %103 = vector.load %arg4[%c2816, %c0_81] : memref<3200x768xbf16, #tpu.memory_space<vmem>>, vector<128x768xbf16>
    %cst_82 = arith.constant dense<0.000000e+00> : vector<8x768xf32>
    %104 = tpu.matmul %102, %103, %cst_82 {dimension_numbers = #tpu.dot_dimension_numbers<[1], [0], [0], [1], [0, 0, 1, 1], [], []>} : vector<8x128xbf16>, vector<128x768xbf16>, vector<8x768xf32> -> vector<8x768xf32>
    %105 = arith.addf %101, %104 : vector<8x768xf32>
    %c184 = arith.constant 184 : index
    %c0_83 = arith.constant 0 : index
    %106 = vector.load %arg10[%c184, %c0_83] : memref<200x128xbf16, #tpu.memory_space<vmem>>, vector<8x128xbf16>
    %c2944 = arith.constant 2944 : index
    %c0_84 = arith.constant 0 : index
    %107 = vector.load %arg4[%c2944, %c0_84] : memref<3200x768xbf16, #tpu.memory_space<vmem>>, vector<128x768xbf16>
    %cst_85 = arith.constant dense<0.000000e+00> : vector<8x768xf32>
    %108 = tpu.matmul %106, %107, %cst_85 {dimension_numbers = #tpu.dot_dimension_numbers<[1], [0], [0], [1], [0, 0, 1, 1], [], []>} : vector<8x128xbf16>, vector<128x768xbf16>, vector<8x768xf32> -> vector<8x768xf32>
    %109 = arith.addf %105, %108 : vector<8x768xf32>
    %c192 = arith.constant 192 : index
    %c0_86 = arith.constant 0 : index
    %110 = vector.load %arg10[%c192, %c0_86] : memref<200x128xbf16, #tpu.memory_space<vmem>>, vector<8x128xbf16>
    %c3072 = arith.constant 3072 : index
    %c0_87 = arith.constant 0 : index
    %111 = vector.load %arg4[%c3072, %c0_87] : memref<3200x768xbf16, #tpu.memory_space<vmem>>, vector<128x768xbf16>
    %cst_88 = arith.constant dense<0.000000e+00> : vector<8x768xf32>
    %112 = tpu.matmul %110, %111, %cst_88 {dimension_numbers = #tpu.dot_dimension_numbers<[1], [0], [0], [1], [0, 0, 1, 1], [], []>} : vector<8x128xbf16>, vector<128x768xbf16>, vector<8x768xf32> -> vector<8x768xf32>
    %113 = arith.addf %109, %112 : vector<8x768xf32>
    %c0_89 = arith.constant 0 : index
    %c0_90 = arith.constant 0 : index
    %114 = vector.load %arg5[%c0_89, %c0_90] : memref<1x768xf32, #tpu.memory_space<vmem>>, vector<1x768xf32>
    %115 = vector.broadcast %114 : vector<1x768xf32> to vector<8x768xf32>
    %116 = arith.mulf %113, %115 : vector<8x768xf32>
    %c0_91 = arith.constant 0 : index
    %c0_92 = arith.constant 0 : index
    %117 = vector.load %arg6[%c0_91, %c0_92] : memref<1x768xf32, #tpu.memory_space<vmem>>, vector<1x768xf32>
    %118 = vector.broadcast %117 : vector<1x768xf32> to vector<8x768xf32>
    %119 = arith.addf %116, %118 : vector<8x768xf32>
    %cst_93 = arith.constant 0.000000e+00 : f32
    %120 = vector.broadcast %cst_93 : f32 to vector<8x768xf32>
    %121 = arith.maximumf %119, %120 : vector<8x768xf32>
    %c0_94 = arith.constant 0 : index
    %c0_95 = arith.constant 0 : index
    %122 = vector.load %arg7[%c0_94, %c0_95] : memref<768x128xf32, #tpu.memory_space<vmem>>, vector<768x128xf32>
    %cst_96 = arith.constant dense<0.000000e+00> : vector<8x128xf32>
    %123 = tpu.matmul %121, %122, %cst_96 {dimension_numbers = #tpu.dot_dimension_numbers<[1], [0], [0], [1], [0, 0, 1, 1], [], []>} : vector<8x768xf32>, vector<768x128xf32>, vector<8x128xf32> -> vector<8x128xf32>
    %c0_97 = arith.constant 0 : index
    %c0_98 = arith.constant 0 : index
    %124 = vector.load %arg8[%c0_97, %c0_98] : memref<1x128xf32, #tpu.memory_space<vmem>>, vector<1x128xf32>
    %125 = vector.broadcast %124 : vector<1x128xf32> to vector<8x128xf32>
    %126 = arith.addf %123, %125 : vector<8x128xf32>
    %c0_99 = arith.constant 0 : index
    %c0_100 = arith.constant 0 : index
    %127 = vector.load %arg9[%c0_99, %c0_100] : memref<8x128xf32, #tpu.memory_space<vmem>>, vector<8x128xf32>
    tpu.vector_store %arg9[%c0_99, %c0_100], %126 {strides = array<i32>} : memref<8x128xf32, #tpu.memory_space<vmem>>, vector<8x128xf32>,
    return
  }
}

</mosaic_0001>

<bundles_post_ra>
// kernel: forward.1
= control target key start
LH: loop header
LB: loop body
LE: loop exit
PB: predicated region body
PF: predicated region fallthrough
CT: control target
= control target key end

     0   :  { %14 = vsyncpa [#allocation4], 0  ;;  %s15974_s0 = inlined_call_operand.vmem [shape: bf16[200,64], index: 0, kind: input, shape index: {}]   ;;  %s15975_s1 = inlined_call_operand.hbm [shape: bf16[64,128], index: 1, kind: input, shape index: {}]   ;;  %s15976_s2 = inlined_call_operand.hbm [shape: f32[1,128], index: 2, kind: input, shape index: {}]   ;;  %s15977_s3 = inlined_call_operand.hbm [shape: f32[1,128], index: 3, kind: input, shape index: {}]   ;;  %s15978_s4 = inlined_call_operand.hbm [shape: bf16[3200,768], index: 4, kind: input, shape index: {}]   ;;  %s15979_s5 = inlined_call_operand.hbm [shape: f32[1,768], index: 5, kind: input, shape index: {}]   ;;  %s15980_s6 = inlined_call_operand.hbm [shape: f32[1,768], index: 6, kind: input, shape index: {}]   ;;  %s15981_s7 = inlined_call_operand.hbm [shape: f32[768,128], index: 7, kind: input, shape index: {}]   ;;  %s15982_s8 = inlined_call_operand.hbm [shape: f32[1,128], index: 8, kind: input, shape index: {}]   ;;  %s15983_s9 = inlined_call_operand.vmem [shape: f32[8,128], index: 9, kind: output, shape index: {}]  }
   0x1   :  { %15 = vsyncpa [#allocation6], 0 }
   0x2   :  { %16 = vsyncpa [#allocation9], 0 }
   0x3   :  { %17 = vsyncpa [#allocation12], 0 }
   0x4   :  { %18 = vsyncpa [#allocation15], 0  ;;  %s15425_s30 = smov [#allocation5]   ;;  %s15426_s11 = smov [#allocation8]  }
   0x5   :  { %s39_s10 = sshll.u32 %s15425_s30, 4  ;;  %s58_s12 = sshll.u32 %s15426_s11, 4  ;;  %s40_s10 = int_to_ptr.vmem [resolvable:$true] %s39_s10  ;;  %s15492_s12 = int_to_ptr.vmem [resolvable:$true] %s58_s12 }
   0x6   :  { %s15239_s15 = scalar_lea.hbm %s15976_s2, 16 }
   0x7   :  { %p15240_p0 = scmp.ne.s32.totalorder %s15976_s2, %s15239_s15  ;;  %p15243_p1 = scmp.lt.u32.totalorder %s15239_s15, %s15976_s2 }
   0x9   :  { %p15245_p2 = pnand %p15243_p1, %p15240_p0 }
   0xb   :  { %15248 = shalt.err (!%p15245_p2)
}
   0xc   :  { %s15249_s20 = scalar_lea.vmem %s40_s10, 16  ;;  %s15253_s21 = scalar_lea.vmem %s40_s10, 32 }
   0xd   :  { %p15250_p3 = scmp.ne.s32.totalorder %s40_s10, %s15249_s20  ;;  %p15254_p4 = scmp.lt.s32.totalorder %s40_s10, %s40_s10 }
   0xe   :  { %p15255_p5 = scmp.lt.s32.totalorder %s15253_s21, %s15249_s20 }
  0x10   :  { %p15256_p6 = por %p15255_p5, %p15254_p4 }
  0x12   :  { %p15257_p7 = pnand %p15256_p6, %p15250_p3 }
  0x14   :  { %15260 = shalt.err (!%p15257_p7)
}
  0x15   :  { %42 = dma.hbm_to_vmem [thread:$0]  %s15976_s2, 16, %s40_s10, [#allocation6]  }
  0x16   :  { %s15261_s26 = scalar_lea.hbm %s15978_s4, 153600 }
  0x17   :  { %p15262_p8 = scmp.ne.s32.totalorder %s15978_s4, %s15261_s26  ;;  %p15265_p9 = scmp.lt.u32.totalorder %s15261_s26, %s15978_s4 }
  0x19   :  { %p15267_p10 = pnand %p15265_p9, %p15262_p8 }
  0x1b   :  { %15270 = shalt.err (!%p15267_p10)
}
  0x1c   :  { %s15271_s11 = scalar_lea.vmem %s15492_s12, 153600  ;;  %p15276_p12 = scmp.lt.s32.totalorder %s15492_s12, %s15492_s12 }
  0x1d   :  { %p15272_p11 = scmp.ne.s32.totalorder %s15492_s12, %s15271_s11  ;;  %p15277_p13 = scmp.lt.s32.totalorder %s15271_s11, %s15271_s11 }
  0x1f   :  { %p15278_p0 = por %p15277_p13, %p15276_p12 }
  0x21   :  { %p15279_p1 = pnand %p15278_p0, %p15272_p11 }
  0x23   :  { %15282 = shalt.err (!%p15279_p1)
}
  0x24   :  { %s15427_s2 = smov 384   ;;  %s15428_s10 = smov 24  }
  0x25   :  { %64 = dma.hbm_to_vmem [thread:$0]  %s15978_s4, 153600, %s15492_s12, [#allocation9], %s15427_s2, %s15427_s2, %s15428_s10  }
  0x26   :  { %s15429_s15 = smov [#allocation11]   ;;  %s15430_s17 = smov [#allocation3]  }
  0x27   :  { %s81_s16 = sshll.u32 %s15429_s15, 4  ;;  %s26_s18 = sshll.u32 %s15430_s17, 4  ;;  %s82_s16 = int_to_ptr.vmem [resolvable:$true] %s81_s16  ;;  %s15523_s18 = int_to_ptr.vmem [resolvable:$true] %s26_s18 }
  0x28   :  { %s15283_s21 = scalar_lea.hbm %s15980_s6, 96 }
  0x29   :  { %p15284_p2 = scmp.ne.s32.totalorder %s15980_s6, %s15283_s21  ;;  %p15287_p3 = scmp.lt.u32.totalorder %s15283_s21, %s15980_s6 }
  0x2b   :  { %p15289_p4 = pnand %p15287_p3, %p15284_p2 }
  0x2d   :  { %15292 = shalt.err (!%p15289_p4)
}
  0x2e   :  { %s15293_s4 = scalar_lea.vmem %s82_s16, 96  ;;  %p15298_p6 = scmp.lt.s32.totalorder %s82_s16, %s82_s16 }
  0x2f   :  { %p15294_p5 = scmp.ne.s32.totalorder %s82_s16, %s15293_s4  ;;  %p15299_p7 = scmp.lt.s32.totalorder %s15293_s4, %s15293_s4 }
  0x31   :  { %p15300_p8 = por %p15299_p7, %p15298_p6 }
  0x33   :  { %p15301_p9 = pnand %p15300_p8, %p15294_p5 }
  0x35   :  { %15304 = shalt.err (!%p15301_p9)
}
  0x36   :  { %84 = dma.hbm_to_vmem [thread:$0]  %s15980_s6, 96, %s82_s16, [#allocation12]  }
  0x37   :  { %s15305_s29 = scalar_lea.hbm %s15975_s1, 512 }
  0x38   :  { %p15306_p10 = scmp.ne.s32.totalorder %s15975_s1, %s15305_s29  ;;  %p15309_p11 = scmp.lt.u32.totalorder %s15305_s29, %s15975_s1 }
  0x3a   :  { %p15311_p12 = pnand %p15309_p11, %p15306_p10 }
  0x3c   :  { %15314 = shalt.err (!%p15311_p12)
}
  0x3d   :  { %s15315_s13 = scalar_lea.vmem %s15523_s18, 512  ;;  %p15320_p0 = scmp.lt.s32.totalorder %s15523_s18, %s15523_s18 }
  0x3e   :  { %p15316_p13 = scmp.ne.s32.totalorder %s15523_s18, %s15315_s13  ;;  %p15321_p1 = scmp.lt.s32.totalorder %s15315_s13, %s15315_s13 }
  0x40   :  { %p15322_p2 = por %p15321_p1, %p15320_p0 }
  0x42   :  { %p15323_p3 = pnand %p15322_p2, %p15316_p13 }
  0x44   :  { %15326 = shalt.err (!%p15323_p3)
}
  0x45   :  { %s15431_s6 = smov 64   ;;  %s15432_s14 = smov 4  }
  0x46   :  { %32 = dma.hbm_to_vmem [thread:$0]  %s15975_s1, 512, %s15523_s18, [#allocation4], %s15431_s6, %s15431_s6, %s15432_s14  }
  0x47   :  { %s15433_s17 = smov [#allocation7]   ;;  %s15434_s20 = smov [#allocation10]  }
  0x48   :  { %s49_s19 = sshll.u32 %s15433_s17, 4  ;;  %s71_s21 = sshll.u32 %s15434_s20, 4  ;;  %s50_s19 = int_to_ptr.vmem [resolvable:$true] %s49_s19  ;;  %s72_s21 = int_to_ptr.vmem [resolvable:$true] %s71_s21 }
  0x49   :  { %s15327_s24 = scalar_lea.hbm %s15977_s3, 16 }
  0x4a   :  { %p15328_p4 = scmp.ne.s32.totalorder %s15977_s3, %s15327_s24  ;;  %p15331_p5 = scmp.lt.u32.totalorder %s15327_s24, %s15977_s3 }
  0x4c   :  { %p15333_p6 = pnand %p15331_p5, %p15328_p4 }
  0x4e   :  { %15336 = shalt.err (!%p15333_p6)
}
  0x4f   :  { %s15337_s1 = scalar_lea.vmem %s50_s19, 16  ;;  %s15341_s18 = scalar_lea.vmem %s50_s19, 32 }
  0x50   :  { %p15338_p7 = scmp.ne.s32.totalorder %s50_s19, %s15337_s1  ;;  %p15342_p8 = scmp.lt.s32.totalorder %s50_s19, %s50_s19 }
  0x51   :  { %p15343_p9 = scmp.lt.s32.totalorder %s15341_s18, %s15337_s1 }
  0x53   :  { %p15344_p10 = por %p15343_p9, %p15342_p8 }
  0x55   :  { %p15345_p11 = pnand %p15344_p10, %p15338_p7 }
  0x57   :  { %15348 = shalt.err (!%p15345_p11)
}
  0x58   :  { %52 = dma.hbm_to_vmem [thread:$0]  %s15977_s3, 16, %s50_s19, [#allocation6]  }
  0x59   :  { %s15349_s11 = scalar_lea.hbm %s15979_s5, 96 }
  0x5a   :  { %p15350_p12 = scmp.ne.s32.totalorder %s15979_s5, %s15349_s11  ;;  %p15353_p13 = scmp.lt.u32.totalorder %s15349_s11, %s15979_s5 }
  0x5c   :  { %p15355_p0 = pnand %p15353_p13, %p15350_p12 }
  0x5e   :  { %15358 = shalt.err (!%p15355_p0)
}
  0x5f   :  { %s15359_s14 = scalar_lea.vmem %s72_s21, 96  ;;  %p15364_p2 = scmp.lt.s32.totalorder %s72_s21, %s72_s21 }
  0x60   :  { %p15360_p1 = scmp.ne.s32.totalorder %s72_s21, %s15359_s14  ;;  %p15365_p3 = scmp.lt.s32.totalorder %s15359_s14, %s15359_s14 }
  0x62   :  { %p15366_p4 = por %p15365_p3, %p15364_p2 }
  0x64   :  { %p15367_p5 = pnand %p15366_p4, %p15360_p1 }
  0x66   :  { %15370 = shalt.err (!%p15367_p5)
}
  0x67   :  { %74 = dma.hbm_to_vmem [thread:$0]  %s15979_s5, 96, %s72_s21, [#allocation9]  }
  0x68   :  { %s15435_s16 = smov [#allocation13]   ;;  %s15371_s22 = scalar_lea.hbm %s15981_s7, 12288 }
  0x69   :  { %s90_s17 = sshll.u32 %s15435_s16, 4  ;;  %p15372_p6 = scmp.ne.s32.totalorder %s15981_s7, %s15371_s22  ;;  %s91_s17 = int_to_ptr.vmem [resolvable:$true] %s90_s17 }
  0x6a   :  { %p15375_p7 = scmp.lt.u32.totalorder %s15371_s22, %s15981_s7 }
  0x6c   :  { %p15377_p8 = pnand %p15375_p7, %p15372_p6 }
  0x6e   :  { %15380 = shalt.err (!%p15377_p8)
}
  0x6f   :  { %s15381_s12 = scalar_lea.vmem %s91_s17, 12288  ;;  %p15386_p10 = scmp.lt.s32.totalorder %s91_s17, %s91_s17 }
  0x70   :  { %p15382_p9 = scmp.ne.s32.totalorder %s91_s17, %s15381_s12  ;;  %p15387_p11 = scmp.lt.s32.totalorder %s15381_s12, %s15381_s12 }
  0x72   :  { %p15388_p12 = por %p15387_p11, %p15386_p10 }
  0x74   :  { %p15389_p13 = pnand %p15388_p12, %p15382_p9 }
  0x76   :  { %15392 = shalt.err (!%p15389_p13)
}
  0x77   :  { %s15436_s5 = smov 128   ;;  %s15437_s21 = smov 8  }
  0x78   :  { %96 = dma.hbm_to_vmem [thread:$0]  %s15981_s7, 12288, %s91_s17, [#allocation12], %s15436_s5, %s15436_s5, %s15437_s21  }
  0x79   :  { %s15438_s18 = smov [#allocation14]   ;;  %s15393_s30 = scalar_lea.hbm %s15982_s8, 16 }
  0x7a   :  { %s103_s27 = sshll.u32 %s15438_s18, 4  ;;  %p15394_p0 = scmp.ne.s32.totalorder %s15982_s8, %s15393_s30  ;;  %s104_s27 = int_to_ptr.vmem [resolvable:$true] %s103_s27 }
  0x7b   :  { %p15397_p1 = scmp.lt.u32.totalorder %s15393_s30, %s15982_s8 }
  0x7d   :  { %p15399_p2 = pnand %p15397_p1, %p15394_p0 }
  0x7f   :  { %15402 = shalt.err (!%p15399_p2)
}
  0x80   :  { %s15403_s6 = scalar_lea.vmem %s104_s27, 16  ;;  %s15407_s7 = scalar_lea.vmem %s104_s27, 32 }
  0x81   :  { %p15404_p3 = scmp.ne.s32.totalorder %s104_s27, %s15403_s6  ;;  %p15408_p4 = scmp.lt.s32.totalorder %s104_s27, %s104_s27 }
  0x82   :  { %p15409_p5 = scmp.lt.s32.totalorder %s15407_s7, %s15403_s6 }
  0x84   :  { %p15410_p6 = por %p15409_p5, %p15408_p4 }
  0x86   :  { %p15411_p7 = pnand %p15410_p6, %p15404_p3 }
  0x88   :  { %15414 = shalt.err (!%p15411_p7)
}
  0x89   :  { %106 = dma.hbm_to_vmem [thread:$0]  %s15982_s8, 16, %s104_s27, [#allocation15]  }
  0x8a   :  { %15415 = dma.done.wait [#allocation4], 512  }
  0x8b   :  { %15416 = vsyncadd [#allocation4], 4294966784 }
  0x8c   :  { %15417 = dma.done.wait [#allocation6], 32  }
  0x8d   :  { %15418 = vsyncadd [#allocation6], 4294967264 }
  0x8e   :  { %15419 = dma.done.wait [#allocation9], 153696  }
  0x8f   :  { %15420 = vsyncadd [#allocation9], 4294813600 }
  0x90   :  { %15421 = dma.done.wait [#allocation12], 12384  }
  0x91   :  { %15422 = vsyncadd [#allocation12], 4294954912 }
  0x92   :  { %15423 = dma.done.wait [#allocation15], 16  }
  0x93   :  { %15424 = vsyncadd [#allocation15], 4294967280  ;;  %v15439_v0 = vmov 0.0   ;;  %vm15440_vm0 = vmmov 0   ;;  %v13417_v1 = vld [vmem:[#allocation3] sm:$0xff]   ;;  %v13418_v2 = vld [vmem:[#allocation3 + $0x8] sm:$0xff]  }
  0x94   :  { %12962 = vmatprep.subr.bf16.mxu0 %v15439_v0  ;;  %12970 = vmatprep.mubr.msk.bf16.mxu0 %vm15440_vm0, %v15439_v0  ;;  %v13419_v3 = vld [vmem:[#allocation3 + $0x10] sm:$0xff]   ;;  %v13420_v4 = vld [vmem:[#allocation3 + $0x18] sm:$0xff]   ;;  %vm252_vm1 = vcmask 523264   ;;  %v13432_v7 = vld [vmem:[#allocation8 + $0x184] ss:$24 sps:$4 sm:$0xff]   ;;  %v15441_v35 = vmov 0  }
  0x95   :  { %12963 = vmatpush3.bf16.msra.mxu0 %v13417_v1  ;;  %v13421_v5 = vld [vmem:[%s15974_s0] sm:$0xff]   ;;  %v13436_v8 = vld [vmem:[#allocation8 + $0x1b4] ss:$24 sps:$4 sm:$0xff]   ;;  %v13434_v9 = vld [vmem:[#allocation8 + $0x1b0] ss:$24 sps:$4 sm:$0xff]   ;;  %5632 = vmatprep.mubr.bf16.mxu1 %v15441_v35 }
  0x96   :  { %12964 = vmatprep.subr.bf16.mxu0 %v15439_v0  ;;  %v13430_v6 = vld [vmem:[#allocation8 + $0x180] ss:$24 sps:$4 sm:$0xff]   ;;  %v13439_v11 = vld [vmem:[#allocation8 + $0x1e4] ss:$24 sps:$4 sm:$0xff]   ;;  %v13443_v13 = vld [vmem:[#allocation8 + $0x214] ss:$24 sps:$4 sm:$0xff]  }
  0x97   :  { %v13422_v10 = vld [vmem:[%s15974_s0 + $0x8] sm:$0xff]   ;;  %v13441_v14 = vld [vmem:[#allocation8 + $0x210] ss:$24 sps:$4 sm:$0xff]   ;;  %v13425_v17 = vld [vmem:[%s15974_s0 + $0x20] sm:$0xff]  }
  0x98   :  { %v13437_v12 = vld [vmem:[#allocation8 + $0x1e0] ss:$24 sps:$4 sm:$0xff]   ;;  %v13423_v15 = vld [vmem:[%s15974_s0 + $0x10] sm:$0xff]   ;;  %v13424_v16 = vld [vmem:[%s15974_s0 + $0x18] sm:$0xff]  }
  0x99   :  { %12965 = vmatpush3.bf16.msra.mxu0 %v13418_v2  ;;  %v13426_v18 = vld [vmem:[%s15974_s0 + $0x28] sm:$0xff]   ;;  %v13427_v19 = vld [vmem:[%s15974_s0 + $0x30] sm:$0xff]   ;;  %v13428_v20 = vld [vmem:[%s15974_s0 + $0x38] sm:$0xff]  }
  0x9a   :  { %12966 = vmatprep.subr.bf16.mxu0 %v15439_v0  ;;  %v13429_v21 = vld [vmem:[%s15974_s0 + $0x40] sm:$0xff]   ;;  %v13433_v22 = vld [vmem:[%s15974_s0 + $0x48] sm:$0xff]   ;;  %v13440_v23 = vld [vmem:[%s15974_s0 + $0x50] sm:$0xff]  }
  0x9b   :  { %v13446_v24 = vld [vmem:[#allocation8 + $0x244] ss:$24 sps:$4 sm:$0xff]   ;;  %v13444_v25 = vld [vmem:[#allocation8 + $0x240] ss:$24 sps:$4 sm:$0xff]   ;;  %v13447_v26 = vld [vmem:[%s15974_s0 + $0x58] sm:$0xff]  }
  0x9c   :  { %v13450_v27 = vld [vmem:[#allocation8 + $0x274] ss:$24 sps:$4 sm:$0xff]   ;;  %v13448_v28 = vld [vmem:[#allocation8 + $0x270] ss:$24 sps:$4 sm:$0xff]   ;;  %v13453_v29 = vld [vmem:[#allocation8 + $0x2a4] ss:$24 sps:$4 sm:$0xff]  }
  0x9d   :  { %12967 = vmatpush3.bf16.msra.mxu0 %v13419_v3  ;;  %v13451_v30 = vld [vmem:[#allocation8 + $0x2a0] ss:$24 sps:$4 sm:$0xff]   ;;  %v13457_v32 = vld [vmem:[#allocation8 + $0x2d4] ss:$24 sps:$4 sm:$0xff]   ;;  %v13455_v33 = vld [vmem:[#allocation8 + $0x2d0] ss:$24 sps:$4 sm:$0xff]  }
  0x9e   :  { %12968 = vmatprep.subr.bf16.mxu0 %v15439_v0  ;;  %v13454_v31 = vld [vmem:[%s15974_s0 + $0x60] ss:$0 sps:$4 sm:$0xff]   ;;  %v13460_v34 = vld [vmem:[#allocation8 + $0x18c] ss:$24 sps:$4 sm:$0xff]   ;;  %v13469_v37 = vld [vmem:[#allocation8 + $0x1090] ss:$24 sps:$4 sm:$0xff]  }
  0x9f   :  { %v13467_v36 = vld [vmem:[#allocation8 + $0x1094] ss:$24 sps:$4 sm:$0xff]   ;;  %v13473_v38 = vld [vmem:[#allocation8 + $0x10c4] ss:$24 sps:$4 sm:$0xff]   ;;  %v13475_v39 = vld [vmem:[#allocation8 + $0x10c0] ss:$24 sps:$4 sm:$0xff]  }
  0xa0   :  { %5600 = vmatprep.subr.bf16.mxu1 %v13467_v36  ;;  %v13479_v40 = vld [vmem:[#allocation8 + $0x10f4] ss:$24 sps:$4 sm:$0xff]   ;;  %v13481_v41 = vld [vmem:[#allocation8 + $0x10f0] ss:$24 sps:$4 sm:$0xff]   ;;  %v13485_v42 = vld [vmem:[#allocation8 + $0x1124] ss:$24 sps:$4 sm:$0xff]  }
  0xa1   :  { %12969 = vmatpush3.bf16.msra.mxu0 %v13420_v4  ;;  %5601 = vmatpush1.bf16.msra.mxu1 %v13469_v37  ;;  %v13487_v43 = vld [vmem:[#allocation8 + $0x1120] ss:$24 sps:$4 sm:$0xff]   ;;  %v13491_v44 = vld [vmem:[#allocation8 + $0x1154] ss:$24 sps:$4 sm:$0xff]   ;;  %v13493_v45 = vld [vmem:[#allocation8 + $0x1150] ss:$24 sps:$4 sm:$0xff]  }
  0xa2   :  { %981 = vmatprep.subr.bf16.mxu0 %v13432_v7  ;;  %5602 = vmatprep.subr.bf16.mxu1 %v13473_v38  ;;  %v13497_v46 = vld [vmem:[#allocation8 + $0x1184] ss:$24 sps:$4 sm:$0xff]   ;;  %v13499_v47 = vld [vmem:[#allocation8 + $0x1180] ss:$24 sps:$4 sm:$0xff]   ;;  %v13503_v48 = vld [vmem:[#allocation8 + $0x11b4] ss:$24 sps:$4 sm:$0xff]  }
  0xa3   :  { %v13505_v49 = vld [vmem:[#allocation8 + $0x11b0] ss:$24 sps:$4 sm:$0xff]   ;;  %v13509_v50 = vld [vmem:[#allocation8 + $0x11e4] ss:$24 sps:$4 sm:$0xff]   ;;  %v13511_v51 = vld [vmem:[#allocation8 + $0x11e0] ss:$24 sps:$4 sm:$0xff]  }
  0xa4   :  { %12971 = vmatmul.mubr.msk.bf16.vlgmr.msra.gmra.mrb[0].mxu0 %vm252_vm1, %v13421_v5  ;;  %v13517_v52 = vld [vmem:[#allocation8 + $0x1204] ss:$24 sps:$4 sm:$0xff]  }
  0xa5   :  { %12974 = vmatprep.mubr.msk.bf16.mxu0 %vm15440_vm0, %v15439_v0  ;;  %982 = vmatpush1.bf16.msra.mxu0 %v13430_v6  ;;  %v15686_v53 = vld [vmem:[#allocation5] ss:$0 sm:$0xff]  ;;  %v15688_v55 = vld [vmem:[#allocation7] ss:$0 sm:$0xff] }
  0xa6   :  { %983 = vmatprep.subr.bf16.mxu0 %v13436_v8  ;;  %5603 = vmatpush1.bf16.msra.mxu1 %v13475_v39  ;;  %v13470_v39 = vld [vmem:[#allocation8 + $0x218] ss:$24 sps:$4 sm:$0xff]  }
  0xa7   :  { %5604 = vmatprep.subr.bf16.mxu1 %v13479_v40 }
  0xa9   :  { %984 = vmatpush1.bf16.msra.mxu0 %v13434_v9 }
  0xaa   :  { %985 = vmatprep.subr.bf16.mxu0 %v13439_v11  ;;  %5605 = vmatpush1.bf16.msra.mxu1 %v13481_v41  ;;  %v13478_v41 = vld [vmem:[#allocation8 + $0x24c] ss:$24 sps:$4 sm:$0xff]  }
  0xab   :  { %5606 = vmatprep.subr.bf16.mxu1 %v13485_v42 }
  0xac   :  { %12975 = vmatmul.mubr.msk.bf16.gmra.mrb[4].mxu0 %vm252_vm1, %v13422_v10  ;;  %v13458_v10 = vld [vmem:[#allocation8 + $0x188] ss:$24 sps:$4 sm:$0xff]  }
  0xad   :  { %12978 = vmatprep.mubr.msk.bf16.mxu0 %vm15440_vm0, %v15439_v0  ;;  %986 = vmatpush1.bf16.msra.mxu0 %v13437_v12 }
  0xae   :  { %987 = vmatprep.subr.bf16.mxu0 %v13443_v13  ;;  %5607 = vmatpush1.bf16.msra.mxu1 %v13487_v43 }
  0xaf   :  { %5608 = vmatprep.subr.bf16.mxu1 %v13491_v44 }
  0xb1   :  { %988 = vmatpush1.bf16.msra.mxu0 %v13441_v14 }
  0xb2   :  { %989 = vmatprep.subr.bf16.mxu0 %v13446_v24  ;;  %5609 = vmatpush1.bf16.msra.mxu1 %v13493_v45  ;;  %v13476_v45 = vld [vmem:[#allocation8 + $0x248] ss:$24 sps:$4 sm:$0xff]  }
  0xb3   :  { %5610 = vmatprep.subr.bf16.mxu1 %v13497_v46 }
  0xb4   :  { %12979 = vmatmul.mubr.msk.bf16.gmra.mrb[8].mxu0 %vm252_vm1, %v13423_v15 }
  0xb5   :  { %12982 = vmatprep.mubr.msk.bf16.mxu0 %vm15440_vm0, %v15439_v0  ;;  %990 = vmatpush1.bf16.msra.mxu0 %v13444_v25  ;;  %v13466_v25 = vld [vmem:[#allocation8 + $0x1ec] ss:$24 sps:$4 sm:$0xff]  }
  0xb6   :  { %991 = vmatprep.subr.bf16.mxu0 %v13450_v27  ;;  %5611 = vmatpush1.bf16.msra.mxu1 %v13499_v47 }
  0xb7   :  { %5612 = vmatprep.subr.bf16.mxu1 %v13503_v48 }
  0xb9   :  { %992 = vmatpush1.bf16.msra.mxu0 %v13448_v28 }
  0xba   :  { %993 = vmatprep.subr.bf16.mxu0 %v13453_v29  ;;  %5613 = vmatpush1.bf16.msra.mxu1 %v13505_v49  ;;  %v13464_v29 = vld [vmem:[#allocation8 + $0x1e8] ss:$24 sps:$4 sm:$0xff]   ;;  %v13484_v49 = vld [vmem:[#allocation8 + $0x27c] ss:$24 sps:$4 sm:$0xff]  }
  0xbb   :  { %5614 = vmatprep.subr.bf16.mxu1 %v13509_v50 }
  0xbc   :  { %12983 = vmatmul.mubr.msk.bf16.gmra.mrb[12].mxu0 %vm252_vm1, %v13424_v16 }
  0xbd   :  { %12986 = vmatprep.mubr.msk.bf16.mxu0 %vm15440_vm0, %v15439_v0  ;;  %994 = vmatpush1.bf16.msra.mxu0 %v13451_v30 }
  0xbe   :  { %995 = vmatprep.subr.bf16.mxu0 %v13457_v32  ;;  %5615 = vmatpush1.bf16.msra.mxu1 %v13511_v51 }
  0xbf   :  { %5936 = vmatprep.subr.bf16.mxu1 %v13517_v52 }
  0xc1   :  { %996 = vmatpush1.bf16.msra.mxu0 %v13455_v33  ;;  %v13472_v33 = vld [vmem:[#allocation8 + $0x21c] ss:$24 sps:$4 sm:$0xff]  }
  0xc2   :  { %1022 = vmatprep.subr.bf16.mxu0 %v13460_v34 }
  0xc4   :  { %12987 = vmatmul.mubr.msk.bf16.gmra.mrb[16].mxu0 %vm252_vm1, %v13425_v17  ;;  %v13463_v17 = vld [vmem:[#allocation8 + $0x1bc] ss:$24 sps:$4 sm:$0xff]  }
  0xc5   :  { %12990 = vmatprep.mubr.msk.bf16.mxu0 %vm15440_vm0, %v15439_v0 }
  0xcc   :  { %12991 = vmatmul.mubr.msk.bf16.gmra.mrb[20].mxu0 %vm252_vm1, %v13426_v18 }
  0xcd   :  { %12994 = vmatprep.mubr.msk.bf16.mxu0 %vm15440_vm0, %v15439_v0 }
  0xd4   :  { %12995 = vmatmul.mubr.msk.bf16.gmra.mrb[24].mxu0 %vm252_vm1, %v13427_v19 }
  0xd5   :  { %12998 = vmatprep.mubr.msk.bf16.mxu0 %vm15440_vm0, %v15439_v0 }
  0xdc   :  { %12999 = vmatmul.mubr.msk.bf16.gmra.mrb[28].mxu0 %vm252_vm1, %v13428_v20 }
  0xdd   :  { %13002 = vmatprep.mubr.msk.bf16.mxu0 %vm15440_vm0, %v15439_v0 }
  0xe4   :  { %13003 = vmatmul.mubr.msk.bf16.gmra.mrb[32].mxu0 %vm252_vm1, %v13429_v21 }
  0xe5   :  { %13006 = vmatprep.mubr.msk.bf16.mxu0 %vm15440_vm0, %v15439_v0 }
  0xec   :  { %13007 = vmatmul.mubr.msk.bf16.gmra.mrb[36].mxu0 %vm252_vm1, %v13433_v22 }
  0xed   :  { %13010 = vmatprep.mubr.msk.bf16.mxu0 %vm15440_vm0, %v15439_v0 }
  0xf4   :  { %13011 = vmatmul.mubr.msk.bf16.gmra.mrb[40].mxu0 %vm252_vm1, %v13440_v23  ;;  %v13461_v23 = vld [vmem:[#allocation8 + $0x1b8] ss:$24 sps:$4 sm:$0xff]  }
  0xf5   :  { %13014 = vmatprep.mubr.msk.bf16.mxu0 %vm15440_vm0, %v15439_v0 }
  0xfc   :  { %13015 = vmatmul.mubr.msk.bf16.gmra.mrb[44].mxu0 %vm252_vm1, %v13447_v26 }
  0xfd   :  { %13018 = vmatprep.mubr.msk.bf16.mxu0 %vm15440_vm0, %v15439_v0 }
 0x104   :  { %13019 = vmatmul.mubr.msk.bf16.gmra.mrb[48].mxu0 %vm252_vm1, %v13454_v31 }
 0x105   :  { %1013 = vmatprep.mubr.bf16.mxu0 %v15441_v35 }
 0x177   :  { %v326_v54 = vpop.f32.mrb[0].mxu0 }
 0x178   :  { %v435_v56 = vmul.f32 %v15686_v53, %v326_v54  ;;  %v12972_v57 = vpop.f32.mrb[1].mxu0 }
 0x179   :  { %v329_v58 = vpop.f32.mrb[2].mxu0 }
 0x17a   :  { %v467_v59 = vadd.f32 %v15688_v55, %v435_v56  ;;  %v436_v60 = vmul.f32 %v15686_v53, %v329_v58  ;;  %v12973_v61 = vpop.f32.mrb[3].mxu0  ;;  %v13482_v56 = vld [vmem:[#allocation8 + $0x278] ss:$24 sps:$4 sm:$0xff]   ;;  %v13490_v58 = vld [vmem:[#allocation8 + $0x2ac] ss:$24 sps:$4 sm:$0xff]  }
 0x17c   :  { %v468_v62 = vadd.f32 %v15688_v55, %v436_v60  ;;  %v492_v63 = vmax.f32 %v467_v59, 0.0 }
 0x17e   :  { %v493_v0 = vmax.f32 %v468_v62, 0.0  ;;  %v13488_v62 = vld [vmem:[#allocation8 + $0x2a8] ss:$24 sps:$4 sm:$0xff]  }
 0x17f   :  { %v334_v1 = vpop.f32.mrb[4].mxu0 }
 0x180   :  { %v12772_v2 = vpack.c.bf16 %v493_v0, %v492_v63  ;;  %v437_v3 = vmul.f32 %v15686_v53, %v334_v1  ;;  %v12976_v4 = vpop.f32.mrb[5].mxu0 }
 0x181   :  { %v337_v5 = vpop.f32.mrb[6].mxu0 }
 0x182   :  { %12773 = vst [vmem:[#allocation2] sm:$0xff] %v12772_v2   ;;  %v469_v6 = vadd.f32 %v15688_v55, %v437_v3  ;;  %v438_v7 = vmul.f32 %v15686_v53, %v337_v5  ;;  %v12977_v8 = vpop.f32.mrb[7].mxu0  ;;  %v13496_v2 = vld [vmem:[#allocation8 + $0x2dc] ss:$24 sps:$4 sm:$0xff]  }
 0x184   :  { %v470_v9 = vadd.f32 %v15688_v55, %v438_v7  ;;  %v494_v11 = vmax.f32 %v469_v6, 0.0  ;;  %v13494_v7 = vld [vmem:[#allocation8 + $0x2d8] ss:$24 sps:$4 sm:$0xff]  }
 0x186   :  { %v495_v12 = vmax.f32 %v470_v9, 0.0  ;;  %v13502_v9 = vld [vmem:[#allocation8 + $0x194] ss:$24 sps:$4 sm:$0xff]  }
 0x187   :  { %v342_v13 = vpop.f32.mrb[8].mxu0 }
 0x188   :  { %v12777_v14 = vpack.c.bf16 %v495_v12, %v494_v11  ;;  %v439_v15 = vmul.f32 %v15686_v53, %v342_v13  ;;  %v12980_v16 = vpop.f32.mrb[9].mxu0 }
 0x189   :  { %v345_v18 = vpop.f32.mrb[10].mxu0  ;;  %v15699_v19 = vld [vmem:[#allocation2 + $0x4] sm:$0xf] }
 0x18a   :  { %12829 = vst [vmem:[#allocation2 + $0x8] sm:$0xff] %v12777_v14   ;;  %v471_v20 = vadd.f32 %v15688_v55, %v439_v15  ;;  %v440_v21 = vmul.f32 %v15686_v53, %v345_v18  ;;  %v12981_v22 = vpop.f32.mrb[11].mxu0  ;;  %1014 = vmatmul.mubr.bf16.vlgmr.msra.gmra.mrb[52].mxu0 %v15699_v19  ;;  %v13508_v15 = vld [vmem:[#allocation8 + $0x1c4] ss:$24 sps:$4 sm:$0xff]  }
 0x18b   :  { %1023 = vmatpush1.bf16.msra.mxu0 %v13458_v10  ;;  %1054 = vmatprep.mubr.bf16.mxu0 %v15441_v35  ;;  %v13500_v10 = vld [vmem:[#allocation8 + $0x190] ss:$24 sps:$4 sm:$0xff]  }
 0x18c   :  { %v472_v24 = vadd.f32 %v15688_v55, %v440_v21  ;;  %1024 = vmatprep.subr.bf16.mxu0 %v13463_v17  ;;  %v496_v26 = vmax.f32 %v471_v20, 0.0 }
 0x18e   :  { %v497_v27 = vmax.f32 %v472_v24, 0.0  ;;  %v13514_v24 = vld [vmem:[#allocation8 + $0x1f4] ss:$24 sps:$4 sm:$0xff]  }
 0x18f   :  { %1025 = vmatpush1.bf16.msra.mxu0 %v13461_v23  ;;  %v350_v28 = vpop.f32.mrb[12].mxu0  ;;  %v13506_v23 = vld [vmem:[#allocation8 + $0x1c0] ss:$24 sps:$4 sm:$0xff]  }
 0x190   :  { %v12782_v30 = vpack.c.bf16 %v497_v27, %v496_v26  ;;  %v441_v31 = vmul.f32 %v15686_v53, %v350_v28  ;;  %v12984_v32 = vpop.f32.mrb[13].mxu0  ;;  %1026 = vmatprep.subr.bf16.mxu0 %v13466_v25  ;;  %v13512_v27 = vld [vmem:[#allocation8 + $0x1f0] ss:$24 sps:$4 sm:$0xff]  }
 0x191   :  { %v353_v34 = vpop.f32.mrb[14].mxu0 }
 0x192   :  { %12830 = vst [vmem:[#allocation2 + $0x10] sm:$0xff] %v12782_v30   ;;  %v473_v36 = vadd.f32 %v15688_v55, %v441_v31  ;;  %v442_v37 = vmul.f32 %v15686_v53, %v353_v34  ;;  %v12985_v38 = vpop.f32.mrb[15].mxu0  ;;  %v13520_v30 = vld [vmem:[#allocation8 + $0x224] ss:$24 sps:$4 sm:$0xff]   ;;  %v13523_v31 = vld [vmem:[#allocation8 + $0x1234] ss:$24 sps:$4 sm:$0xff]  }
 0x193   :  { %1027 = vmatpush1.bf16.msra.mxu0 %v13464_v29  ;;  %v13515_v29 = vld [vmem:[#allocation8 + $0x1200] ss:$24 sps:$4 sm:$0xff]   ;;  %v13521_v34 = vld [vmem:[#allocation8 + $0x1230] ss:$24 sps:$4 sm:$0xff]  }
 0x194   :  { %v474_v40 = vadd.f32 %v15688_v55, %v442_v37  ;;  %1028 = vmatprep.subr.bf16.mxu0 %v13472_v33  ;;  %v498_v42 = vmax.f32 %v473_v36, 0.0  ;;  %v13526_v36 = vld [vmem:[#allocation8 + $0x254] ss:$24 sps:$4 sm:$0xff]   ;;  %v13529_v37 = vld [vmem:[#allocation8 + $0x1264] ss:$24 sps:$4 sm:$0xff]  }
 0x195   :  { %v13527_v38 = vld [vmem:[#allocation8 + $0x1260] ss:$24 sps:$4 sm:$0xff]  }
 0x196   :  { %v499_v43 = vmax.f32 %v474_v40, 0.0  ;;  %v13535_v40 = vld [vmem:[#allocation8 + $0x1294] ss:$24 sps:$4 sm:$0xff]  }
 0x197   :  { %1029 = vmatpush1.bf16.msra.mxu0 %v13470_v39  ;;  %v358_v44 = vpop.f32.mrb[16].mxu0  ;;  %v13532_v39 = vld [vmem:[#allocation8 + $0x284] ss:$24 sps:$4 sm:$0xff]  }
 0x198   :  { %v12787_v46 = vpack.c.bf16 %v499_v43, %v498_v42  ;;  %v443_v47 = vmul.f32 %v15686_v53, %v358_v44  ;;  %v12988_v48 = vpop.f32.mrb[17].mxu0  ;;  %1030 = vmatprep.subr.bf16.mxu0 %v13478_v41  ;;  %v13530_v41 = vld [vmem:[#allocation8 + $0x280] ss:$24 sps:$4 sm:$0xff]   ;;  %v13533_v42 = vld [vmem:[#allocation8 + $0x1290] ss:$24 sps:$4 sm:$0xff]  }
 0x199   :  { %v361_v50 = vpop.f32.mrb[18].mxu0  ;;  %v13538_v43 = vld [vmem:[#allocation8 + $0x2b4] ss:$24 sps:$4 sm:$0xff]   ;;  %v13541_v44 = vld [vmem:[#allocation8 + $0x12c4] ss:$24 sps:$4 sm:$0xff]  }
 0x19a   :  { %12831 = vst [vmem:[#allocation2 + $0x18] sm:$0xff] %v12787_v46   ;;  %v475_v51 = vadd.f32 %v15688_v55, %v443_v47  ;;  %v444_v52 = vmul.f32 %v15686_v53, %v361_v50  ;;  %v12989_v54 = vpop.f32.mrb[19].mxu0  ;;  %v13539_v46 = vld [vmem:[#allocation8 + $0x12c0] ss:$24 sps:$4 sm:$0xff]   ;;  %v13544_v47 = vld [vmem:[#allocation8 + $0x2e4] ss:$24 sps:$4 sm:$0xff]  }
 0x19b   :  { %1031 = vmatpush1.bf16.msra.mxu0 %v13476_v45  ;;  %v13536_v45 = vld [vmem:[#allocation8 + $0x2b0] ss:$24 sps:$4 sm:$0xff]   ;;  %v13547_v48 = vld [vmem:[#allocation8 + $0x12f4] ss:$24 sps:$4 sm:$0xff]   ;;  %v13548_v54 = vld [vmem:[#allocation8] ss:$24 sps:$4 sm:$0xff]  }
 0x19c   :  { %v476_v57 = vadd.f32 %v15688_v55, %v444_v52  ;;  %1032 = vmatprep.subr.bf16.mxu0 %v13484_v49  ;;  %v500_v59 = vmax.f32 %v475_v51, 0.0  ;;  %v13542_v49 = vld [vmem:[#allocation8 + $0x2e0] ss:$24 sps:$4 sm:$0xff]   ;;  %v13545_v50 = vld [vmem:[#allocation8 + $0x12f0] ss:$24 sps:$4 sm:$0xff]  }
 0x19d   :  { %v13550_v51 = vld [vmem:[#allocation8 + $0x4] ss:$24 sps:$4 sm:$0xff]  }
 0x19e   :  { %v501_v60 = vmax.f32 %v476_v57, 0.0  ;;  %v13553_v52 = vld [vmem:[#allocation8 + $0x1324] ss:$24 sps:$4 sm:$0xff]   ;;  %v13556_v57 = vld [vmem:[#allocation8 + $0x34] ss:$24 sps:$4 sm:$0xff]  }
 0x19f   :  { %1033 = vmatpush1.bf16.msra.mxu0 %v13482_v56  ;;  %v366_v61 = vpop.f32.mrb[20].mxu0  ;;  %v13551_v56 = vld [vmem:[#allocation8 + $0x1320] ss:$24 sps:$4 sm:$0xff]  }
 0x1a0   :  { %v12792_v63 = vpack.c.bf16 %v501_v60, %v500_v59  ;;  %v445_v0 = vmul.f32 %v15686_v53, %v366_v61  ;;  %v12992_v1 = vpop.f32.mrb[21].mxu0  ;;  %1034 = vmatprep.subr.bf16.mxu0 %v13490_v58  ;;  %v13559_v58 = vld [vmem:[#allocation8 + $0x1354] ss:$24 sps:$4 sm:$0xff]   ;;  %v13554_v59 = vld [vmem:[#allocation8 + $0x30] ss:$24 sps:$4 sm:$0xff]  }
 0x1a1   :  { %v369_v3 = vpop.f32.mrb[22].mxu0  ;;  %v13557_v60 = vld [vmem:[#allocation8 + $0x1350] ss:$24 sps:$4 sm:$0xff]   ;;  %v13562_v61 = vld [vmem:[#allocation8 + $0x64] ss:$24 sps:$4 sm:$0xff]  }
 0x1a2   :  { %12832 = vst [vmem:[#allocation2 + $0x20] sm:$0xff] %v12792_v63   ;;  %v477_v4 = vadd.f32 %v15688_v55, %v445_v0  ;;  %v446_v5 = vmul.f32 %v15686_v53, %v369_v3  ;;  %v12993_v6 = vpop.f32.mrb[23].mxu0  ;;  %v13560_v63 = vld [vmem:[#allocation8 + $0x60] ss:$24 sps:$4 sm:$0xff]   ;;  %v13566_v3 = vld [vmem:[#allocation8 + $0x90] ss:$24 sps:$4 sm:$0xff]  }
 0x1a3   :  { %1035 = vmatpush1.bf16.msra.mxu0 %v13488_v62  ;;  %v13565_v62 = vld [vmem:[#allocation8 + $0x120c] ss:$24 sps:$4 sm:$0xff]   ;;  %v13563_v0 = vld [vmem:[#allocation8 + $0x1208] ss:$24 sps:$4 sm:$0xff]  }
 0x1a4   :  { %v478_v8 = vadd.f32 %v15688_v55, %v446_v5  ;;  %1036 = vmatprep.subr.bf16.mxu0 %v13496_v2  ;;  %v502_v11 = vmax.f32 %v477_v4, 0.0  ;;  %v13568_v2 = vld [vmem:[#allocation8 + $0x94] ss:$24 sps:$4 sm:$0xff]   ;;  %v13569_v4 = vld [vmem:[#allocation8 + $0x1238] ss:$24 sps:$4 sm:$0xff]  }
 0x1a5   :  { %v13574_v5 = vld [vmem:[#allocation8 + $0xc4] ss:$24 sps:$4 sm:$0xff]  }
 0x1a6   :  { %v503_v12 = vmax.f32 %v478_v8, 0.0  ;;  %v13577_v6 = vld [vmem:[#allocation8 + $0x126c] ss:$24 sps:$4 sm:$0xff]   ;;  %v13575_v8 = vld [vmem:[#allocation8 + $0x1268] ss:$24 sps:$4 sm:$0xff]  }
 0x1a7   :  { %1037 = vmatpush1.bf16.msra.mxu0 %v13494_v7  ;;  %v374_v13 = vpop.f32.mrb[24].mxu0  ;;  %v13572_v7 = vld [vmem:[#allocation8 + $0xc0] ss:$24 sps:$4 sm:$0xff]  }
 0x1a8   :  { %v12797_v14 = vpack.c.bf16 %v503_v12, %v502_v11  ;;  %1063 = vmatprep.subr.bf16.mxu0 %v13502_v9  ;;  %v447_v16 = vmul.f32 %v15686_v53, %v374_v13  ;;  %v12996_v17 = vpop.f32.mrb[25].mxu0  ;;  %v13580_v9 = vld [vmem:[#allocation8 + $0xf4] ss:$24 sps:$4 sm:$0xff]   ;;  %v13578_v11 = vld [vmem:[#allocation8 + $0xf0] ss:$24 sps:$4 sm:$0xff]  }
 0x1a9   :  { %v377_v18 = vpop.f32.mrb[26].mxu0  ;;  %v13581_v12 = vld [vmem:[#allocation8 + $0x1298] ss:$24 sps:$4 sm:$0xff]   ;;  %v13586_v13 = vld [vmem:[#allocation8 + $0x124] ss:$24 sps:$4 sm:$0xff]  }
 0x1aa   :  { %12833 = vst [vmem:[#allocation2 + $0x28] sm:$0xff] %v12797_v14   ;;  %1055 = vmatmul.mubr.bf16.vlgmr.msra.gmra.mrb[56].mxu0 %v15699_v19  ;;  %v479_v20 = vadd.f32 %v15688_v55, %v447_v16  ;;  %v448_v21 = vmul.f32 %v15686_v53, %v377_v18  ;;  %v12997_v22 = vpop.f32.mrb[27].mxu0  ;;  %v13518_v53 = vld [vmem:[#allocation8 + $0x220] ss:$24 sps:$4 sm:$0xff]   ;;  %v13589_v14 = vld [vmem:[#allocation8 + $0x12cc] ss:$24 sps:$4 sm:$0xff]  }
 0x1ab   :  { %1064 = vmatpush1.bf16.msra.mxu0 %v13500_v10  ;;  %1095 = vmatprep.mubr.bf16.mxu0 %v15441_v35  ;;  %v13583_v10 = vld [vmem:[#allocation8 + $0x129c] ss:$24 sps:$4 sm:$0xff]   ;;  %v13587_v16 = vld [vmem:[#allocation8 + $0x12c8] ss:$24 sps:$4 sm:$0xff]   ;;  %v13598_v22 = vld [vmem:[#allocation8 + $0xc] ss:$24 sps:$4 sm:$0xff]  }
 0x1ac   :  { %1065 = vmatprep.subr.bf16.mxu0 %v13508_v15  ;;  %v504_v25 = vmax.f32 %v479_v20, 0.0  ;;  %v480_v26 = vadd.f32 %v15688_v55, %v448_v21  ;;  %v13524_v55 = vld [vmem:[#allocation8 + $0x250] ss:$24 sps:$4 sm:$0xff]   ;;  %v13584_v15 = vld [vmem:[#allocation8 + $0x120] ss:$24 sps:$4 sm:$0xff]  }
 0x1ad   :  { %v13592_v17 = vld [vmem:[#allocation8 + $0x154] ss:$24 sps:$4 sm:$0xff]   ;;  %v13590_v20 = vld [vmem:[#allocation8 + $0x150] ss:$24 sps:$4 sm:$0xff]  }
 0x1ae   :  { %v505_v28 = vmax.f32 %v480_v26, 0.0  ;;  %v13595_v18 = vld [vmem:[#allocation8 + $0x12fc] ss:$24 sps:$4 sm:$0xff]   ;;  %v13593_v21 = vld [vmem:[#allocation8 + $0x12f8] ss:$24 sps:$4 sm:$0xff]  }
 0x1af   :  { %1066 = vmatpush1.bf16.msra.mxu0 %v13506_v23  ;;  %v13601_v23 = vld [vmem:[#allocation8 + $0x132c] ss:$24 sps:$4 sm:$0xff]   ;;  %v13604_v26 = vld [vmem:[#allocation8 + $0x3c] ss:$24 sps:$4 sm:$0xff]  }
 0x1b0   :  { %1067 = vmatprep.subr.bf16.mxu0 %v13514_v24  ;;  %v12802_v32 = vpack.c.bf16 %v505_v28, %v504_v25  ;;  %v13596_v24 = vld [vmem:[#allocation8 + $0x8] ss:$24 sps:$4 sm:$0xff]   ;;  %v15731_v28 = vld [vmem:[#allocation2] sm:$0xf] }
 0x1b1   :  { %v5229_v33 = vld [vmem:[#allocation2 + $0x2c] sm:$0xf]  ;;  %v13599_v25 = vld [vmem:[#allocation8 + $0x1328] ss:$24 sps:$4 sm:$0xff]  }
 0x1b2   :  { %5633 = vmatmul.mubr.bf16.vlgmr.msra.gmra.mrb[0].mxu1 %v5229_v33  ;;  %12834 = vst [vmem:[#allocation2 + $0x30] sm:$0xff] %v12802_v32   ;;  %v13613_v32 = vld [vmem:[#allocation8 + $0x1214] ss:$24 sps:$4 sm:$0xff]   ;;  %v13608_v33 = vld [vmem:[#allocation8 + $0x68] ss:$24 sps:$4 sm:$0xff]  }
 0x1b3   :  { %1068 = vmatpush1.bf16.msra.mxu0 %v13512_v27  ;;  %5937 = vmatpush1.bf16.msra.mxu1 %v13515_v29  ;;  %v13607_v27 = vld [vmem:[#allocation8 + $0x135c] ss:$24 sps:$4 sm:$0xff]   ;;  %v13602_v29 = vld [vmem:[#allocation8 + $0x38] ss:$24 sps:$4 sm:$0xff]  }
 0x1b4   :  { %1069 = vmatprep.subr.bf16.mxu0 %v13520_v30  ;;  %5938 = vmatprep.subr.bf16.mxu1 %v13523_v31  ;;  %v13605_v30 = vld [vmem:[#allocation8 + $0x1358] ss:$24 sps:$4 sm:$0xff]   ;;  %v13610_v31 = vld [vmem:[#allocation8 + $0x6c] ss:$24 sps:$4 sm:$0xff]  }
 0x1b5   :  { %5968 = vmatprep.mubr.bf16.mxu1 %v15441_v35 }
 0x1b7   :  { %1070 = vmatpush1.bf16.msra.mxu0 %v13518_v53  ;;  %5939 = vmatpush1.bf16.msra.mxu1 %v13521_v34  ;;  %v13611_v53 = vld [vmem:[#allocation8 + $0x1210] ss:$24 sps:$4 sm:$0xff]   ;;  %v13616_v34 = vld [vmem:[#allocation8 + $0x9c] ss:$24 sps:$4 sm:$0xff]  }
 0x1b8   :  { %1071 = vmatprep.subr.bf16.mxu0 %v13526_v36  ;;  %5940 = vmatprep.subr.bf16.mxu1 %v13529_v37  ;;  %v13619_v36 = vld [vmem:[#allocation8 + $0x1244] ss:$24 sps:$4 sm:$0xff]   ;;  %v13614_v37 = vld [vmem:[#allocation8 + $0x98] ss:$24 sps:$4 sm:$0xff]  }
 0x1b9   :  { %v15727_v1 = vld [vmem:[#allocation2 + $0x30] sm:$0xf] }
 0x1bb   :  { %1072 = vmatpush1.bf16.msra.mxu0 %v13524_v55  ;;  %5941 = vmatpush1.bf16.msra.mxu1 %v13527_v38  ;;  %v13617_v55 = vld [vmem:[#allocation8 + $0x1240] ss:$24 sps:$4 sm:$0xff]   ;;  %v13622_v38 = vld [vmem:[#allocation8 + $0xcc] ss:$24 sps:$4 sm:$0xff]  }
 0x1bc   :  { %1073 = vmatprep.subr.bf16.mxu0 %v13532_v39  ;;  %5942 = vmatprep.subr.bf16.mxu1 %v13535_v40  ;;  %v13625_v39 = vld [vmem:[#allocation8 + $0x1274] ss:$24 sps:$4 sm:$0xff]   ;;  %v13620_v40 = vld [vmem:[#allocation8 + $0xc8] ss:$24 sps:$4 sm:$0xff]  }
 0x1bf   :  { %1074 = vmatpush1.bf16.msra.mxu0 %v13530_v41  ;;  %5943 = vmatpush1.bf16.msra.mxu1 %v13533_v42  ;;  %v13623_v41 = vld [vmem:[#allocation8 + $0x1270] ss:$24 sps:$4 sm:$0xff]   ;;  %v13628_v42 = vld [vmem:[#allocation8 + $0xfc] ss:$24 sps:$4 sm:$0xff]  }
 0x1c0   :  { %1075 = vmatprep.subr.bf16.mxu0 %v13538_v43  ;;  %5944 = vmatprep.subr.bf16.mxu1 %v13541_v44  ;;  %v13631_v43 = vld [vmem:[#allocation8 + $0x12a4] ss:$24 sps:$4 sm:$0xff]   ;;  %v13626_v44 = vld [vmem:[#allocation8 + $0xf8] ss:$24 sps:$4 sm:$0xff]  }
 0x1c3   :  { %1076 = vmatpush1.bf16.msra.mxu0 %v13536_v45  ;;  %5945 = vmatpush1.bf16.msra.mxu1 %v13539_v46  ;;  %v13629_v45 = vld [vmem:[#allocation8 + $0x12a0] ss:$24 sps:$4 sm:$0xff]   ;;  %v382_v46 = vpop.f32.mrb[28].mxu0 }
 0x1c4   :  { %1077 = vmatprep.subr.bf16.mxu0 %v13544_v47  ;;  %5946 = vmatprep.subr.bf16.mxu1 %v13547_v48  ;;  %v13634_v47 = vld [vmem:[#allocation8 + $0x12c] ss:$24 sps:$4 sm:$0xff]  }
 0x1c5   :  { %v13637_v48 = vld [vmem:[#allocation8 + $0x12d4] ss:$24 sps:$4 sm:$0xff]  }
 0x1c7   :  { %1078 = vmatpush1.bf16.msra.mxu0 %v13542_v49  ;;  %5947 = vmatpush1.bf16.msra.mxu1 %v13545_v50  ;;  %v15737_v49 = vld [vmem:[#allocation5] ss:$0 sm:$0xff] }
 0x1c8   :  { %1344 = vmatprep.subr.bf16.mxu0 %v13550_v51  ;;  %5948 = vmatprep.subr.bf16.mxu1 %v13553_v52  ;;  %v449_v50 = vmul.f32 %v15737_v49, %v382_v46  ;;  %v13000_v51 = vpop.f32.mrb[29].mxu0  ;;  %v13709_v46 = vld [vmem:[#allocation8 + $0x138c] ss:$24 sps:$4 sm:$0xff]  }
 0x1c9   :  { %v385_v52 = vpop.f32.mrb[30].mxu0  ;;  %v13715_v51 = vld [vmem:[#allocation8 + $0x13bc] ss:$24 sps:$4 sm:$0xff]  }
 0x1ca   :  { %1096 = vmatmul.mubr.bf16.vlgmr.msra.gmra.mrb[60].mxu0 %v15699_v19  ;;  %v13571_v19 = vld [vmem:[#allocation8 + $0x123c] ss:$24 sps:$4 sm:$0xff]  }
 0x1cb   :  { %1345 = vmatpush1.bf16.msra.mxu0 %v13548_v54  ;;  %5949 = vmatpush1.bf16.msra.mxu1 %v13551_v56  ;;  %v15740_v54 = vld [vmem:[#allocation7] ss:$0 sm:$0xff] }
 0x1cc   :  { %1346 = vmatprep.subr.bf16.mxu0 %v13556_v57  ;;  %5950 = vmatprep.subr.bf16.mxu1 %v13559_v58  ;;  %v481_v56 = vadd.f32 %v15740_v54, %v449_v50  ;;  %v450_v57 = vmul.f32 %v15737_v49, %v385_v52  ;;  %v13001_v58 = vpop.f32.mrb[31].mxu0  ;;  %v13712_v50 = vld [vmem:[#allocation8 + $0x394] ss:$24 sps:$4 sm:$0xff]  }
 0x1cd   :  { %1376 = vmatprep.mubr.bf16.mxu0 %v15441_v35  ;;  %v15751_v52 = vld [vmem:[#allocation2 + $0x34] sm:$0xf] }
 0x1ce   :  { %v13721_v58 = vld [vmem:[#allocation8 + $0x13ec] ss:$24 sps:$4 sm:$0xff]  }
 0x1cf   :  { %1347 = vmatpush1.bf16.msra.mxu0 %v13554_v59  ;;  %5951 = vmatpush1.bf16.msra.mxu1 %v13557_v60  ;;  %v13632_v59 = vld [vmem:[#allocation8 + $0x128] ss:$24 sps:$4 sm:$0xff]  }
 0x1d0   :  { %1348 = vmatprep.subr.bf16.mxu0 %v13562_v61  ;;  %5977 = vmatprep.subr.bf16.mxu1 %v13565_v62  ;;  %v13635_v60 = vld [vmem:[#allocation8 + $0x12d0] ss:$24 sps:$4 sm:$0xff]   ;;  %v13640_v61 = vld [vmem:[#allocation8 + $0x15c] ss:$24 sps:$4 sm:$0xff]  }
 0x1d1   :  { %v13643_v62 = vld [vmem:[#allocation8 + $0x1304] ss:$24 sps:$4 sm:$0xff]  }
 0x1d2   :  { %5969 = vmatmul.mubr.bf16.vlgmr.msra.gmra.mrb[4].mxu1 %v15727_v1 }
 0x1d3   :  { %1349 = vmatpush1.bf16.msra.mxu0 %v13560_v63  ;;  %5978 = vmatpush1.bf16.msra.mxu1 %v13563_v0  ;;  %v506_v63 = vmax.f32 %v481_v56, 0.0  ;;  %v482_v0 = vadd.f32 %v15740_v54, %v450_v57  ;;  %v13713_v56 = vld [vmem:[#allocation8 + $0x13b8] ss:$24 sps:$4 sm:$0xff]   ;;  %v13718_v57 = vld [vmem:[#allocation8 + $0x3c4] ss:$24 sps:$4 sm:$0xff]  }
 0x1d4   :  { %1350 = vmatprep.subr.bf16.mxu0 %v13568_v2  ;;  %5979 = vmatprep.subr.bf16.mxu1 %v13571_v19  ;;  %v13638_v19 = vld [vmem:[#allocation8 + $0x158] ss:$24 sps:$4 sm:$0xff]  }
 0x1d5   :  { %6009 = vmatprep.mubr.bf16.mxu1 %v15441_v35  ;;  %v507_v2 = vmax.f32 %v482_v0, 0.0  ;;  %v13725_v0 = vld [vmem:[#allocation8 + $0x1418] ss:$24 sps:$4 sm:$0xff]  }
 0x1d7   :  { %1351 = vmatpush1.bf16.msra.mxu0 %v13566_v3  ;;  %5980 = vmatpush1.bf16.msra.mxu1 %v13569_v4  ;;  %v13641_v3 = vld [vmem:[#allocation8 + $0x1300] ss:$24 sps:$4 sm:$0xff]   ;;  %v13646_v4 = vld [vmem:[#allocation8 + $0x14] ss:$24 sps:$4 sm:$0xff]  }
 0x1d8   :  { %1352 = vmatprep.subr.bf16.mxu0 %v13574_v5  ;;  %5981 = vmatprep.subr.bf16.mxu1 %v13577_v6  ;;  %v13649_v5 = vld [vmem:[#allocation8 + $0x1334] ss:$24 sps:$4 sm:$0xff]   ;;  %v12807_v6 = vpack.c.bf16 %v507_v2, %v506_v63  ;;  %v13722_v63 = vld [vmem:[#allocation8 + $0x3f0] ss:$24 sps:$4 sm:$0xff]   ;;  %v13730_v2 = vld [vmem:[#allocation8 + $0x424] ss:$24 sps:$4 sm:$0xff]  }
 0x1da   :  { %12835 = vst [vmem:[#allocation2 + $0x38] sm:$0xff] %v12807_v6   ;;  %v13739_v6 = vld [vmem:[#allocation8 + $0x147c] ss:$24 sps:$4 sm:$0xff]  }
 0x1db   :  { %1353 = vmatpush1.bf16.msra.mxu0 %v13572_v7  ;;  %5982 = vmatpush1.bf16.msra.mxu1 %v13575_v8  ;;  %v13644_v7 = vld [vmem:[#allocation8 + $0x10] ss:$24 sps:$4 sm:$0xff]  }
 0x1dc   :  { %1354 = vmatprep.subr.bf16.mxu0 %v13580_v9  ;;  %5983 = vmatprep.subr.bf16.mxu1 %v13583_v10  ;;  %v13647_v8 = vld [vmem:[#allocation8 + $0x1330] ss:$24 sps:$4 sm:$0xff]   ;;  %v13652_v9 = vld [vmem:[#allocation8 + $0x44] ss:$24 sps:$4 sm:$0xff]  }
 0x1dd   :  { %v13655_v10 = vld [vmem:[#allocation8 + $0x1364] ss:$24 sps:$4 sm:$0xff]  }
 0x1df   :  { %1355 = vmatpush1.bf16.msra.mxu0 %v13578_v11  ;;  %5984 = vmatpush1.bf16.msra.mxu1 %v13581_v12  ;;  %v13650_v11 = vld [vmem:[#allocation8 + $0x40] ss:$24 sps:$4 sm:$0xff]  }
 0x1e0   :  { %1356 = vmatprep.subr.bf16.mxu0 %v13586_v13  ;;  %5985 = vmatprep.subr.bf16.mxu1 %v13589_v14  ;;  %v13653_v12 = vld [vmem:[#allocation8 + $0x1360] ss:$24 sps:$4 sm:$0xff]   ;;  %v13658_v13 = vld [vmem:[#allocation8 + $0x74] ss:$24 sps:$4 sm:$0xff]   ;;  %v13661_v14 = vld [vmem:[#allocation8 + $0x1384] ss:$24 sps:$4 sm:$0xff]  }
 0x1e3   :  { %1357 = vmatpush1.bf16.msra.mxu0 %v13584_v15  ;;  %5986 = vmatpush1.bf16.msra.mxu1 %v13587_v16  ;;  %v13656_v15 = vld [vmem:[#allocation8 + $0x70] ss:$24 sps:$4 sm:$0xff]   ;;  %v13659_v16 = vld [vmem:[#allocation8 + $0x1380] ss:$24 sps:$4 sm:$0xff]  }
 0x1e4   :  { %1358 = vmatprep.subr.bf16.mxu0 %v13592_v17  ;;  %5987 = vmatprep.subr.bf16.mxu1 %v13595_v18  ;;  %v13664_v17 = vld [vmem:[#allocation8 + $0xa4] ss:$24 sps:$4 sm:$0xff]   ;;  %v13667_v18 = vld [vmem:[#allocation8 + $0x13b4] ss:$24 sps:$4 sm:$0xff]  }
 0x1e7   :  { %1359 = vmatpush1.bf16.msra.mxu0 %v13590_v20  ;;  %5988 = vmatpush1.bf16.msra.mxu1 %v13593_v21  ;;  %v13662_v20 = vld [vmem:[#allocation8 + $0xa0] ss:$24 sps:$4 sm:$0xff]   ;;  %v13665_v21 = vld [vmem:[#allocation8 + $0x13b0] ss:$24 sps:$4 sm:$0xff]  }
 0x1e8   :  { %1385 = vmatprep.subr.bf16.mxu0 %v13598_v22  ;;  %5989 = vmatprep.subr.bf16.mxu1 %v13601_v23  ;;  %v13670_v22 = vld [vmem:[#allocation8 + $0xd4] ss:$24 sps:$4 sm:$0xff]   ;;  %v13673_v23 = vld [vmem:[#allocation8 + $0x13e4] ss:$24 sps:$4 sm:$0xff]  }
 0x1ea   :  { %1377 = vmatmul.mubr.bf16.vlgmr.msra.gmra.mrb[52].mxu0 %v15731_v28 }
 0x1eb   :  { %1386 = vmatpush1.bf16.msra.mxu0 %v13596_v24  ;;  %5990 = vmatpush1.bf16.msra.mxu1 %v13599_v25  ;;  %v13668_v24 = vld [vmem:[#allocation8 + $0xd0] ss:$24 sps:$4 sm:$0xff]   ;;  %v13671_v25 = vld [vmem:[#allocation8 + $0x13e0] ss:$24 sps:$4 sm:$0xff]  }
 0x1ec   :  { %1387 = vmatprep.subr.bf16.mxu0 %v13604_v26  ;;  %5991 = vmatprep.subr.bf16.mxu1 %v13607_v27  ;;  %v13676_v26 = vld [vmem:[#allocation8 + $0x104] ss:$24 sps:$4 sm:$0xff]   ;;  %v13679_v27 = vld [vmem:[#allocation8 + $0x1414] ss:$24 sps:$4 sm:$0xff]  }
 0x1ed   :  { %1417 = vmatprep.mubr.bf16.mxu0 %v15441_v35 }
 0x1ef   :  { %1388 = vmatpush1.bf16.msra.mxu0 %v13602_v29  ;;  %5992 = vmatpush1.bf16.msra.mxu1 %v13605_v30  ;;  %v13677_v29 = vld [vmem:[#allocation8 + $0x1410] ss:$24 sps:$4 sm:$0xff]   ;;  %v13682_v30 = vld [vmem:[#allocation8 + $0x134] ss:$24 sps:$4 sm:$0xff]  }
 0x1f0   :  { %1389 = vmatprep.subr.bf16.mxu0 %v13610_v31  ;;  %6018 = vmatprep.subr.bf16.mxu1 %v13613_v32  ;;  %v13685_v31 = vld [vmem:[#allocation8 + $0x1444] ss:$24 sps:$4 sm:$0xff]   ;;  %v13680_v32 = vld [vmem:[#allocation8 + $0x130] ss:$24 sps:$4 sm:$0xff]  }
 0x1f2   :  { %6010 = vmatmul.mubr.bf16.vlgmr.msra.gmra.mrb[8].mxu1 %v15727_v1 }
 0x1f3   :  { %1390 = vmatpush1.bf16.msra.mxu0 %v13608_v33  ;;  %6019 = vmatpush1.bf16.msra.mxu1 %v13611_v53  ;;  %v13683_v33 = vld [vmem:[#allocation8 + $0x1440] ss:$24 sps:$4 sm:$0xff]   ;;  %v13688_v53 = vld [vmem:[#allocation8 + $0x164] ss:$24 sps:$4 sm:$0xff]  }
 0x1f4   :  { %1391 = vmatprep.subr.bf16.mxu0 %v13616_v34  ;;  %6020 = vmatprep.subr.bf16.mxu1 %v13619_v36  ;;  %v13691_v34 = vld [vmem:[#allocation8 + $0x1474] ss:$24 sps:$4 sm:$0xff]   ;;  %v13686_v36 = vld [vmem:[#allocation8 + $0x160] ss:$24 sps:$4 sm:$0xff]  }
 0x1f5   :  { %6050 = vmatprep.mubr.bf16.mxu1 %v15441_v35 }
 0x1f7   :  { %1392 = vmatpush1.bf16.msra.mxu0 %v13614_v37  ;;  %6021 = vmatpush1.bf16.msra.mxu1 %v13617_v55  ;;  %v13689_v37 = vld [vmem:[#allocation8 + $0x1470] ss:$24 sps:$4 sm:$0xff]   ;;  %v13694_v55 = vld [vmem:[#allocation8 + $0x304] ss:$24 sps:$4 sm:$0xff]  }
 0x1f8   :  { %1393 = vmatprep.subr.bf16.mxu0 %v13622_v38  ;;  %6022 = vmatprep.subr.bf16.mxu1 %v13625_v39  ;;  %v13697_v38 = vld [vmem:[#allocation8 + $0x14a4] ss:$24 sps:$4 sm:$0xff]   ;;  %v13692_v39 = vld [vmem:[#allocation8 + $0x300] ss:$24 sps:$4 sm:$0xff]  }
 0x1fb   :  { %1394 = vmatpush1.bf16.msra.mxu0 %v13620_v40  ;;  %6023 = vmatpush1.bf16.msra.mxu1 %v13623_v41  ;;  %v13695_v40 = vld [vmem:[#allocation8 + $0x14a0] ss:$24 sps:$4 sm:$0xff]   ;;  %v13700_v41 = vld [vmem:[#allocation8 + $0x334] ss:$24 sps:$4 sm:$0xff]  }
 0x1fc   :  { %1395 = vmatprep.subr.bf16.mxu0 %v13628_v42  ;;  %6024 = vmatprep.subr.bf16.mxu1 %v13631_v43  ;;  %v13703_v42 = vld [vmem:[#allocation8 + $0x14d4] ss:$24 sps:$4 sm:$0xff]   ;;  %v13698_v43 = vld [vmem:[#allocation8 + $0x330] ss:$24 sps:$4 sm:$0xff]  }
 0x1ff   :  { %1396 = vmatpush1.bf16.msra.mxu0 %v13626_v44  ;;  %6025 = vmatpush1.bf16.msra.mxu1 %v13629_v45  ;;  %v13701_v44 = vld [vmem:[#allocation8 + $0x14d0] ss:$24 sps:$4 sm:$0xff]   ;;  %v13706_v45 = vld [vmem:[#allocation8 + $0x364] ss:$24 sps:$4 sm:$0xff]  }
 0x200   :  { %1397 = vmatprep.subr.bf16.mxu0 %v13634_v47  ;;  %6026 = vmatprep.subr.bf16.mxu1 %v13637_v48  ;;  %v13704_v47 = vld [vmem:[#allocation8 + $0x360] ss:$24 sps:$4 sm:$0xff]  }
 0x201   :  { %v13707_v48 = vld [vmem:[#allocation8 + $0x1388] ss:$24 sps:$4 sm:$0xff]  }
 0x203   :  { %1398 = vmatpush1.bf16.msra.mxu0 %v13632_v59  ;;  %6027 = vmatpush1.bf16.msra.mxu1 %v13635_v60  ;;  %v13716_v59 = vld [vmem:[#allocation8 + $0x3c0] ss:$24 sps:$4 sm:$0xff]  }
 0x204   :  { %1399 = vmatprep.subr.bf16.mxu0 %v13640_v61  ;;  %6028 = vmatprep.subr.bf16.mxu1 %v13643_v62  ;;  %v13719_v60 = vld [vmem:[#allocation8 + $0x13e8] ss:$24 sps:$4 sm:$0xff]   ;;  %v13724_v61 = vld [vmem:[#allocation8 + $0x3f4] ss:$24 sps:$4 sm:$0xff]  }
 0x205   :  { %v13727_v62 = vld [vmem:[#allocation8 + $0x141c] ss:$24 sps:$4 sm:$0xff]  }
 0x207   :  { %1400 = vmatpush1.bf16.msra.mxu0 %v13638_v19  ;;  %6029 = vmatpush1.bf16.msra.mxu1 %v13641_v3  ;;  %v13733_v19 = vld [vmem:[#allocation8 + $0x144c] ss:$24 sps:$4 sm:$0xff]   ;;  %v13728_v3 = vld [vmem:[#allocation8 + $0x420] ss:$24 sps:$4 sm:$0xff]  }
 0x208   :  { %1426 = vmatprep.subr.bf16.mxu0 %v13646_v4  ;;  %6030 = vmatprep.subr.bf16.mxu1 %v13649_v5  ;;  %v13731_v4 = vld [vmem:[#allocation8 + $0x1448] ss:$24 sps:$4 sm:$0xff]   ;;  %v13736_v5 = vld [vmem:[#allocation8 + $0x454] ss:$24 sps:$4 sm:$0xff]  }
 0x20a   :  { %1418 = vmatmul.mubr.bf16.vlgmr.msra.gmra.mrb[56].mxu0 %v15731_v28 }
 0x20b   :  { %1427 = vmatpush1.bf16.msra.mxu0 %v13644_v7  ;;  %6031 = vmatpush1.bf16.msra.mxu1 %v13647_v8  ;;  %v13734_v7 = vld [vmem:[#allocation8 + $0x450] ss:$24 sps:$4 sm:$0xff]  }
 0x20c   :  { %1428 = vmatprep.subr.bf16.mxu0 %v13652_v9  ;;  %6032 = vmatprep.subr.bf16.mxu1 %v13655_v10  ;;  %v13737_v8 = vld [vmem:[#allocation8 + $0x1478] ss:$24 sps:$4 sm:$0xff]   ;;  %v13742_v9 = vld [vmem:[#allocation8 + $0x30c] ss:$24 sps:$4 sm:$0xff]  }
 0x20d   :  { %1458 = vmatprep.mubr.bf16.mxu0 %v15441_v35  ;;  %v13745_v10 = vld [vmem:[#allocation8 + $0x14ac] ss:$24 sps:$4 sm:$0xff]  }
 0x20f   :  { %1429 = vmatpush1.bf16.msra.mxu0 %v13650_v11  ;;  %6033 = vmatpush1.bf16.msra.mxu1 %v13653_v12  ;;  %v13740_v11 = vld [vmem:[#allocation8 + $0x308] ss:$24 sps:$4 sm:$0xff]  }
 0x210   :  { %1430 = vmatprep.subr.bf16.mxu0 %v13658_v13  ;;  %6354 = vmatprep.subr.bf16.mxu1 %v13661_v14  ;;  %v13743_v12 = vld [vmem:[#allocation8 + $0x14a8] ss:$24 sps:$4 sm:$0xff]   ;;  %v13748_v13 = vld [vmem:[#allocation8 + $0x33c] ss:$24 sps:$4 sm:$0xff]  }
 0x211   :  { %v13751_v14 = vld [vmem:[#allocation8 + $0x14dc] ss:$24 sps:$4 sm:$0xff]  }
 0x212   :  { %6051 = vmatmul.mubr.bf16.vlgmr.msra.gmra.mrb[0].mxu1 %v15727_v1  ;;  %v13674_v1 = vld [vmem:[#allocation8 + $0x100] ss:$24 sps:$4 sm:$0xff]  }
 0x213   :  { %1431 = vmatpush1.bf16.msra.mxu0 %v13656_v15  ;;  %6355 = vmatpush1.bf16.msra.mxu1 %v13659_v16  ;;  %v15755_v15 = vld [vmem:[#allocation2 + $0x8] sm:$0xf]  ;;  %v13746_v16 = vld [vmem:[#allocation8 + $0x338] ss:$24 sps:$4 sm:$0xff]  }
 0x214   :  { %1432 = vmatprep.subr.bf16.mxu0 %v13664_v17  ;;  %6356 = vmatprep.subr.bf16.mxu1 %v13667_v18  ;;  %v13749_v17 = vld [vmem:[#allocation8 + $0x14d8] ss:$24 sps:$4 sm:$0xff]   ;;  %v13754_v18 = vld [vmem:[#allocation8 + $0x36c] ss:$24 sps:$4 sm:$0xff]  }
 0x215   :  { %6386 = vmatprep.mubr.bf16.mxu1 %v15441_v35 }
 0x217   :  { %1433 = vmatpush1.bf16.msra.mxu0 %v13662_v20  ;;  %6357 = vmatpush1.bf16.msra.mxu1 %v13665_v21  ;;  %v13757_v20 = vld [vmem:[#allocation8 + $0x1394] ss:$24 sps:$4 sm:$0xff]   ;;  %v13752_v21 = vld [vmem:[#allocation8 + $0x368] ss:$24 sps:$4 sm:$0xff]  }
 0x218   :  { %1434 = vmatprep.subr.bf16.mxu0 %v13670_v22  ;;  %6358 = vmatprep.subr.bf16.mxu1 %v13673_v23  ;;  %v13755_v22 = vld [vmem:[#allocation8 + $0x1390] ss:$24 sps:$4 sm:$0xff]   ;;  %v13760_v23 = vld [vmem:[#allocation8 + $0x39c] ss:$24 sps:$4 sm:$0xff]  }
 0x21b   :  { %1435 = vmatpush1.bf16.msra.mxu0 %v13668_v24  ;;  %6359 = vmatpush1.bf16.msra.mxu1 %v13671_v25  ;;  %v13763_v24 = vld [vmem:[#allocation8 + $0x13c4] ss:$24 sps:$4 sm:$0xff]   ;;  %v13758_v25 = vld [vmem:[#allocation8 + $0x398] ss:$24 sps:$4 sm:$0xff]  }
 0x21c   :  { %1436 = vmatprep.subr.bf16.mxu0 %v13676_v26  ;;  %6360 = vmatprep.subr.bf16.mxu1 %v13679_v27  ;;  %v13761_v26 = vld [vmem:[#allocation8 + $0x13c0] ss:$24 sps:$4 sm:$0xff]   ;;  %v13766_v27 = vld [vmem:[#allocation8 + $0x3cc] ss:$24 sps:$4 sm:$0xff]  }
 0x21f   :  { %1437 = vmatpush1.bf16.msra.mxu0 %v13674_v1  ;;  %6361 = vmatpush1.bf16.msra.mxu1 %v13677_v29  ;;  %v13769_v1 = vld [vmem:[#allocation8 + $0x13f4] ss:$24 sps:$4 sm:$0xff]   ;;  %v13764_v29 = vld [vmem:[#allocation8 + $0x3c8] ss:$24 sps:$4 sm:$0xff]  }
 0x220   :  { %1438 = vmatprep.subr.bf16.mxu0 %v13682_v30  ;;  %6362 = vmatprep.subr.bf16.mxu1 %v13685_v31  ;;  %v13767_v30 = vld [vmem:[#allocation8 + $0x13f0] ss:$24 sps:$4 sm:$0xff]   ;;  %v13772_v31 = vld [vmem:[#allocation8 + $0x3fc] ss:$24 sps:$4 sm:$0xff]  }
 0x223   :  { %1439 = vmatpush1.bf16.msra.mxu0 %v13680_v32  ;;  %6363 = vmatpush1.bf16.msra.mxu1 %v13683_v33  ;;  %v13775_v32 = vld [vmem:[#allocation8 + $0x1424] ss:$24 sps:$4 sm:$0xff]   ;;  %v13770_v33 = vld [vmem:[#allocation8 + $0x3f8] ss:$24 sps:$4 sm:$0xff]  }
 0x224   :  { %1440 = vmatprep.subr.bf16.mxu0 %v13688_v53  ;;  %6364 = vmatprep.subr.bf16.mxu1 %v13691_v34  ;;  %v13773_v53 = vld [vmem:[#allocation8 + $0x1420] ss:$24 sps:$4 sm:$0xff]   ;;  %v390_v34 = vpop.f32.mrb[32].mxu0 }
 0x227   :  { %1441 = vmatpush1.bf16.msra.mxu0 %v13686_v36  ;;  %6365 = vmatpush1.bf16.msra.mxu1 %v13689_v37  ;;  %v13778_v36 = vld [vmem:[#allocation8 + $0x42c] ss:$24 sps:$4 sm:$0xff]  }
 0x228   :  { %1756 = vmatprep.subr.bf16.mxu0 %v13694_v55  ;;  %6366 = vmatprep.subr.bf16.mxu1 %v13697_v38  ;;  %v13781_v37 = vld [vmem:[#allocation8 + $0x1454] ss:$24 sps:$4 sm:$0xff]   ;;  %v451_v55 = vmul.f32 %v15737_v49, %v390_v34  ;;  %v13004_v38 = vpop.f32.mrb[33].mxu0  ;;  %v15236_v34 = vld [vmem:[#allocation5] ss:$0 sm:$0xff] }
 0x22a   :  { %1459 = vmatmul.mubr.bf16.vlgmr.msra.gmra.mrb[60].mxu0 %v15731_v28  ;;  %v13710_v28 = vld [vmem:[#allocation8 + $0x390] ss:$24 sps:$4 sm:$0xff]  }
 0x22b   :  { %1757 = vmatpush1.bf16.msra.mxu0 %v13692_v39  ;;  %6367 = vmatpush1.bf16.msra.mxu1 %v13695_v40  ;;  %v393_v39 = vpop.f32.mrb[34].mxu0  ;;  %v483_v40 = vadd.f32 %v15740_v54, %v451_v55 }
 0x22c   :  { %1758 = vmatprep.subr.bf16.mxu0 %v13700_v41  ;;  %6368 = vmatprep.subr.bf16.mxu1 %v13703_v42  ;;  %v452_v41 = vmul.f32 %v15737_v49, %v393_v39  ;;  %v13005_v42 = vpop.f32.mrb[35].mxu0 }
 0x22d   :  { %1788 = vmatprep.mubr.bf16.mxu0 %v15441_v35  ;;  %v13820_v42 = vld [vmem:[#allocation8 + $0x404] ss:$24 sps:$4 sm:$0xff]  }
 0x22f   :  { %1759 = vmatpush1.bf16.msra.mxu0 %v13698_v43  ;;  %6369 = vmatpush1.bf16.msra.mxu1 %v13701_v44  ;;  %v13776_v43 = vld [vmem:[#allocation8 + $0x428] ss:$24 sps:$4 sm:$0xff]  }
 0x230   :  { %1760 = vmatprep.subr.bf16.mxu0 %v13706_v45  ;;  %6395 = vmatprep.subr.bf16.mxu1 %v13709_v46  ;;  %v13779_v44 = vld [vmem:[#allocation8 + $0x1450] ss:$24 sps:$4 sm:$0xff]   ;;  %v13784_v45 = vld [vmem:[#allocation8 + $0x45c] ss:$24 sps:$4 sm:$0xff]  }
 0x231   :  { %v13787_v46 = vld [vmem:[#allocation8 + $0x1484] ss:$24 sps:$4 sm:$0xff]  }
 0x232   :  { %6387 = vmatmul.mubr.bf16.vlgmr.msra.gmra.mrb[4].mxu1 %v15751_v52 }
 0x233   :  { %1761 = vmatpush1.bf16.msra.mxu0 %v13704_v47  ;;  %6396 = vmatpush1.bf16.msra.mxu1 %v13707_v48  ;;  %v508_v47 = vmax.f32 %v483_v40, 0.0  ;;  %v484_v48 = vadd.f32 %v15740_v54, %v452_v41  ;;  %v13812_v40 = vld [vmem:[#allocation8 + $0x3d0] ss:$24 sps:$4 sm:$0xff]   ;;  %v13815_v41 = vld [vmem:[#allocation8 + $0x1560] ss:$24 sps:$4 sm:$0xff]  }
 0x234   :  { %1762 = vmatprep.subr.bf16.mxu0 %v13712_v50  ;;  %6397 = vmatprep.subr.bf16.mxu1 %v13715_v51  ;;  %v13782_v51 = vld [vmem:[#allocation8 + $0x458] ss:$24 sps:$4 sm:$0xff]  }
 0x235   :  { %6427 = vmatprep.mubr.bf16.mxu1 %v15441_v35  ;;  %v509_v50 = vmax.f32 %v484_v48, 0.0  ;;  %v13821_v48 = vld [vmem:[#allocation8 + $0x1590] ss:$24 sps:$4 sm:$0xff]  }
 0x237   :  { %1763 = vmatpush1.bf16.msra.mxu0 %v13710_v28  ;;  %6398 = vmatpush1.bf16.msra.mxu1 %v13713_v56  ;;  %v13785_v28 = vld [vmem:[#allocation8 + $0x1480] ss:$24 sps:$4 sm:$0xff]   ;;  %v398_v56 = vpop.f32.mrb[36].mxu0 }
 0x238   :  { %1764 = vmatprep.subr.bf16.mxu0 %v13718_v57  ;;  %6399 = vmatprep.subr.bf16.mxu1 %v13721_v58  ;;  %v13790_v57 = vld [vmem:[#allocation8 + $0x314] ss:$24 sps:$4 sm:$0xff]  }
 0x239   :  { %v13793_v58 = vld [vmem:[#allocation8 + $0x14b4] ss:$24 sps:$4 sm:$0xff]  }
 0x23b   :  { %1765 = vmatpush1.bf16.msra.mxu0 %v13716_v59  ;;  %6400 = vmatpush1.bf16.msra.mxu1 %v13719_v60  ;;  %v12812_v59 = vpack.c.bf16 %v509_v50, %v508_v47  ;;  %v453_v60 = vmul.f32 %v15737_v49, %v398_v56  ;;  %v13818_v47 = vld [vmem:[#allocation8 + $0x400] ss:$24 sps:$4 sm:$0xff]  }
 0x23c   :  { %1766 = vmatprep.subr.bf16.mxu0 %v13724_v61  ;;  %6401 = vmatprep.subr.bf16.mxu1 %v13727_v62  ;;  %v13008_v61 = vpop.f32.mrb[37].mxu0  ;;  %v13788_v62 = vld [vmem:[#allocation8 + $0x310] ss:$24 sps:$4 sm:$0xff]  }
 0x23d   :  { %12836 = vst [vmem:[#allocation2 + $0x40] sm:$0xff] %v12812_v59  }
 0x23f   :  { %1767 = vmatpush1.bf16.msra.mxu0 %v13722_v63  ;;  %6402 = vmatpush1.bf16.msra.mxu1 %v13725_v0  ;;  %v401_v63 = vpop.f32.mrb[38].mxu0  ;;  %v13791_v0 = vld [vmem:[#allocation8 + $0x14b0] ss:$24 sps:$4 sm:$0xff]  }
 0x240   :  { %1768 = vmatprep.subr.bf16.mxu0 %v13730_v2  ;;  %6403 = vmatprep.subr.bf16.mxu1 %v13733_v19  ;;  %v485_v2 = vadd.f32 %v15740_v54, %v453_v60  ;;  %v454_v19 = vmul.f32 %v15737_v49, %v401_v63  ;;  %v13827_v63 = vld [vmem:[#allocation8 + $0x15c0] ss:$24 sps:$4 sm:$0xff]  }
 0x243   :  { %1769 = vmatpush1.bf16.msra.mxu0 %v13728_v3  ;;  %6404 = vmatpush1.bf16.msra.mxu1 %v13731_v4  ;;  %v13009_v3 = vpop.f32.mrb[39].mxu0  ;;  %v13796_v4 = vld [vmem:[#allocation8 + $0x344] ss:$24 sps:$4 sm:$0xff]  }
 0x244   :  { %1770 = vmatprep.subr.bf16.mxu0 %v13736_v5  ;;  %6405 = vmatprep.subr.bf16.mxu1 %v13739_v6  ;;  %v13799_v5 = vld [vmem:[#allocation8 + $0x14e4] ss:$24 sps:$4 sm:$0xff]   ;;  %v510_v6 = vmax.f32 %v485_v2, 0.0  ;;  %v13835_v2 = vld [vmem:[#allocation8 + $0x15f4] ss:$24 sps:$4 sm:$0xff]  }
 0x247   :  { %1771 = vmatpush1.bf16.msra.mxu0 %v13734_v7  ;;  %6406 = vmatpush1.bf16.msra.mxu1 %v13737_v8  ;;  %v486_v7 = vadd.f32 %v15740_v54, %v454_v19 }
 0x248   :  { %1797 = vmatprep.subr.bf16.mxu0 %v13742_v9  ;;  %6407 = vmatprep.subr.bf16.mxu1 %v13745_v10  ;;  %v13794_v9 = vld [vmem:[#allocation8 + $0x340] ss:$24 sps:$4 sm:$0xff]  }
 0x249   :  { %v511_v8 = vmax.f32 %v486_v7, 0.0  ;;  %v13797_v10 = vld [vmem:[#allocation8 + $0x14e0] ss:$24 sps:$4 sm:$0xff]   ;;  %v13841_v7 = vld [vmem:[#allocation8 + $0x1624] ss:$24 sps:$4 sm:$0xff]  }
 0x24a   :  { %1789 = vmatmul.mubr.bf16.vlgmr.msra.gmra.mrb[52].mxu0 %v15755_v15 }
 0x24b   :  { %1798 = vmatpush1.bf16.msra.mxu0 %v13740_v11  ;;  %6408 = vmatpush1.bf16.msra.mxu1 %v13743_v12  ;;  %v406_v11 = vpop.f32.mrb[40].mxu0  ;;  %v13802_v12 = vld [vmem:[#allocation8 + $0x374] ss:$24 sps:$4 sm:$0xff]  }
 0x24c   :  { %1799 = vmatprep.subr.bf16.mxu0 %v13748_v13  ;;  %6409 = vmatprep.subr.bf16.mxu1 %v13751_v14  ;;  %v13805_v13 = vld [vmem:[#allocation8 + $0x1504] ss:$24 sps:$4 sm:$0xff]   ;;  %v12817_v14 = vpack.c.bf16 %v511_v8, %v510_v6  ;;  %v13836_v8 = vld [vmem:[#allocation8 + $0x480] ss:$24 sps:$4 sm:$0xff]  }
 0x24d   :  { %1829 = vmatprep.mubr.bf16.mxu0 %v15441_v35  ;;  %v13838_v6 = vld [vmem:[#allocation8 + $0x484] ss:$24 sps:$4 sm:$0xff]  }
 0x24e   :  { %12837 = vst [vmem:[#allocation2 + $0x48] sm:$0xff] %v12817_v14   ;;  %v13850_v14 = vld [vmem:[#allocation8 + $0x4e4] ss:$24 sps:$4 sm:$0xff]  }
 0x24f   :  { %1800 = vmatpush1.bf16.msra.mxu0 %v13746_v16  ;;  %6410 = vmatpush1.bf16.msra.mxu1 %v13749_v17  ;;  %v455_v16 = vmul.f32 %v15737_v49, %v406_v11  ;;  %v13012_v17 = vpop.f32.mrb[41].mxu0  ;;  %v13847_v11 = vld [vmem:[#allocation8 + $0x1654] ss:$24 sps:$4 sm:$0xff]  }
 0x250   :  { %1801 = vmatprep.subr.bf16.mxu0 %v13754_v18  ;;  %6436 = vmatprep.subr.bf16.mxu1 %v13757_v20  ;;  %v409_v18 = vpop.f32.mrb[42].mxu0  ;;  %v13848_v17 = vld [vmem:[#allocation8 + $0x4e0] ss:$24 sps:$4 sm:$0xff]  }
 0x251   :  { %v487_v20 = vadd.f32 %v15740_v54, %v455_v16  ;;  %v13853_v16 = vld [vmem:[#allocation8 + $0x150c] ss:$24 sps:$4 sm:$0xff]  }
 0x252   :  { %6428 = vmatmul.mubr.bf16.vlgmr.msra.gmra.mrb[8].mxu1 %v15751_v52 }
 0x253   :  { %1802 = vmatpush1.bf16.msra.mxu0 %v13752_v21  ;;  %6437 = vmatpush1.bf16.msra.mxu1 %v13755_v22  ;;  %v456_v21 = vmul.f32 %v15737_v49, %v409_v18  ;;  %v13013_v22 = vpop.f32.mrb[43].mxu0  ;;  %v15778_v18 = vld [vmem:[#allocation2 + $0x38] sm:$0xf] }
 0x254   :  { %1803 = vmatprep.subr.bf16.mxu0 %v13760_v23  ;;  %6438 = vmatprep.subr.bf16.mxu1 %v13763_v24  ;;  %v13800_v23 = vld [vmem:[#allocation8 + $0x370] ss:$24 sps:$4 sm:$0xff]   ;;  %v13803_v24 = vld [vmem:[#allocation8 + $0x1500] ss:$24 sps:$4 sm:$0xff]   ;;  %v414_v49 = vpop.f32.mrb[44].mxu0 }
 0x255   :  { %6468 = vmatprep.mubr.bf16.mxu1 %v15441_v35  ;;  %v13854_v22 = vld [vmem:[#allocation8 + $0x510] ss:$24 sps:$4 sm:$0xff]  }
 0x257   :  { %1804 = vmatpush1.bf16.msra.mxu0 %v13758_v25  ;;  %6439 = vmatpush1.bf16.msra.mxu1 %v13761_v26  ;;  %v13808_v25 = vld [vmem:[#allocation8 + $0x3a4] ss:$24 sps:$4 sm:$0xff]   ;;  %v13811_v26 = vld [vmem:[#allocation8 + $0x1534] ss:$24 sps:$4 sm:$0xff]  }
 0x258   :  { %1805 = vmatprep.subr.bf16.mxu0 %v13766_v27  ;;  %6440 = vmatprep.subr.bf16.mxu1 %v13769_v1  ;;  %v512_v27 = vmax.f32 %v487_v20, 0.0  ;;  %v488_v1 = vadd.f32 %v15740_v54, %v456_v21  ;;  %v15237_v54 = vld [vmem:[#allocation7] ss:$0 sm:$0xff]  ;;  %v13851_v20 = vld [vmem:[#allocation8 + $0x1508] ss:$24 sps:$4 sm:$0xff]  }
 0x259   :  { %v13856_v21 = vld [vmem:[#allocation8 + $0x514] ss:$24 sps:$4 sm:$0xff]  }
 0x25b   :  { %1806 = vmatpush1.bf16.msra.mxu0 %v13764_v29  ;;  %6441 = vmatpush1.bf16.msra.mxu1 %v13767_v30  ;;  %v513_v29 = vmax.f32 %v488_v1, 0.0  ;;  %v13806_v30 = vld [vmem:[#allocation8 + $0x3a0] ss:$24 sps:$4 sm:$0xff]   ;;  %v13868_v1 = vld [vmem:[#allocation8 + $0x574] ss:$24 sps:$4 sm:$0xff]  }
 0x25c   :  { %1807 = vmatprep.subr.bf16.mxu0 %v13772_v31  ;;  %6442 = vmatprep.subr.bf16.mxu1 %v13775_v32  ;;  %v13809_v31 = vld [vmem:[#allocation8 + $0x1530] ss:$24 sps:$4 sm:$0xff]   ;;  %v13814_v32 = vld [vmem:[#allocation8 + $0x3d4] ss:$24 sps:$4 sm:$0xff]  }
 0x25f   :  { %1808 = vmatpush1.bf16.msra.mxu0 %v13770_v33  ;;  %6443 = vmatpush1.bf16.msra.mxu1 %v13773_v53  ;;  %v13817_v33 = vld [vmem:[#allocation8 + $0x1564] ss:$24 sps:$4 sm:$0xff]   ;;  %v12822_v53 = vpack.c.bf16 %v513_v29, %v512_v27  ;;  %v13863_v27 = vld [vmem:[#allocation8 + $0x1568] ss:$24 sps:$4 sm:$0xff]  }
 0x260   :  { %1809 = vmatprep.subr.bf16.mxu0 %v13778_v36  ;;  %6444 = vmatprep.subr.bf16.mxu1 %v13781_v37  ;;  %v457_v36 = vmul.f32 %v15236_v34, %v414_v49  ;;  %v13016_v37 = vpop.f32.mrb[45].mxu0  ;;  %v13871_v29 = vld [vmem:[#allocation8 + $0x159c] ss:$24 sps:$4 sm:$0xff]  }
 0x261   :  { %v417_v55 = vpop.f32.mrb[46].mxu0  ;;  %12838 = vst [vmem:[#allocation2 + $0x50] sm:$0xff] %v12822_v53   ;;  %v13874_v49 = vld [vmem:[#allocation8 + $0x5a4] ss:$24 sps:$4 sm:$0xff]   ;;  %v13875_v53 = vld [vmem:[#allocation8 + $0x15c8] ss:$24 sps:$4 sm:$0xff]  }
 0x262   :  { %v458_v38 = vmul.f32 %v15236_v34, %v417_v55  ;;  %v13017_v39 = vpop.f32.mrb[47].mxu0  ;;  %v13878_v37 = vld [vmem:[#allocation8 + $0x5d0] ss:$24 sps:$4 sm:$0xff]  }
 0x263   :  { %1810 = vmatpush1.bf16.msra.mxu0 %v13776_v43  ;;  %6445 = vmatpush1.bf16.msra.mxu1 %v13779_v44  ;;  %v13823_v43 = vld [vmem:[#allocation8 + $0x1594] ss:$24 sps:$4 sm:$0xff]   ;;  %v422_v50 = vpop.f32.mrb[48].mxu0  ;;  %v13881_v55 = vld [vmem:[#allocation8 + $0x15f8] ss:$24 sps:$4 sm:$0xff]  }
 0x264   :  { %1811 = vmatprep.subr.bf16.mxu0 %v13784_v45  ;;  %6446 = vmatprep.subr.bf16.mxu1 %v13787_v46  ;;  %v490_v45 = vadd.f32 %v15237_v54, %v458_v38  ;;  %v13884_v38 = vld [vmem:[#allocation8 + $0x488] ss:$24 sps:$4 sm:$0xff]  }
 0x265   :  { %v13887_v39 = vld [vmem:[#allocation8 + $0x1628] ss:$24 sps:$4 sm:$0xff]  }
 0x266   :  { %v515_v46 = vmax.f32 %v490_v45, 0.0  ;;  %v13898_v45 = vld [vmem:[#allocation8 + $0x4ec] ss:$24 sps:$4 sm:$0xff]  }
 0x267   :  { %1812 = vmatpush1.bf16.msra.mxu0 %v13782_v51  ;;  %6447 = vmatpush1.bf16.msra.mxu1 %v13785_v28  ;;  %v13826_v51 = vld [vmem:[#allocation8 + $0x434] ss:$24 sps:$4 sm:$0xff]   ;;  %v13829_v28 = vld [vmem:[#allocation8 + $0x15c4] ss:$24 sps:$4 sm:$0xff]  }
 0x268   :  { %1838 = vmatprep.subr.bf16.mxu0 %v13790_v57  ;;  %6448 = vmatprep.subr.bf16.mxu1 %v13793_v58  ;;  %v459_v57 = vmul.f32 %v15236_v34, %v422_v50  ;;  %v13020_v58 = vpop.f32.mrb[49].mxu0  ;;  %v13880_v34 = vld [vmem:[#allocation8 + $0x5d4] ss:$24 sps:$4 sm:$0xff]  }
 0x269   :  { %v425_v59 = vpop.f32.mrb[50].mxu0  ;;  %v13904_v50 = vld [vmem:[#allocation8 + $0x51c] ss:$24 sps:$4 sm:$0xff]  }
 0x26a   :  { %1830 = vmatmul.mubr.bf16.vlgmr.msra.gmra.mrb[56].mxu0 %v15755_v15  ;;  %v491_v60 = vadd.f32 %v15237_v54, %v459_v57  ;;  %v13021_v61 = vpop.f32.mrb[51].mxu0  ;;  %v13910_v57 = vld [vmem:[#allocation8 + $0x54c] ss:$24 sps:$4 sm:$0xff]   ;;  %v13908_v59 = vld [vmem:[#allocation8 + $0x548] ss:$24 sps:$4 sm:$0xff]  }
 0x26b   :  { %1839 = vmatpush1.bf16.msra.mxu0 %v13788_v62  ;;  %6449 = vmatpush1.bf16.msra.mxu1 %v13791_v0  ;;  %v13824_v62 = vld [vmem:[#allocation8 + $0x430] ss:$24 sps:$4 sm:$0xff]   ;;  %v13832_v0 = vld [vmem:[#allocation8 + $0x464] ss:$24 sps:$4 sm:$0xff]   ;;  %v13913_v58 = vld [vmem:[#allocation8 + $0x1574] ss:$24 sps:$4 sm:$0xff]  }
 0x26c   :  { %1840 = vmatprep.subr.bf16.mxu0 %v13796_v4  ;;  %6450 = vmatprep.subr.bf16.mxu1 %v13799_v5  ;;  %v516_v19 = vmax.f32 %v491_v60, 0.0  ;;  %v13830_v4 = vld [vmem:[#allocation8 + $0x460] ss:$24 sps:$4 sm:$0xff]   ;;  %v13833_v5 = vld [vmem:[#allocation8 + $0x15f0] ss:$24 sps:$4 sm:$0xff]  }
 0x26d   :  { %1870 = vmatprep.mubr.bf16.mxu0 %v15441_v35  ;;  %v13911_v60 = vld [vmem:[#allocation8 + $0x1570] ss:$24 sps:$4 sm:$0xff]   ;;  %v13916_v61 = vld [vmem:[#allocation8 + $0x57c] ss:$24 sps:$4 sm:$0xff]  }
 0x26e   :  { %v12768_v3 = vpack.c.bf16 %v516_v19, %v516_v19  ;;  %v13925_v19 = vld [vmem:[#allocation8 + $0x15d4] ss:$24 sps:$4 sm:$0xff]  }
 0x26f   :  { %1841 = vmatpush1.bf16.msra.mxu0 %v13794_v9  ;;  %6451 = vmatpush1.bf16.msra.mxu1 %v13797_v10  ;;  %v13839_v9 = vld [vmem:[#allocation8 + $0x1620] ss:$24 sps:$4 sm:$0xff]   ;;  %v13844_v10 = vld [vmem:[#allocation8 + $0x4b4] ss:$24 sps:$4 sm:$0xff]  }
 0x270   :  { %1842 = vmatprep.subr.bf16.mxu0 %v13802_v12  ;;  %6772 = vmatprep.subr.bf16.mxu1 %v13805_v13  ;;  %642 = vst [vmem:[#allocation2 + $0x60] sm:$0xf] %v12768_v3  ;;  %v13842_v12 = vld [vmem:[#allocation8 + $0x4b0] ss:$24 sps:$4 sm:$0xff]  }
 0x271   :  { %v13845_v13 = vld [vmem:[#allocation8 + $0x1650] ss:$24 sps:$4 sm:$0xff]  }
 0x272   :  { %6469 = vmatmul.mubr.bf16.vlgmr.msra.gmra.mrb[0].mxu1 %v15751_v52  ;;  %v489_v52 = vadd.f32 %v15237_v54, %v457_v36  ;;  %v13883_v36 = vld [vmem:[#allocation8 + $0x15fc] ss:$24 sps:$4 sm:$0xff]   ;;  %v13886_v54 = vld [vmem:[#allocation8 + $0x48c] ss:$24 sps:$4 sm:$0xff]   ;;  %v13920_v3 = vld [vmem:[#allocation8 + $0x5a8] ss:$24 sps:$4 sm:$0xff]  }
 0x273   :  { %1843 = vmatpush1.bf16.msra.mxu0 %v13800_v23  ;;  %6773 = vmatpush1.bf16.msra.mxu1 %v13803_v24  ;;  %v13857_v23 = vld [vmem:[#allocation8 + $0x1538] ss:$24 sps:$4 sm:$0xff]   ;;  %v13862_v24 = vld [vmem:[#allocation8 + $0x544] ss:$24 sps:$4 sm:$0xff]  }
 0x274   :  { %1844 = vmatprep.subr.bf16.mxu0 %v13808_v25  ;;  %6774 = vmatprep.subr.bf16.mxu1 %v13811_v26  ;;  %v514_v44 = vmax.f32 %v489_v52, 0.0  ;;  %v13865_v25 = vld [vmem:[#allocation8 + $0x156c] ss:$24 sps:$4 sm:$0xff]   ;;  %v13860_v26 = vld [vmem:[#allocation8 + $0x540] ss:$24 sps:$4 sm:$0xff]  }
 0x275   :  { %6804 = vmatprep.mubr.bf16.mxu1 %v15441_v35  ;;  %v13889_v52 = vld [vmem:[#allocation8 + $0x162c] ss:$24 sps:$4 sm:$0xff]  }
 0x276   :  { %v12827_v56 = vpack.c.bf16 %v515_v46, %v514_v44  ;;  %v13893_v44 = vld [vmem:[#allocation8 + $0x1658] ss:$24 sps:$4 sm:$0xff]   ;;  %v13901_v46 = vld [vmem:[#allocation8 + $0x1514] ss:$24 sps:$4 sm:$0xff]  }
 0x277   :  { %1845 = vmatpush1.bf16.msra.mxu0 %v13806_v30  ;;  %6775 = vmatpush1.bf16.msra.mxu1 %v13809_v31  ;;  %v13866_v30 = vld [vmem:[#allocation8 + $0x570] ss:$24 sps:$4 sm:$0xff]  }
 0x278   :  { %1846 = vmatprep.subr.bf16.mxu0 %v13814_v32  ;;  %6776 = vmatprep.subr.bf16.mxu1 %v13817_v33  ;;  %12839 = vst [vmem:[#allocation2 + $0x58] sm:$0xff] %v12827_v56   ;;  %v13869_v31 = vld [vmem:[#allocation8 + $0x1598] ss:$24 sps:$4 sm:$0xff]   ;;  %v13877_v32 = vld [vmem:[#allocation8 + $0x15cc] ss:$24 sps:$4 sm:$0xff]  }
 0x279   :  { %v13872_v33 = vld [vmem:[#allocation8 + $0x5a0] ss:$24 sps:$4 sm:$0xff]  }
 0x27a   :  { %v13905_v56 = vld [vmem:[#allocation8 + $0x1540] ss:$24 sps:$4 sm:$0xff]  }
 0x27b   :  { %1847 = vmatpush1.bf16.msra.mxu0 %v13812_v40  ;;  %6777 = vmatpush1.bf16.msra.mxu1 %v13815_v41  ;;  %v13892_v40 = vld [vmem:[#allocation8 + $0x4bc] ss:$24 sps:$4 sm:$0xff]  }
 0x27c   :  { %1848 = vmatprep.subr.bf16.mxu0 %v13820_v42  ;;  %6778 = vmatprep.subr.bf16.mxu1 %v13823_v43  ;;  %v13895_v41 = vld [vmem:[#allocation8 + $0x165c] ss:$24 sps:$4 sm:$0xff]   ;;  %v15783_v42 = vld [vmem:[#allocation2 + $0xc] sm:$0xf]  ;;  %v13890_v43 = vld [vmem:[#allocation8 + $0x4b8] ss:$24 sps:$4 sm:$0xff]  }
 0x27f   :  { %1849 = vmatpush1.bf16.msra.mxu0 %v13818_v47  ;;  %6779 = vmatpush1.bf16.msra.mxu1 %v13821_v48  ;;  %v13896_v47 = vld [vmem:[#allocation8 + $0x4e8] ss:$24 sps:$4 sm:$0xff]  }
 0x280   :  { %1850 = vmatprep.subr.bf16.mxu0 %v13826_v51  ;;  %6780 = vmatprep.subr.bf16.mxu1 %v13829_v28  ;;  %v13899_v48 = vld [vmem:[#allocation8 + $0x1510] ss:$24 sps:$4 sm:$0xff]   ;;  %v13907_v51 = vld [vmem:[#allocation8 + $0x1544] ss:$24 sps:$4 sm:$0xff]  }
 0x281   :  { %v13902_v28 = vld [vmem:[#allocation8 + $0x518] ss:$24 sps:$4 sm:$0xff]  }
 0x283   :  { %1851 = vmatpush1.bf16.msra.mxu0 %v13824_v62  ;;  %6781 = vmatpush1.bf16.msra.mxu1 %v13827_v63  ;;  %v13919_v62 = vld [vmem:[#allocation8 + $0x15a4] ss:$24 sps:$4 sm:$0xff]   ;;  %v13914_v63 = vld [vmem:[#allocation8 + $0x578] ss:$24 sps:$4 sm:$0xff]  }
 0x284   :  { %1852 = vmatprep.subr.bf16.mxu0 %v13832_v0  ;;  %6782 = vmatprep.subr.bf16.mxu1 %v13835_v2  ;;  %v13917_v0 = vld [vmem:[#allocation8 + $0x15a0] ss:$24 sps:$4 sm:$0xff]   ;;  %v13922_v2 = vld [vmem:[#allocation8 + $0x5ac] ss:$24 sps:$4 sm:$0xff]  }
 0x287   :  { %1853 = vmatpush1.bf16.msra.mxu0 %v13830_v4  ;;  %6783 = vmatpush1.bf16.msra.mxu1 %v13833_v5  ;;  %v13923_v4 = vld [vmem:[#allocation8 + $0x15d0] ss:$24 sps:$4 sm:$0xff]   ;;  %v13928_v5 = vld [vmem:[#allocation8 + $0x5dc] ss:$24 sps:$4 sm:$0xff]  }
 0x288   :  { %2174 = vmatprep.subr.bf16.mxu0 %v13838_v6  ;;  %6784 = vmatprep.subr.bf16.mxu1 %v13841_v7  ;;  %v13931_v6 = vld [vmem:[#allocation8 + $0x1604] ss:$24 sps:$4 sm:$0xff]   ;;  %v13926_v7 = vld [vmem:[#allocation8 + $0x5d8] ss:$24 sps:$4 sm:$0xff]  }
 0x28a   :  { %1871 = vmatmul.mubr.bf16.vlgmr.msra.gmra.mrb[60].mxu0 %v15755_v15  ;;  %v13859_v15 = vld [vmem:[#allocation8 + $0x153c] ss:$24 sps:$4 sm:$0xff]  }
 0x28b   :  { %2175 = vmatpush1.bf16.msra.mxu0 %v13836_v8  ;;  %6785 = vmatpush1.bf16.msra.mxu1 %v13839_v9  ;;  %v13929_v8 = vld [vmem:[#allocation8 + $0x1600] ss:$24 sps:$4 sm:$0xff]   ;;  %v13934_v9 = vld [vmem:[#allocation8 + $0x494] ss:$24 sps:$4 sm:$0xff]  }
 0x28c   :  { %2176 = vmatprep.subr.bf16.mxu0 %v13844_v10  ;;  %6786 = vmatprep.subr.bf16.mxu1 %v13847_v11  ;;  %v13937_v10 = vld [vmem:[#allocation8 + $0x1634] ss:$24 sps:$4 sm:$0xff]   ;;  %v13932_v11 = vld [vmem:[#allocation8 + $0x490] ss:$24 sps:$4 sm:$0xff]  }
 0x28d   :  { %2206 = vmatprep.mubr.bf16.mxu0 %v15441_v35 }
 0x28f   :  { %2177 = vmatpush1.bf16.msra.mxu0 %v13842_v12  ;;  %6787 = vmatpush1.bf16.msra.mxu1 %v13845_v13  ;;  %v13935_v12 = vld [vmem:[#allocation8 + $0x1630] ss:$24 sps:$4 sm:$0xff]   ;;  %v13940_v13 = vld [vmem:[#allocation8 + $0x4c4] ss:$24 sps:$4 sm:$0xff]  }
 0x290   :  { %2178 = vmatprep.subr.bf16.mxu0 %v13850_v14  ;;  %6813 = vmatprep.subr.bf16.mxu1 %v13853_v16  ;;  %v13943_v14 = vld [vmem:[#allocation8 + $0x1664] ss:$24 sps:$4 sm:$0xff]   ;;  %v13938_v16 = vld [vmem:[#allocation8 + $0x4c0] ss:$24 sps:$4 sm:$0xff]  }
 0x292   :  { %6805 = vmatmul.mubr.bf16.vlgmr.msra.gmra.mrb[4].mxu1 %v15778_v18 }
 0x293   :  { %2179 = vmatpush1.bf16.msra.mxu0 %v13848_v17  ;;  %6814 = vmatpush1.bf16.msra.mxu1 %v13851_v20  ;;  %v13941_v17 = vld [vmem:[#allocation8 + $0x1660] ss:$24 sps:$4 sm:$0xff]   ;;  %v13946_v20 = vld [vmem:[#allocation8 + $0x4f4] ss:$24 sps:$4 sm:$0xff]  }
 0x294   :  { %2180 = vmatprep.subr.bf16.mxu0 %v13856_v21  ;;  %6815 = vmatprep.subr.bf16.mxu1 %v13859_v15  ;;  %v13949_v21 = vld [vmem:[#allocation8 + $0x1684] ss:$24 sps:$4 sm:$0xff]   ;;  %v13944_v15 = vld [vmem:[#allocation8 + $0x4f0] ss:$24 sps:$4 sm:$0xff]  }
 0x295   :  { %6845 = vmatprep.mubr.bf16.mxu1 %v15441_v35 }
 0x297   :  { %2181 = vmatpush1.bf16.msra.mxu0 %v13854_v22  ;;  %6816 = vmatpush1.bf16.msra.mxu1 %v13857_v23  ;;  %v13947_v22 = vld [vmem:[#allocation8 + $0x1680] ss:$24 sps:$4 sm:$0xff]   ;;  %v13952_v23 = vld [vmem:[#allocation8 + $0x524] ss:$24 sps:$4 sm:$0xff]  }
 0x298   :  { %2182 = vmatprep.subr.bf16.mxu0 %v13862_v24  ;;  %6817 = vmatprep.subr.bf16.mxu1 %v13865_v25  ;;  %v13955_v24 = vld [vmem:[#allocation8 + $0x16b4] ss:$24 sps:$4 sm:$0xff]   ;;  %v13950_v25 = vld [vmem:[#allocation8 + $0x520] ss:$24 sps:$4 sm:$0xff]  }
 0x29b   :  { %2183 = vmatpush1.bf16.msra.mxu0 %v13860_v26  ;;  %6818 = vmatpush1.bf16.msra.mxu1 %v13863_v27  ;;  %v13953_v26 = vld [vmem:[#allocation8 + $0x16b0] ss:$24 sps:$4 sm:$0xff]   ;;  %v13958_v27 = vld [vmem:[#allocation8 + $0x554] ss:$24 sps:$4 sm:$0xff]  }
 0x29c   :  { %2184 = vmatprep.subr.bf16.mxu0 %v13868_v1  ;;  %6819 = vmatprep.subr.bf16.mxu1 %v13871_v29  ;;  %v13961_v1 = vld [vmem:[#allocation8 + $0x16e4] ss:$24 sps:$4 sm:$0xff]   ;;  %v13956_v29 = vld [vmem:[#allocation8 + $0x550] ss:$24 sps:$4 sm:$0xff]  }
 0x29f   :  { %2185 = vmatpush1.bf16.msra.mxu0 %v13866_v30  ;;  %6820 = vmatpush1.bf16.msra.mxu1 %v13869_v31  ;;  %v13959_v30 = vld [vmem:[#allocation8 + $0x16e0] ss:$24 sps:$4 sm:$0xff]   ;;  %v13964_v31 = vld [vmem:[#allocation8 + $0x584] ss:$24 sps:$4 sm:$0xff]  }
 0x2a0   :  { %2186 = vmatprep.subr.bf16.mxu0 %v13874_v49  ;;  %6821 = vmatprep.subr.bf16.mxu1 %v13877_v32  ;;  %v13967_v49 = vld [vmem:[#allocation8 + $0x1714] ss:$24 sps:$4 sm:$0xff]   ;;  %v13965_v32 = vld [vmem:[#allocation8 + $0x1710] ss:$24 sps:$4 sm:$0xff]  }
 0x2a3   :  { %2187 = vmatpush1.bf16.msra.mxu0 %v13872_v33  ;;  %6822 = vmatpush1.bf16.msra.mxu1 %v13875_v53  ;;  %v13970_v33 = vld [vmem:[#allocation8 + $0x5b4] ss:$24 sps:$4 sm:$0xff]   ;;  %v13973_v53 = vld [vmem:[#allocation8 + $0x1744] ss:$24 sps:$4 sm:$0xff]  }
 0x2a4   :  { %2188 = vmatprep.subr.bf16.mxu0 %v13880_v34  ;;  %6823 = vmatprep.subr.bf16.mxu1 %v13883_v36  ;;  %v13968_v34 = vld [vmem:[#allocation8 + $0x5b0] ss:$24 sps:$4 sm:$0xff]   ;;  %v13971_v36 = vld [vmem:[#allocation8 + $0x1740] ss:$24 sps:$4 sm:$0xff]  }
 0x2a7   :  { %2189 = vmatpush1.bf16.msra.mxu0 %v13878_v37  ;;  %6824 = vmatpush1.bf16.msra.mxu1 %v13881_v55  ;;  %v13976_v37 = vld [vmem:[#allocation8 + $0x5e4] ss:$24 sps:$4 sm:$0xff]   ;;  %v13979_v55 = vld [vmem:[#allocation8 + $0x1774] ss:$24 sps:$4 sm:$0xff]  }
 0x2a8   :  { %2215 = vmatprep.subr.bf16.mxu0 %v13886_v54  ;;  %6825 = vmatprep.subr.bf16.mxu1 %v13889_v52  ;;  %v13974_v54 = vld [vmem:[#allocation8 + $0x5e0] ss:$24 sps:$4 sm:$0xff]   ;;  %v13977_v52 = vld [vmem:[#allocation8 + $0x1770] ss:$24 sps:$4 sm:$0xff]  }
 0x2aa   :  { %2207 = vmatmul.mubr.bf16.vlgmr.msra.gmra.mrb[52].mxu0 %v15783_v42 }
 0x2ab   :  { %2216 = vmatpush1.bf16.msra.mxu0 %v13884_v38  ;;  %6826 = vmatpush1.bf16.msra.mxu1 %v13887_v39  ;;  %v13982_v38 = vld [vmem:[#allocation8 + $0x604] ss:$24 sps:$4 sm:$0xff]  }
 0x2ac   :  { %2217 = vmatprep.subr.bf16.mxu0 %v13892_v40  ;;  %6827 = vmatprep.subr.bf16.mxu1 %v13895_v41  ;;  %v13985_v39 = vld [vmem:[#allocation8 + $0x17a4] ss:$24 sps:$4 sm:$0xff]   ;;  %v13980_v40 = vld [vmem:[#allocation8 + $0x600] ss:$24 sps:$4 sm:$0xff]  }
 0x2ad   :  { %2247 = vmatprep.mubr.bf16.mxu0 %v15441_v35  ;;  %v13983_v41 = vld [vmem:[#allocation8 + $0x17a0] ss:$24 sps:$4 sm:$0xff]  }
 0x2af   :  { %2218 = vmatpush1.bf16.msra.mxu0 %v13890_v43  ;;  %6828 = vmatpush1.bf16.msra.mxu1 %v13893_v44  ;;  %v13988_v43 = vld [vmem:[#allocation8 + $0x634] ss:$24 sps:$4 sm:$0xff]  }
 0x2b0   :  { %2219 = vmatprep.subr.bf16.mxu0 %v13898_v45  ;;  %6854 = vmatprep.subr.bf16.mxu1 %v13901_v46  ;;  %v13991_v44 = vld [vmem:[#allocation8 + $0x17d4] ss:$24 sps:$4 sm:$0xff]   ;;  %v13986_v45 = vld [vmem:[#allocation8 + $0x630] ss:$24 sps:$4 sm:$0xff]  }
 0x2b1   :  { %v13989_v46 = vld [vmem:[#allocation8 + $0x17d0] ss:$24 sps:$4 sm:$0xff]  }
 0x2b2   :  { %6846 = vmatmul.mubr.bf16.vlgmr.msra.gmra.mrb[8].mxu1 %v15778_v18 }
 0x2b3   :  { %2220 = vmatpush1.bf16.msra.mxu0 %v13896_v47  ;;  %6855 = vmatpush1.bf16.msra.mxu1 %v13899_v48  ;;  %v13994_v47 = vld [vmem:[#allocation8 + $0x664] ss:$24 sps:$4 sm:$0xff]  }
 0x2b4   :  { %2221 = vmatprep.subr.bf16.mxu0 %v13904_v50  ;;  %6856 = vmatprep.subr.bf16.mxu1 %v13907_v51  ;;  %v13997_v48 = vld [vmem:[#allocation8 + $0x168c] ss:$24 sps:$4 sm:$0xff]   ;;  %v13992_v50 = vld [vmem:[#allocation8 + $0x660] ss:$24 sps:$4 sm:$0xff]  }
 0x2b5   :  { %6886 = vmatprep.mubr.bf16.mxu1 %v15441_v35  ;;  %v13995_v51 = vld [vmem:[#allocation8 + $0x1688] ss:$24 sps:$4 sm:$0xff]  }
 0x2b7   :  { %2222 = vmatpush1.bf16.msra.mxu0 %v13902_v28  ;;  %6857 = vmatpush1.bf16.msra.mxu1 %v13905_v56  ;;  %v14000_v28 = vld [vmem:[#allocation8 + $0x694] ss:$24 sps:$4 sm:$0xff]  }
 0x2b8   :  { %2223 = vmatprep.subr.bf16.mxu0 %v13910_v57  ;;  %6858 = vmatprep.subr.bf16.mxu1 %v13913_v58  ;;  %v14003_v56 = vld [vmem:[#allocation8 + $0x16bc] ss:$24 sps:$4 sm:$0xff]   ;;  %v14001_v58 = vld [vmem:[#allocation8 + $0x16b8] ss:$24 sps:$4 sm:$0xff]  }
 0x2b9   :  { %v15795_v57 = vld [vmem:[#allocation2 + $0x3c] sm:$0xf] }
 0x2bb   :  { %2224 = vmatpush1.bf16.msra.mxu0 %v13908_v59  ;;  %6859 = vmatpush1.bf16.msra.mxu1 %v13911_v60  ;;  %v14006_v59 = vld [vmem:[#allocation8 + $0x6c4] ss:$24 sps:$4 sm:$0xff]  }
 0x2bc   :  { %2225 = vmatprep.subr.bf16.mxu0 %v13916_v61  ;;  %6860 = vmatprep.subr.bf16.mxu1 %v13919_v62  ;;  %v14009_v60 = vld [vmem:[#allocation8 + $0x16ec] ss:$24 sps:$4 sm:$0xff]   ;;  %v14004_v61 = vld [vmem:[#allocation8 + $0x6c0] ss:$24 sps:$4 sm:$0xff]  }
 0x2bd   :  { %v14007_v62 = vld [vmem:[#allocation8 + $0x16e8] ss:$24 sps:$4 sm:$0xff]  }
 0x2bf   :  { %2226 = vmatpush1.bf16.msra.mxu0 %v13914_v63  ;;  %6861 = vmatpush1.bf16.msra.mxu1 %v13917_v0  ;;  %v14012_v63 = vld [vmem:[#allocation8 + $0x6f4] ss:$24 sps:$4 sm:$0xff]  }
 0x2c0   :  { %2227 = vmatprep.subr.bf16.mxu0 %v13922_v2  ;;  %6862 = vmatprep.subr.bf16.mxu1 %v13925_v19  ;;  %v14015_v0 = vld [vmem:[#allocation8 + $0x171c] ss:$24 sps:$4 sm:$0xff]   ;;  %v14010_v2 = vld [vmem:[#allocation8 + $0x6f0] ss:$24 sps:$4 sm:$0xff]  }
 0x2c1   :  { %v14013_v19 = vld [vmem:[#allocation8 + $0x1718] ss:$24 sps:$4 sm:$0xff]  }
 0x2c3   :  { %2228 = vmatpush1.bf16.msra.mxu0 %v13920_v3  ;;  %6863 = vmatpush1.bf16.msra.mxu1 %v13923_v4  ;;  %v14018_v3 = vld [vmem:[#allocation8 + $0x724] ss:$24 sps:$4 sm:$0xff]  }
 0x2c4   :  { %2229 = vmatprep.subr.bf16.mxu0 %v13928_v5  ;;  %6864 = vmatprep.subr.bf16.mxu1 %v13931_v6  ;;  %v14021_v4 = vld [vmem:[#allocation8 + $0x174c] ss:$24 sps:$4 sm:$0xff]   ;;  %v14016_v5 = vld [vmem:[#allocation8 + $0x720] ss:$24 sps:$4 sm:$0xff]  }
 0x2c5   :  { %v14019_v6 = vld [vmem:[#allocation8 + $0x1748] ss:$24 sps:$4 sm:$0xff]  }
 0x2c7   :  { %2230 = vmatpush1.bf16.msra.mxu0 %v13926_v7  ;;  %6865 = vmatpush1.bf16.msra.mxu1 %v13929_v8  ;;  %v14024_v7 = vld [vmem:[#allocation8 + $0x754] ss:$24 sps:$4 sm:$0xff]  }
 0x2c8   :  { %2256 = vmatprep.subr.bf16.mxu0 %v13934_v9  ;;  %6866 = vmatprep.subr.bf16.mxu1 %v13937_v10  ;;  %v14027_v8 = vld [vmem:[#allocation8 + $0x177c] ss:$24 sps:$4 sm:$0xff]   ;;  %v14022_v9 = vld [vmem:[#allocation8 + $0x750] ss:$24 sps:$4 sm:$0xff]  }
 0x2c9   :  { %v14025_v10 = vld [vmem:[#allocation8 + $0x1778] ss:$24 sps:$4 sm:$0xff]  }
 0x2ca   :  { %2248 = vmatmul.mubr.bf16.vlgmr.msra.gmra.mrb[56].mxu0 %v15783_v42 }
 0x2cb   :  { %2257 = vmatpush1.bf16.msra.mxu0 %v13932_v11  ;;  %6867 = vmatpush1.bf16.msra.mxu1 %v13935_v12  ;;  %v14030_v11 = vld [vmem:[#allocation8 + $0x60c] ss:$24 sps:$4 sm:$0xff]  }
 0x2cc   :  { %2258 = vmatprep.subr.bf16.mxu0 %v13940_v13  ;;  %6868 = vmatprep.subr.bf16.mxu1 %v13943_v14  ;;  %v14033_v12 = vld [vmem:[#allocation8 + $0x17ac] ss:$24 sps:$4 sm:$0xff]   ;;  %v14028_v13 = vld [vmem:[#allocation8 + $0x608] ss:$24 sps:$4 sm:$0xff]  }
 0x2cd   :  { %2288 = vmatprep.mubr.bf16.mxu0 %v15441_v35  ;;  %v14031_v14 = vld [vmem:[#allocation8 + $0x17a8] ss:$24 sps:$4 sm:$0xff]  }
 0x2cf   :  { %2259 = vmatpush1.bf16.msra.mxu0 %v13938_v16  ;;  %6869 = vmatpush1.bf16.msra.mxu1 %v13941_v17  ;;  %v14036_v16 = vld [vmem:[#allocation8 + $0x63c] ss:$24 sps:$4 sm:$0xff]  }
 0x2d0   :  { %2260 = vmatprep.subr.bf16.mxu0 %v13946_v20  ;;  %7190 = vmatprep.subr.bf16.mxu1 %v13949_v21  ;;  %v14039_v17 = vld [vmem:[#allocation8 + $0x17dc] ss:$24 sps:$4 sm:$0xff]   ;;  %v15799_v20 = vld [vmem:[#allocation2 + $0x10] sm:$0xf]  ;;  %v14034_v21 = vld [vmem:[#allocation8 + $0x638] ss:$24 sps:$4 sm:$0xff]  }
 0x2d2   :  { %6887 = vmatmul.mubr.bf16.vlgmr.msra.gmra.mrb[0].mxu1 %v15778_v18  ;;  %v13962_v18 = vld [vmem:[#allocation8 + $0x580] ss:$24 sps:$4 sm:$0xff]  }
 0x2d3   :  { %2261 = vmatpush1.bf16.msra.mxu0 %v13944_v15  ;;  %7191 = vmatpush1.bf16.msra.mxu1 %v13947_v22  ;;  %v14037_v15 = vld [vmem:[#allocation8 + $0x17d8] ss:$24 sps:$4 sm:$0xff]   ;;  %v14042_v22 = vld [vmem:[#allocation8 + $0x66c] ss:$24 sps:$4 sm:$0xff]  }
 0x2d4   :  { %2262 = vmatprep.subr.bf16.mxu0 %v13952_v23  ;;  %7192 = vmatprep.subr.bf16.mxu1 %v13955_v24  ;;  %v14045_v23 = vld [vmem:[#allocation8 + $0x1694] ss:$24 sps:$4 sm:$0xff]   ;;  %v14040_v24 = vld [vmem:[#allocation8 + $0x668] ss:$24 sps:$4 sm:$0xff]  }
 0x2d5   :  { %7222 = vmatprep.mubr.bf16.mxu1 %v15441_v35 }
 0x2d7   :  { %2263 = vmatpush1.bf16.msra.mxu0 %v13950_v25  ;;  %7193 = vmatpush1.bf16.msra.mxu1 %v13953_v26  ;;  %v14043_v25 = vld [vmem:[#allocation8 + $0x1690] ss:$24 sps:$4 sm:$0xff]   ;;  %v14048_v26 = vld [vmem:[#allocation8 + $0x69c] ss:$24 sps:$4 sm:$0xff]  }
 0x2d8   :  { %2264 = vmatprep.subr.bf16.mxu0 %v13958_v27  ;;  %7194 = vmatprep.subr.bf16.mxu1 %v13961_v1  ;;  %v14051_v27 = vld [vmem:[#allocation8 + $0x16c4] ss:$24 sps:$4 sm:$0xff]   ;;  %v14046_v1 = vld [vmem:[#allocation8 + $0x698] ss:$24 sps:$4 sm:$0xff]  }
 0x2db   :  { %2265 = vmatpush1.bf16.msra.mxu0 %v13956_v29  ;;  %7195 = vmatpush1.bf16.msra.mxu1 %v13959_v30  ;;  %v14049_v29 = vld [vmem:[#allocation8 + $0x16c0] ss:$24 sps:$4 sm:$0xff]   ;;  %v14054_v30 = vld [vmem:[#allocation8 + $0x6cc] ss:$24 sps:$4 sm:$0xff]  }
 0x2dc   :  { %2266 = vmatprep.subr.bf16.mxu0 %v13964_v31  ;;  %7196 = vmatprep.subr.bf16.mxu1 %v13967_v49  ;;  %v14057_v31 = vld [vmem:[#allocation8 + $0x16f4] ss:$24 sps:$4 sm:$0xff]   ;;  %v14052_v49 = vld [vmem:[#allocation8 + $0x6c8] ss:$24 sps:$4 sm:$0xff]  }
 0x2df   :  { %2267 = vmatpush1.bf16.msra.mxu0 %v13962_v18  ;;  %7197 = vmatpush1.bf16.msra.mxu1 %v13965_v32  ;;  %v14055_v18 = vld [vmem:[#allocation8 + $0x16f0] ss:$24 sps:$4 sm:$0xff]   ;;  %v14060_v32 = vld [vmem:[#allocation8 + $0x6fc] ss:$24 sps:$4 sm:$0xff]  }
 0x2e0   :  { %2268 = vmatprep.subr.bf16.mxu0 %v13970_v33  ;;  %7198 = vmatprep.subr.bf16.mxu1 %v13973_v53  ;;  %v14063_v33 = vld [vmem:[#allocation8 + $0x1724] ss:$24 sps:$4 sm:$0xff]   ;;  %v14058_v53 = vld [vmem:[#allocation8 + $0x6f8] ss:$24 sps:$4 sm:$0xff]  }
 0x2e3   :  { %2269 = vmatpush1.bf16.msra.mxu0 %v13968_v34  ;;  %7199 = vmatpush1.bf16.msra.mxu1 %v13971_v36  ;;  %v14061_v34 = vld [vmem:[#allocation8 + $0x1720] ss:$24 sps:$4 sm:$0xff]   ;;  %v14066_v36 = vld [vmem:[#allocation8 + $0x72c] ss:$24 sps:$4 sm:$0xff]  }
 0x2e4   :  { %2270 = vmatprep.subr.bf16.mxu0 %v13976_v37  ;;  %7200 = vmatprep.subr.bf16.mxu1 %v13979_v55  ;;  %v14069_v37 = vld [vmem:[#allocation8 + $0x1754] ss:$24 sps:$4 sm:$0xff]   ;;  %v14064_v55 = vld [vmem:[#allocation8 + $0x728] ss:$24 sps:$4 sm:$0xff]  }
 0x2e7   :  { %2271 = vmatpush1.bf16.msra.mxu0 %v13974_v54  ;;  %7201 = vmatpush1.bf16.msra.mxu1 %v13977_v52  ;;  %v14067_v54 = vld [vmem:[#allocation8 + $0x1750] ss:$24 sps:$4 sm:$0xff]   ;;  %v14072_v52 = vld [vmem:[#allocation8 + $0x75c] ss:$24 sps:$4 sm:$0xff]  }
 0x2e8   :  { %2592 = vmatprep.subr.bf16.mxu0 %v13982_v38  ;;  %7202 = vmatprep.subr.bf16.mxu1 %v13985_v39  ;;  %v14075_v38 = vld [vmem:[#allocation8 + $0x1784] ss:$24 sps:$4 sm:$0xff]   ;;  %v14070_v39 = vld [vmem:[#allocation8 + $0x758] ss:$24 sps:$4 sm:$0xff]  }
 0x2ea   :  { %2289 = vmatmul.mubr.bf16.vlgmr.msra.gmra.mrb[60].mxu0 %v15783_v42  ;;  %v13998_v42 = vld [vmem:[#allocation8 + $0x690] ss:$24 sps:$4 sm:$0xff]  }
 0x2eb   :  { %2593 = vmatpush1.bf16.msra.mxu0 %v13980_v40  ;;  %7203 = vmatpush1.bf16.msra.mxu1 %v13983_v41  ;;  %v14073_v40 = vld [vmem:[#allocation8 + $0x1780] ss:$24 sps:$4 sm:$0xff]   ;;  %v14078_v41 = vld [vmem:[#allocation8 + $0x614] ss:$24 sps:$4 sm:$0xff]  }
 0x2ec   :  { %2594 = vmatprep.subr.bf16.mxu0 %v13988_v43  ;;  %7204 = vmatprep.subr.bf16.mxu1 %v13991_v44  ;;  %v14081_v43 = vld [vmem:[#allocation8 + $0x17b4] ss:$24 sps:$4 sm:$0xff]   ;;  %v14076_v44 = vld [vmem:[#allocation8 + $0x610] ss:$24 sps:$4 sm:$0xff]  }
 0x2ed   :  { %2624 = vmatprep.mubr.bf16.mxu0 %v15441_v35 }
 0x2ef   :  { %2595 = vmatpush1.bf16.msra.mxu0 %v13986_v45  ;;  %7205 = vmatpush1.bf16.msra.mxu1 %v13989_v46  ;;  %v14079_v45 = vld [vmem:[#allocation8 + $0x17b0] ss:$24 sps:$4 sm:$0xff]   ;;  %v14084_v46 = vld [vmem:[#allocation8 + $0x644] ss:$24 sps:$4 sm:$0xff]  }
 0x2f0   :  { %2596 = vmatprep.subr.bf16.mxu0 %v13994_v47  ;;  %7231 = vmatprep.subr.bf16.mxu1 %v13997_v48  ;;  %v14087_v47 = vld [vmem:[#allocation8 + $0x17e4] ss:$24 sps:$4 sm:$0xff]   ;;  %v14082_v48 = vld [vmem:[#allocation8 + $0x640] ss:$24 sps:$4 sm:$0xff]  }
 0x2f2   :  { %7223 = vmatmul.mubr.bf16.vlgmr.msra.gmra.mrb[4].mxu1 %v15795_v57 }
 0x2f3   :  { %2597 = vmatpush1.bf16.msra.mxu0 %v13992_v50  ;;  %7232 = vmatpush1.bf16.msra.mxu1 %v13995_v51  ;;  %v14085_v50 = vld [vmem:[#allocation8 + $0x17e0] ss:$24 sps:$4 sm:$0xff]   ;;  %v14090_v51 = vld [vmem:[#allocation8 + $0x674] ss:$24 sps:$4 sm:$0xff]  }
 0x2f4   :  { %2598 = vmatprep.subr.bf16.mxu0 %v14000_v28  ;;  %7233 = vmatprep.subr.bf16.mxu1 %v14003_v56  ;;  %v14093_v28 = vld [vmem:[#allocation8 + $0x1804] ss:$24 sps:$4 sm:$0xff]   ;;  %v14088_v56 = vld [vmem:[#allocation8 + $0x670] ss:$24 sps:$4 sm:$0xff]  }
 0x2f5   :  { %7263 = vmatprep.mubr.bf16.mxu1 %v15441_v35 }
 0x2f7   :  { %2599 = vmatpush1.bf16.msra.mxu0 %v13998_v42  ;;  %7234 = vmatpush1.bf16.msra.mxu1 %v14001_v58  ;;  %v14091_v42 = vld [vmem:[#allocation8 + $0x1800] ss:$24 sps:$4 sm:$0xff]   ;;  %v14096_v58 = vld [vmem:[#allocation8 + $0x6a4] ss:$24 sps:$4 sm:$0xff]  }
 0x2f8   :  { %2600 = vmatprep.subr.bf16.mxu0 %v14006_v59  ;;  %7235 = vmatprep.subr.bf16.mxu1 %v14009_v60  ;;  %v14099_v59 = vld [vmem:[#allocation8 + $0x1834] ss:$24 sps:$4 sm:$0xff]   ;;  %v14094_v60 = vld [vmem:[#allocation8 + $0x6a0] ss:$24 sps:$4 sm:$0xff]  }
 0x2fb   :  { %2601 = vmatpush1.bf16.msra.mxu0 %v14004_v61  ;;  %7236 = vmatpush1.bf16.msra.mxu1 %v14007_v62  ;;  %v14097_v61 = vld [vmem:[#allocation8 + $0x1830] ss:$24 sps:$4 sm:$0xff]   ;;  %v14102_v62 = vld [vmem:[#allocation8 + $0x6d4] ss:$24 sps:$4 sm:$0xff]  }
 0x2fc   :  { %2602 = vmatprep.subr.bf16.mxu0 %v14012_v63  ;;  %7237 = vmatprep.subr.bf16.mxu1 %v14015_v0  ;;  %v14105_v63 = vld [vmem:[#allocation8 + $0x1864] ss:$24 sps:$4 sm:$0xff]   ;;  %v14100_v0 = vld [vmem:[#allocation8 + $0x6d0] ss:$24 sps:$4 sm:$0xff]  }
 0x2ff   :  { %2603 = vmatpush1.bf16.msra.mxu0 %v14010_v2  ;;  %7238 = vmatpush1.bf16.msra.mxu1 %v14013_v19  ;;  %v14103_v2 = vld [vmem:[#allocation8 + $0x1860] ss:$24 sps:$4 sm:$0xff]   ;;  %v14108_v19 = vld [vmem:[#allocation8 + $0x704] ss:$24 sps:$4 sm:$0xff]  }
 0x300   :  { %2604 = vmatprep.subr.bf16.mxu0 %v14018_v3  ;;  %7239 = vmatprep.subr.bf16.mxu1 %v14021_v4  ;;  %v14111_v3 = vld [vmem:[#allocation8 + $0x1894] ss:$24 sps:$4 sm:$0xff]   ;;  %v14109_v4 = vld [vmem:[#allocation8 + $0x1890] ss:$24 sps:$4 sm:$0xff]  }
 0x303   :  { %2605 = vmatpush1.bf16.msra.mxu0 %v14016_v5  ;;  %7240 = vmatpush1.bf16.msra.mxu1 %v14019_v6  ;;  %v14114_v5 = vld [vmem:[#allocation8 + $0x734] ss:$24 sps:$4 sm:$0xff]   ;;  %v14117_v6 = vld [vmem:[#allocation8 + $0x18c4] ss:$24 sps:$4 sm:$0xff]  }
 0x304   :  { %2606 = vmatprep.subr.bf16.mxu0 %v14024_v7  ;;  %7241 = vmatprep.subr.bf16.mxu1 %v14027_v8  ;;  %v14112_v7 = vld [vmem:[#allocation8 + $0x730] ss:$24 sps:$4 sm:$0xff]   ;;  %v14115_v8 = vld [vmem:[#allocation8 + $0x18c0] ss:$24 sps:$4 sm:$0xff]  }
 0x307   :  { %2607 = vmatpush1.bf16.msra.mxu0 %v14022_v9  ;;  %7242 = vmatpush1.bf16.msra.mxu1 %v14025_v10  ;;  %v14120_v9 = vld [vmem:[#allocation8 + $0x764] ss:$24 sps:$4 sm:$0xff]   ;;  %v14123_v10 = vld [vmem:[#allocation8 + $0x18f4] ss:$24 sps:$4 sm:$0xff]  }
 0x308   :  { %2633 = vmatprep.subr.bf16.mxu0 %v14030_v11  ;;  %7243 = vmatprep.subr.bf16.mxu1 %v14033_v12  ;;  %v14118_v11 = vld [vmem:[#allocation8 + $0x760] ss:$24 sps:$4 sm:$0xff]   ;;  %v14121_v12 = vld [vmem:[#allocation8 + $0x18f0] ss:$24 sps:$4 sm:$0xff]  }
 0x30a   :  { %2625 = vmatmul.mubr.bf16.vlgmr.msra.gmra.mrb[52].mxu0 %v15799_v20 }
 0x30b   :  { %2634 = vmatpush1.bf16.msra.mxu0 %v14028_v13  ;;  %7244 = vmatpush1.bf16.msra.mxu1 %v14031_v14  ;;  %v14126_v13 = vld [vmem:[#allocation8 + $0x784] ss:$24 sps:$4 sm:$0xff]  }
 0x30c   :  { %2635 = vmatprep.subr.bf16.mxu0 %v14036_v16  ;;  %7245 = vmatprep.subr.bf16.mxu1 %v14039_v17  ;;  %v14129_v14 = vld [vmem:[#allocation8 + $0x1924] ss:$24 sps:$4 sm:$0xff]   ;;  %v14124_v16 = vld [vmem:[#allocation8 + $0x780] ss:$24 sps:$4 sm:$0xff]  }
 0x30d   :  { %2665 = vmatprep.mubr.bf16.mxu0 %v15441_v35  ;;  %v14127_v17 = vld [vmem:[#allocation8 + $0x1920] ss:$24 sps:$4 sm:$0xff]  }
 0x30f   :  { %2636 = vmatpush1.bf16.msra.mxu0 %v14034_v21  ;;  %7246 = vmatpush1.bf16.msra.mxu1 %v14037_v15  ;;  %v14132_v21 = vld [vmem:[#allocation8 + $0x7b4] ss:$24 sps:$4 sm:$0xff]  }
 0x310   :  { %2637 = vmatprep.subr.bf16.mxu0 %v14042_v22  ;;  %7272 = vmatprep.subr.bf16.mxu1 %v14045_v23  ;;  %v14135_v15 = vld [vmem:[#allocation8 + $0x1954] ss:$24 sps:$4 sm:$0xff]   ;;  %v14130_v22 = vld [vmem:[#allocation8 + $0x7b0] ss:$24 sps:$4 sm:$0xff]  }
 0x311   :  { %v14133_v23 = vld [vmem:[#allocation8 + $0x1950] ss:$24 sps:$4 sm:$0xff]  }
 0x312   :  { %7264 = vmatmul.mubr.bf16.vlgmr.msra.gmra.mrb[8].mxu1 %v15795_v57 }
 0x313   :  { %2638 = vmatpush1.bf16.msra.mxu0 %v14040_v24  ;;  %7273 = vmatpush1.bf16.msra.mxu1 %v14043_v25  ;;  %v14138_v24 = vld [vmem:[#allocation8 + $0x7e4] ss:$24 sps:$4 sm:$0xff]  }
 0x314   :  { %2639 = vmatprep.subr.bf16.mxu0 %v14048_v26  ;;  %7274 = vmatprep.subr.bf16.mxu1 %v14051_v27  ;;  %v14141_v25 = vld [vmem:[#allocation8 + $0x180c] ss:$24 sps:$4 sm:$0xff]   ;;  %v14136_v26 = vld [vmem:[#allocation8 + $0x7e0] ss:$24 sps:$4 sm:$0xff]  }
 0x315   :  { %7304 = vmatprep.mubr.bf16.mxu1 %v15441_v35  ;;  %v14139_v27 = vld [vmem:[#allocation8 + $0x1808] ss:$24 sps:$4 sm:$0xff]  }
 0x317   :  { %2640 = vmatpush1.bf16.msra.mxu0 %v14046_v1  ;;  %7275 = vmatpush1.bf16.msra.mxu1 %v14049_v29  ;;  %v14144_v1 = vld [vmem:[#allocation8 + $0x814] ss:$24 sps:$4 sm:$0xff]  }
 0x318   :  { %2641 = vmatprep.subr.bf16.mxu0 %v14054_v30  ;;  %7276 = vmatprep.subr.bf16.mxu1 %v14057_v31  ;;  %v14147_v29 = vld [vmem:[#allocation8 + $0x183c] ss:$24 sps:$4 sm:$0xff]   ;;  %v15811_v30 = vld [vmem:[#allocation2 + $0x40] sm:$0xf] }
 0x319   :  { %v14145_v31 = vld [vmem:[#allocation8 + $0x1838] ss:$24 sps:$4 sm:$0xff]  }
 0x31b   :  { %2642 = vmatpush1.bf16.msra.mxu0 %v14052_v49  ;;  %7277 = vmatpush1.bf16.msra.mxu1 %v14055_v18  ;;  %v14150_v49 = vld [vmem:[#allocation8 + $0x844] ss:$24 sps:$4 sm:$0xff]  }
 0x31c   :  { %2643 = vmatprep.subr.bf16.mxu0 %v14060_v32  ;;  %7278 = vmatprep.subr.bf16.mxu1 %v14063_v33  ;;  %v14153_v18 = vld [vmem:[#allocation8 + $0x186c] ss:$24 sps:$4 sm:$0xff]   ;;  %v14148_v32 = vld [vmem:[#allocation8 + $0x840] ss:$24 sps:$4 sm:$0xff]  }
 0x31d   :  { %v14151_v33 = vld [vmem:[#allocation8 + $0x1868] ss:$24 sps:$4 sm:$0xff]  }
 0x31f   :  { %2644 = vmatpush1.bf16.msra.mxu0 %v14058_v53  ;;  %7279 = vmatpush1.bf16.msra.mxu1 %v14061_v34  ;;  %v14156_v53 = vld [vmem:[#allocation8 + $0x874] ss:$24 sps:$4 sm:$0xff]  }
 0x320   :  { %2645 = vmatprep.subr.bf16.mxu0 %v14066_v36  ;;  %7280 = vmatprep.subr.bf16.mxu1 %v14069_v37  ;;  %v14159_v34 = vld [vmem:[#allocation8 + $0x189c] ss:$24 sps:$4 sm:$0xff]   ;;  %v14154_v36 = vld [vmem:[#allocation8 + $0x870] ss:$24 sps:$4 sm:$0xff]  }
 0x321   :  { %v14157_v37 = vld [vmem:[#allocation8 + $0x1898] ss:$24 sps:$4 sm:$0xff]  }
 0x323   :  { %2646 = vmatpush1.bf16.msra.mxu0 %v14064_v55  ;;  %7281 = vmatpush1.bf16.msra.mxu1 %v14067_v54  ;;  %v14162_v55 = vld [vmem:[#allocation8 + $0x8a4] ss:$24 sps:$4 sm:$0xff]  }
 0x324   :  { %2647 = vmatprep.subr.bf16.mxu0 %v14072_v52  ;;  %7282 = vmatprep.subr.bf16.mxu1 %v14075_v38  ;;  %v14165_v54 = vld [vmem:[#allocation8 + $0x18cc] ss:$24 sps:$4 sm:$0xff]   ;;  %v14160_v52 = vld [vmem:[#allocation8 + $0x8a0] ss:$24 sps:$4 sm:$0xff]  }
 0x325   :  { %v14163_v38 = vld [vmem:[#allocation8 + $0x18c8] ss:$24 sps:$4 sm:$0xff]  }
 0x327   :  { %2648 = vmatpush1.bf16.msra.mxu0 %v14070_v39  ;;  %7283 = vmatpush1.bf16.msra.mxu1 %v14073_v40  ;;  %v14168_v39 = vld [vmem:[#allocation8 + $0x8d4] ss:$24 sps:$4 sm:$0xff]  }
 0x328   :  { %2674 = vmatprep.subr.bf16.mxu0 %v14078_v41  ;;  %7284 = vmatprep.subr.bf16.mxu1 %v14081_v43  ;;  %v14171_v40 = vld [vmem:[#allocation8 + $0x18fc] ss:$24 sps:$4 sm:$0xff]   ;;  %v14166_v41 = vld [vmem:[#allocation8 + $0x8d0] ss:$24 sps:$4 sm:$0xff]  }
 0x329   :  { %v14169_v43 = vld [vmem:[#allocation8 + $0x18f8] ss:$24 sps:$4 sm:$0xff]  }
 0x32a   :  { %2666 = vmatmul.mubr.bf16.vlgmr.msra.gmra.mrb[56].mxu0 %v15799_v20 }
 0x32b   :  { %2675 = vmatpush1.bf16.msra.mxu0 %v14076_v44  ;;  %7285 = vmatpush1.bf16.msra.mxu1 %v14079_v45  ;;  %v14174_v44 = vld [vmem:[#allocation8 + $0x78c] ss:$24 sps:$4 sm:$0xff]  }
 0x32c   :  { %2676 = vmatprep.subr.bf16.mxu0 %v14084_v46  ;;  %7286 = vmatprep.subr.bf16.mxu1 %v14087_v47  ;;  %v14177_v45 = vld [vmem:[#allocation8 + $0x192c] ss:$24 sps:$4 sm:$0xff]   ;;  %v14172_v46 = vld [vmem:[#allocation8 + $0x788] ss:$24 sps:$4 sm:$0xff]  }
 0x32d   :  { %2706 = vmatprep.mubr.bf16.mxu0 %v15441_v35  ;;  %v14175_v47 = vld [vmem:[#allocation8 + $0x1928] ss:$24 sps:$4 sm:$0xff]  }
 0x32f   :  { %2677 = vmatpush1.bf16.msra.mxu0 %v14082_v48  ;;  %7287 = vmatpush1.bf16.msra.mxu1 %v14085_v50  ;;  %v14180_v48 = vld [vmem:[#allocation8 + $0x7bc] ss:$24 sps:$4 sm:$0xff]  }
 0x330   :  { %2678 = vmatprep.subr.bf16.mxu0 %v14090_v51  ;;  %7608 = vmatprep.subr.bf16.mxu1 %v14093_v28  ;;  %v14183_v50 = vld [vmem:[#allocation8 + $0x195c] ss:$24 sps:$4 sm:$0xff]   ;;  %v15815_v51 = vld [vmem:[#allocation2 + $0x14] sm:$0xf]  ;;  %v14178_v28 = vld [vmem:[#allocation8 + $0x7b8] ss:$24 sps:$4 sm:$0xff]  }
 0x332   :  { %7305 = vmatmul.mubr.bf16.vlgmr.msra.gmra.mrb[0].mxu1 %v15795_v57  ;;  %v14106_v57 = vld [vmem:[#allocation8 + $0x700] ss:$24 sps:$4 sm:$0xff]  }
 0x333   :  { %2679 = vmatpush1.bf16.msra.mxu0 %v14088_v56  ;;  %7609 = vmatpush1.bf16.msra.mxu1 %v14091_v42  ;;  %v14181_v56 = vld [vmem:[#allocation8 + $0x1958] ss:$24 sps:$4 sm:$0xff]   ;;  %v14186_v42 = vld [vmem:[#allocation8 + $0x7ec] ss:$24 sps:$4 sm:$0xff]  }
 0x334   :  { %2680 = vmatprep.subr.bf16.mxu0 %v14096_v58  ;;  %7610 = vmatprep.subr.bf16.mxu1 %v14099_v59  ;;  %v14189_v58 = vld [vmem:[#allocation8 + $0x1814] ss:$24 sps:$4 sm:$0xff]   ;;  %v14184_v59 = vld [vmem:[#allocation8 + $0x7e8] ss:$24 sps:$4 sm:$0xff]  }
 0x335   :  { %7640 = vmatprep.mubr.bf16.mxu1 %v15441_v35 }
 0x337   :  { %2681 = vmatpush1.bf16.msra.mxu0 %v14094_v60  ;;  %7611 = vmatpush1.bf16.msra.mxu1 %v14097_v61  ;;  %v14187_v60 = vld [vmem:[#allocation8 + $0x1810] ss:$24 sps:$4 sm:$0xff]   ;;  %v14192_v61 = vld [vmem:[#allocation8 + $0x81c] ss:$24 sps:$4 sm:$0xff]  }
 0x338   :  { %2682 = vmatprep.subr.bf16.mxu0 %v14102_v62  ;;  %7612 = vmatprep.subr.bf16.mxu1 %v14105_v63  ;;  %v14195_v62 = vld [vmem:[#allocation8 + $0x1844] ss:$24 sps:$4 sm:$0xff]   ;;  %v14190_v63 = vld [vmem:[#allocation8 + $0x818] ss:$24 sps:$4 sm:$0xff]  }
 0x33b   :  { %2683 = vmatpush1.bf16.msra.mxu0 %v14100_v0  ;;  %7613 = vmatpush1.bf16.msra.mxu1 %v14103_v2  ;;  %v14193_v0 = vld [vmem:[#allocation8 + $0x1840] ss:$24 sps:$4 sm:$0xff]   ;;  %v14198_v2 = vld [vmem:[#allocation8 + $0x84c] ss:$24 sps:$4 sm:$0xff]  }
 0x33c   :  { %2684 = vmatprep.subr.bf16.mxu0 %v14108_v19  ;;  %7614 = vmatprep.subr.bf16.mxu1 %v14111_v3  ;;  %v14201_v19 = vld [vmem:[#allocation8 + $0x1874] ss:$24 sps:$4 sm:$0xff]   ;;  %v14196_v3 = vld [vmem:[#allocation8 + $0x848] ss:$24 sps:$4 sm:$0xff]  }
 0x33f   :  { %2685 = vmatpush1.bf16.msra.mxu0 %v14106_v57  ;;  %7615 = vmatpush1.bf16.msra.mxu1 %v14109_v4  ;;  %v14199_v57 = vld [vmem:[#allocation8 + $0x1870] ss:$24 sps:$4 sm:$0xff]   ;;  %v14204_v4 = vld [vmem:[#allocation8 + $0x87c] ss:$24 sps:$4 sm:$0xff]  }
 0x340   :  { %2686 = vmatprep.subr.bf16.mxu0 %v14114_v5  ;;  %7616 = vmatprep.subr.bf16.mxu1 %v14117_v6  ;;  %v14207_v5 = vld [vmem:[#allocation8 + $0x18a4] ss:$24 sps:$4 sm:$0xff]   ;;  %v14202_v6 = vld [vmem:[#allocation8 + $0x878] ss:$24 sps:$4 sm:$0xff]  }
 0x343   :  { %2687 = vmatpush1.bf16.msra.mxu0 %v14112_v7  ;;  %7617 = vmatpush1.bf16.msra.mxu1 %v14115_v8  ;;  %v14205_v7 = vld [vmem:[#allocation8 + $0x18a0] ss:$24 sps:$4 sm:$0xff]   ;;  %v14210_v8 = vld [vmem:[#allocation8 + $0x8ac] ss:$24 sps:$4 sm:$0xff]  }
 0x344   :  { %2688 = vmatprep.subr.bf16.mxu0 %v14120_v9  ;;  %7618 = vmatprep.subr.bf16.mxu1 %v14123_v10  ;;  %v14213_v9 = vld [vmem:[#allocation8 + $0x18d4] ss:$24 sps:$4 sm:$0xff]   ;;  %v14208_v10 = vld [vmem:[#allocation8 + $0x8a8] ss:$24 sps:$4 sm:$0xff]  }
 0x347   :  { %2689 = vmatpush1.bf16.msra.mxu0 %v14118_v11  ;;  %7619 = vmatpush1.bf16.msra.mxu1 %v14121_v12  ;;  %v14211_v11 = vld [vmem:[#allocation8 + $0x18d0] ss:$24 sps:$4 sm:$0xff]   ;;  %v14216_v12 = vld [vmem:[#allocation8 + $0x8dc] ss:$24 sps:$4 sm:$0xff]  }
 0x348   :  { %3010 = vmatprep.subr.bf16.mxu0 %v14126_v13  ;;  %7620 = vmatprep.subr.bf16.mxu1 %v14129_v14  ;;  %v14219_v13 = vld [vmem:[#allocation8 + $0x1904] ss:$24 sps:$4 sm:$0xff]   ;;  %v14214_v14 = vld [vmem:[#allocation8 + $0x8d8] ss:$24 sps:$4 sm:$0xff]  }
 0x34a   :  { %2707 = vmatmul.mubr.bf16.vlgmr.msra.gmra.mrb[60].mxu0 %v15799_v20  ;;  %v14142_v20 = vld [vmem:[#allocation8 + $0x810] ss:$24 sps:$4 sm:$0xff]  }
 0x34b   :  { %3011 = vmatpush1.bf16.msra.mxu0 %v14124_v16  ;;  %7621 = vmatpush1.bf16.msra.mxu1 %v14127_v17  ;;  %v14217_v16 = vld [vmem:[#allocation8 + $0x1900] ss:$24 sps:$4 sm:$0xff]   ;;  %v14222_v17 = vld [vmem:[#allocation8 + $0x794] ss:$24 sps:$4 sm:$0xff]  }
 0x34c   :  { %3012 = vmatprep.subr.bf16.mxu0 %v14132_v21  ;;  %7622 = vmatprep.subr.bf16.mxu1 %v14135_v15  ;;  %v14225_v21 = vld [vmem:[#allocation8 + $0x1934] ss:$24 sps:$4 sm:$0xff]   ;;  %v14220_v15 = vld [vmem:[#allocation8 + $0x790] ss:$24 sps:$4 sm:$0xff]  }
 0x34d   :  { %3042 = vmatprep.mubr.bf16.mxu0 %v15441_v35 }
 0x34f   :  { %3013 = vmatpush1.bf16.msra.mxu0 %v14130_v22  ;;  %7623 = vmatpush1.bf16.msra.mxu1 %v14133_v23  ;;  %v14223_v22 = vld [vmem:[#allocation8 + $0x1930] ss:$24 sps:$4 sm:$0xff]   ;;  %v14228_v23 = vld [vmem:[#allocation8 + $0x7c4] ss:$24 sps:$4 sm:$0xff]  }
 0x350   :  { %3014 = vmatprep.subr.bf16.mxu0 %v14138_v24  ;;  %7649 = vmatprep.subr.bf16.mxu1 %v14141_v25  ;;  %v14231_v24 = vld [vmem:[#allocation8 + $0x1964] ss:$24 sps:$4 sm:$0xff]   ;;  %v14226_v25 = vld [vmem:[#allocation8 + $0x7c0] ss:$24 sps:$4 sm:$0xff]  }
 0x352   :  { %7641 = vmatmul.mubr.bf16.vlgmr.msra.gmra.mrb[4].mxu1 %v15811_v30 }
 0x353   :  { %3015 = vmatpush1.bf16.msra.mxu0 %v14136_v26  ;;  %7650 = vmatpush1.bf16.msra.mxu1 %v14139_v27  ;;  %v14229_v26 = vld [vmem:[#allocation8 + $0x1960] ss:$24 sps:$4 sm:$0xff]   ;;  %v14234_v27 = vld [vmem:[#allocation8 + $0x7f4] ss:$24 sps:$4 sm:$0xff]  }
 0x354   :  { %3016 = vmatprep.subr.bf16.mxu0 %v14144_v1  ;;  %7651 = vmatprep.subr.bf16.mxu1 %v14147_v29  ;;  %v14237_v1 = vld [vmem:[#allocation8 + $0x1984] ss:$24 sps:$4 sm:$0xff]   ;;  %v14232_v29 = vld [vmem:[#allocation8 + $0x7f0] ss:$24 sps:$4 sm:$0xff]  }
 0x355   :  { %7681 = vmatprep.mubr.bf16.mxu1 %v15441_v35 }
 0x357   :  { %3017 = vmatpush1.bf16.msra.mxu0 %v14142_v20  ;;  %7652 = vmatpush1.bf16.msra.mxu1 %v14145_v31  ;;  %v14235_v20 = vld [vmem:[#allocation8 + $0x1980] ss:$24 sps:$4 sm:$0xff]   ;;  %v14240_v31 = vld [vmem:[#allocation8 + $0x824] ss:$24 sps:$4 sm:$0xff]  }
 0x358   :  { %3018 = vmatprep.subr.bf16.mxu0 %v14150_v49  ;;  %7653 = vmatprep.subr.bf16.mxu1 %v14153_v18  ;;  %v14243_v49 = vld [vmem:[#allocation8 + $0x19b4] ss:$24 sps:$4 sm:$0xff]   ;;  %v14238_v18 = vld [vmem:[#allocation8 + $0x820] ss:$24 sps:$4 sm:$0xff]  }
 0x35b   :  { %3019 = vmatpush1.bf16.msra.mxu0 %v14148_v32  ;;  %7654 = vmatpush1.bf16.msra.mxu1 %v14151_v33  ;;  %v14241_v32 = vld [vmem:[#allocation8 + $0x19b0] ss:$24 sps:$4 sm:$0xff]   ;;  %v14246_v33 = vld [vmem:[#allocation8 + $0x854] ss:$24 sps:$4 sm:$0xff]  }
 0x35c   :  { %3020 = vmatprep.subr.bf16.mxu0 %v14156_v53  ;;  %7655 = vmatprep.subr.bf16.mxu1 %v14159_v34  ;;  %v14249_v53 = vld [vmem:[#allocation8 + $0x19e4] ss:$24 sps:$4 sm:$0xff]   ;;  %v14244_v34 = vld [vmem:[#allocation8 + $0x850] ss:$24 sps:$4 sm:$0xff]  }
 0x35f   :  { %3021 = vmatpush1.bf16.msra.mxu0 %v14154_v36  ;;  %7656 = vmatpush1.bf16.msra.mxu1 %v14157_v37  ;;  %v14247_v36 = vld [vmem:[#allocation8 + $0x19e0] ss:$24 sps:$4 sm:$0xff]   ;;  %v14252_v37 = vld [vmem:[#allocation8 + $0x884] ss:$24 sps:$4 sm:$0xff]  }
 0x360   :  { %3022 = vmatprep.subr.bf16.mxu0 %v14162_v55  ;;  %7657 = vmatprep.subr.bf16.mxu1 %v14165_v54  ;;  %v14255_v55 = vld [vmem:[#allocation8 + $0x1a14] ss:$24 sps:$4 sm:$0xff]   ;;  %v14253_v54 = vld [vmem:[#allocation8 + $0x1a10] ss:$24 sps:$4 sm:$0xff]  }
 0x363   :  { %3023 = vmatpush1.bf16.msra.mxu0 %v14160_v52  ;;  %7658 = vmatpush1.bf16.msra.mxu1 %v14163_v38  ;;  %v14258_v52 = vld [vmem:[#allocation8 + $0x8b4] ss:$24 sps:$4 sm:$0xff]   ;;  %v14261_v38 = vld [vmem:[#allocation8 + $0x1a44] ss:$24 sps:$4 sm:$0xff]  }
 0x364   :  { %3024 = vmatprep.subr.bf16.mxu0 %v14168_v39  ;;  %7659 = vmatprep.subr.bf16.mxu1 %v14171_v40  ;;  %v14256_v39 = vld [vmem:[#allocation8 + $0x8b0] ss:$24 sps:$4 sm:$0xff]   ;;  %v14259_v40 = vld [vmem:[#allocation8 + $0x1a40] ss:$24 sps:$4 sm:$0xff]  }
 0x367   :  { %3025 = vmatpush1.bf16.msra.mxu0 %v14166_v41  ;;  %7660 = vmatpush1.bf16.msra.mxu1 %v14169_v43  ;;  %v14264_v41 = vld [vmem:[#allocation8 + $0x8e4] ss:$24 sps:$4 sm:$0xff]   ;;  %v14267_v43 = vld [vmem:[#allocation8 + $0x1a74] ss:$24 sps:$4 sm:$0xff]  }
 0x368   :  { %3051 = vmatprep.subr.bf16.mxu0 %v14174_v44  ;;  %7661 = vmatprep.subr.bf16.mxu1 %v14177_v45  ;;  %v14262_v44 = vld [vmem:[#allocation8 + $0x8e0] ss:$24 sps:$4 sm:$0xff]   ;;  %v14265_v45 = vld [vmem:[#allocation8 + $0x1a70] ss:$24 sps:$4 sm:$0xff]  }
 0x36a   :  { %3043 = vmatmul.mubr.bf16.vlgmr.msra.gmra.mrb[52].mxu0 %v15815_v51 }
 0x36b   :  { %3052 = vmatpush1.bf16.msra.mxu0 %v14172_v46  ;;  %7662 = vmatpush1.bf16.msra.mxu1 %v14175_v47  ;;  %v14270_v46 = vld [vmem:[#allocation8 + $0x904] ss:$24 sps:$4 sm:$0xff]  }
 0x36c   :  { %3053 = vmatprep.subr.bf16.mxu0 %v14180_v48  ;;  %7663 = vmatprep.subr.bf16.mxu1 %v14183_v50  ;;  %v14273_v47 = vld [vmem:[#allocation8 + $0x1aa4] ss:$24 sps:$4 sm:$0xff]   ;;  %v14268_v48 = vld [vmem:[#allocation8 + $0x900] ss:$24 sps:$4 sm:$0xff]  }
 0x36d   :  { %3083 = vmatprep.mubr.bf16.mxu0 %v15441_v35  ;;  %v14271_v50 = vld [vmem:[#allocation8 + $0x1aa0] ss:$24 sps:$4 sm:$0xff]  }
 0x36f   :  { %3054 = vmatpush1.bf16.msra.mxu0 %v14178_v28  ;;  %7664 = vmatpush1.bf16.msra.mxu1 %v14181_v56  ;;  %v14276_v28 = vld [vmem:[#allocation8 + $0x934] ss:$24 sps:$4 sm:$0xff]  }
 0x370   :  { %3055 = vmatprep.subr.bf16.mxu0 %v14186_v42  ;;  %7690 = vmatprep.subr.bf16.mxu1 %v14189_v58  ;;  %v14279_v56 = vld [vmem:[#allocation8 + $0x1ad4] ss:$24 sps:$4 sm:$0xff]   ;;  %v14274_v42 = vld [vmem:[#allocation8 + $0x930] ss:$24 sps:$4 sm:$0xff]  }
 0x371   :  { %v14277_v58 = vld [vmem:[#allocation8 + $0x1ad0] ss:$24 sps:$4 sm:$0xff]  }
 0x372   :  { %7682 = vmatmul.mubr.bf16.vlgmr.msra.gmra.mrb[8].mxu1 %v15811_v30 }
 0x373   :  { %3056 = vmatpush1.bf16.msra.mxu0 %v14184_v59  ;;  %7691 = vmatpush1.bf16.msra.mxu1 %v14187_v60  ;;  %v14282_v59 = vld [vmem:[#allocation8 + $0x964] ss:$24 sps:$4 sm:$0xff]  }
 0x374   :  { %3057 = vmatprep.subr.bf16.mxu0 %v14192_v61  ;;  %7692 = vmatprep.subr.bf16.mxu1 %v14195_v62  ;;  %v14285_v60 = vld [vmem:[#allocation8 + $0x198c] ss:$24 sps:$4 sm:$0xff]   ;;  %v14280_v61 = vld [vmem:[#allocation8 + $0x960] ss:$24 sps:$4 sm:$0xff]  }
 0x375   :  { %7722 = vmatprep.mubr.bf16.mxu1 %v15441_v35  ;;  %v14283_v62 = vld [vmem:[#allocation8 + $0x1988] ss:$24 sps:$4 sm:$0xff]  }
 0x377   :  { %3058 = vmatpush1.bf16.msra.mxu0 %v14190_v63  ;;  %7693 = vmatpush1.bf16.msra.mxu1 %v14193_v0  ;;  %v14288_v63 = vld [vmem:[#allocation8 + $0x994] ss:$24 sps:$4 sm:$0xff]  }
 0x378   :  { %3059 = vmatprep.subr.bf16.mxu0 %v14198_v2  ;;  %7694 = vmatprep.subr.bf16.mxu1 %v14201_v19  ;;  %v14291_v0 = vld [vmem:[#allocation8 + $0x19bc] ss:$24 sps:$4 sm:$0xff]   ;;  %v14289_v19 = vld [vmem:[#allocation8 + $0x19b8] ss:$24 sps:$4 sm:$0xff]  }
 0x379   :  { %v15827_v2 = vld [vmem:[#allocation2 + $0x44] sm:$0xf] }
 0x37b   :  { %3060 = vmatpush1.bf16.msra.mxu0 %v14196_v3  ;;  %7695 = vmatpush1.bf16.msra.mxu1 %v14199_v57  ;;  %v14294_v3 = vld [vmem:[#allocation8 + $0x9c4] ss:$24 sps:$4 sm:$0xff]  }
 0x37c   :  { %3061 = vmatprep.subr.bf16.mxu0 %v14204_v4  ;;  %7696 = vmatprep.subr.bf16.mxu1 %v14207_v5  ;;  %v14297_v57 = vld [vmem:[#allocation8 + $0x19ec] ss:$24 sps:$4 sm:$0xff]   ;;  %v14292_v4 = vld [vmem:[#allocation8 + $0x9c0] ss:$24 sps:$4 sm:$0xff]  }
 0x37d   :  { %v14295_v5 = vld [vmem:[#allocation8 + $0x19e8] ss:$24 sps:$4 sm:$0xff]  }
 0x37f   :  { %3062 = vmatpush1.bf16.msra.mxu0 %v14202_v6  ;;  %7697 = vmatpush1.bf16.msra.mxu1 %v14205_v7  ;;  %v14300_v6 = vld [vmem:[#allocation8 + $0x9f4] ss:$24 sps:$4 sm:$0xff]  }
 0x380   :  { %3063 = vmatprep.subr.bf16.mxu0 %v14210_v8  ;;  %7698 = vmatprep.subr.bf16.mxu1 %v14213_v9  ;;  %v14303_v7 = vld [vmem:[#allocation8 + $0x1a1c] ss:$24 sps:$4 sm:$0xff]   ;;  %v14298_v8 = vld [vmem:[#allocation8 + $0x9f0] ss:$24 sps:$4 sm:$0xff]  }
 0x381   :  { %v14301_v9 = vld [vmem:[#allocation8 + $0x1a18] ss:$24 sps:$4 sm:$0xff]  }
 0x383   :  { %3064 = vmatpush1.bf16.msra.mxu0 %v14208_v10  ;;  %7699 = vmatpush1.bf16.msra.mxu1 %v14211_v11  ;;  %v14306_v10 = vld [vmem:[#allocation8 + $0xa24] ss:$24 sps:$4 sm:$0xff]  }
 0x384   :  { %3065 = vmatprep.subr.bf16.mxu0 %v14216_v12  ;;  %7700 = vmatprep.subr.bf16.mxu1 %v14219_v13  ;;  %v14309_v11 = vld [vmem:[#allocation8 + $0x1a4c] ss:$24 sps:$4 sm:$0xff]   ;;  %v14304_v12 = vld [vmem:[#allocation8 + $0xa20] ss:$24 sps:$4 sm:$0xff]  }
 0x385   :  { %v14307_v13 = vld [vmem:[#allocation8 + $0x1a48] ss:$24 sps:$4 sm:$0xff]  }
 0x387   :  { %3066 = vmatpush1.bf16.msra.mxu0 %v14214_v14  ;;  %7701 = vmatpush1.bf16.msra.mxu1 %v14217_v16  ;;  %v14312_v14 = vld [vmem:[#allocation8 + $0xa54] ss:$24 sps:$4 sm:$0xff]  }
 0x388   :  { %3092 = vmatprep.subr.bf16.mxu0 %v14222_v17  ;;  %7702 = vmatprep.subr.bf16.mxu1 %v14225_v21  ;;  %v14315_v16 = vld [vmem:[#allocation8 + $0x1a7c] ss:$24 sps:$4 sm:$0xff]   ;;  %v14310_v17 = vld [vmem:[#allocation8 + $0xa50] ss:$24 sps:$4 sm:$0xff]  }
 0x389   :  { %v14313_v21 = vld [vmem:[#allocation8 + $0x1a78] ss:$24 sps:$4 sm:$0xff]  }
 0x38a   :  { %3084 = vmatmul.mubr.bf16.vlgmr.msra.gmra.mrb[56].mxu0 %v15815_v51 }
 0x38b   :  { %3093 = vmatpush1.bf16.msra.mxu0 %v14220_v15  ;;  %7703 = vmatpush1.bf16.msra.mxu1 %v14223_v22  ;;  %v14318_v15 = vld [vmem:[#allocation8 + $0x90c] ss:$24 sps:$4 sm:$0xff]  }
 0x38c   :  { %3094 = vmatprep.subr.bf16.mxu0 %v14228_v23  ;;  %7704 = vmatprep.subr.bf16.mxu1 %v14231_v24  ;;  %v14321_v22 = vld [vmem:[#allocation8 + $0x1aac] ss:$24 sps:$4 sm:$0xff]   ;;  %v14316_v23 = vld [vmem:[#allocation8 + $0x908] ss:$24 sps:$4 sm:$0xff]  }
 0x38d   :  { %3124 = vmatprep.mubr.bf16.mxu0 %v15441_v35  ;;  %v14319_v24 = vld [vmem:[#allocation8 + $0x1aa8] ss:$24 sps:$4 sm:$0xff]  }
 0x38f   :  { %3095 = vmatpush1.bf16.msra.mxu0 %v14226_v25  ;;  %7705 = vmatpush1.bf16.msra.mxu1 %v14229_v26  ;;  %v14324_v25 = vld [vmem:[#allocation8 + $0x93c] ss:$24 sps:$4 sm:$0xff]  }
 0x390   :  { %3096 = vmatprep.subr.bf16.mxu0 %v14234_v27  ;;  %8026 = vmatprep.subr.bf16.mxu1 %v14237_v1  ;;  %v14327_v26 = vld [vmem:[#allocation8 + $0x1adc] ss:$24 sps:$4 sm:$0xff]   ;;  %v15831_v27 = vld [vmem:[#allocation2 + $0x18] sm:$0xf] }
 0x391   :  { %v14322_v1 = vld [vmem:[#allocation8 + $0x938] ss:$24 sps:$4 sm:$0xff]  }
 0x392   :  { %7723 = vmatmul.mubr.bf16.vlgmr.msra.gmra.mrb[0].mxu1 %v15811_v30  ;;  %v14250_v30 = vld [vmem:[#allocation8 + $0x880] ss:$24 sps:$4 sm:$0xff]  }
 0x393   :  { %3097 = vmatpush1.bf16.msra.mxu0 %v14232_v29  ;;  %8027 = vmatpush1.bf16.msra.mxu1 %v14235_v20  ;;  %v14325_v29 = vld [vmem:[#allocation8 + $0x1ad8] ss:$24 sps:$4 sm:$0xff]   ;;  %v14330_v20 = vld [vmem:[#allocation8 + $0x96c] ss:$24 sps:$4 sm:$0xff]  }
 0x394   :  { %3098 = vmatprep.subr.bf16.mxu0 %v14240_v31  ;;  %8028 = vmatprep.subr.bf16.mxu1 %v14243_v49  ;;  %v14333_v31 = vld [vmem:[#allocation8 + $0x1994] ss:$24 sps:$4 sm:$0xff]   ;;  %v14328_v49 = vld [vmem:[#allocation8 + $0x968] ss:$24 sps:$4 sm:$0xff]  }
 0x395   :  { %8058 = vmatprep.mubr.bf16.mxu1 %v15441_v35 }
 0x397   :  { %3099 = vmatpush1.bf16.msra.mxu0 %v14238_v18  ;;  %8029 = vmatpush1.bf16.msra.mxu1 %v14241_v32  ;;  %v14331_v18 = vld [vmem:[#allocation8 + $0x1990] ss:$24 sps:$4 sm:$0xff]   ;;  %v14336_v32 = vld [vmem:[#allocation8 + $0x99c] ss:$24 sps:$4 sm:$0xff]  }
 0x398   :  { %3100 = vmatprep.subr.bf16.mxu0 %v14246_v33  ;;  %8030 = vmatprep.subr.bf16.mxu1 %v14249_v53  ;;  %v14339_v33 = vld [vmem:[#allocation8 + $0x19c4] ss:$24 sps:$4 sm:$0xff]   ;;  %v14334_v53 = vld [vmem:[#allocation8 + $0x998] ss:$24 sps:$4 sm:$0xff]  }
 0x39b   :  { %3101 = vmatpush1.bf16.msra.mxu0 %v14244_v34  ;;  %8031 = vmatpush1.bf16.msra.mxu1 %v14247_v36  ;;  %v14337_v34 = vld [vmem:[#allocation8 + $0x19c0] ss:$24 sps:$4 sm:$0xff]   ;;  %v14342_v36 = vld [vmem:[#allocation8 + $0x9cc] ss:$24 sps:$4 sm:$0xff]  }
 0x39c   :  { %3102 = vmatprep.subr.bf16.mxu0 %v14252_v37  ;;  %8032 = vmatprep.subr.bf16.mxu1 %v14255_v55  ;;  %v14345_v37 = vld [vmem:[#allocation8 + $0x19f4] ss:$24 sps:$4 sm:$0xff]   ;;  %v14340_v55 = vld [vmem:[#allocation8 + $0x9c8] ss:$24 sps:$4 sm:$0xff]  }
 0x39f   :  { %3103 = vmatpush1.bf16.msra.mxu0 %v14250_v30  ;;  %8033 = vmatpush1.bf16.msra.mxu1 %v14253_v54  ;;  %v14343_v30 = vld [vmem:[#allocation8 + $0x19f0] ss:$24 sps:$4 sm:$0xff]   ;;  %v14348_v54 = vld [vmem:[#allocation8 + $0x9fc] ss:$24 sps:$4 sm:$0xff]  }
 0x3a0   :  { %3104 = vmatprep.subr.bf16.mxu0 %v14258_v52  ;;  %8034 = vmatprep.subr.bf16.mxu1 %v14261_v38  ;;  %v14351_v52 = vld [vmem:[#allocation8 + $0x1a24] ss:$24 sps:$4 sm:$0xff]   ;;  %v14346_v38 = vld [vmem:[#allocation8 + $0x9f8] ss:$24 sps:$4 sm:$0xff]  }
 0x3a3   :  { %3105 = vmatpush1.bf16.msra.mxu0 %v14256_v39  ;;  %8035 = vmatpush1.bf16.msra.mxu1 %v14259_v40  ;;  %v14349_v39 = vld [vmem:[#allocation8 + $0x1a20] ss:$24 sps:$4 sm:$0xff]   ;;  %v14354_v40 = vld [vmem:[#allocation8 + $0xa2c] ss:$24 sps:$4 sm:$0xff]  }
 0x3a4   :  { %3106 = vmatprep.subr.bf16.mxu0 %v14264_v41  ;;  %8036 = vmatprep.subr.bf16.mxu1 %v14267_v43  ;;  %v14357_v41 = vld [vmem:[#allocation8 + $0x1a54] ss:$24 sps:$4 sm:$0xff]   ;;  %v14352_v43 = vld [vmem:[#allocation8 + $0xa28] ss:$24 sps:$4 sm:$0xff]  }
 0x3a7   :  { %3107 = vmatpush1.bf16.msra.mxu0 %v14262_v44  ;;  %8037 = vmatpush1.bf16.msra.mxu1 %v14265_v45  ;;  %v14355_v44 = vld [vmem:[#allocation8 + $0x1a50] ss:$24 sps:$4 sm:$0xff]   ;;  %v14360_v45 = vld [vmem:[#allocation8 + $0xa5c] ss:$24 sps:$4 sm:$0xff]  }
 0x3a8   :  { %3428 = vmatprep.subr.bf16.mxu0 %v14270_v46  ;;  %8038 = vmatprep.subr.bf16.mxu1 %v14273_v47  ;;  %v14363_v46 = vld [vmem:[#allocation8 + $0x1a84] ss:$24 sps:$4 sm:$0xff]   ;;  %v14358_v47 = vld [vmem:[#allocation8 + $0xa58] ss:$24 sps:$4 sm:$0xff]  }
 0x3aa   :  { %3125 = vmatmul.mubr.bf16.vlgmr.msra.gmra.mrb[60].mxu0 %v15815_v51  ;;  %v14286_v51 = vld [vmem:[#allocation8 + $0x990] ss:$24 sps:$4 sm:$0xff]  }
 0x3ab   :  { %3429 = vmatpush1.bf16.msra.mxu0 %v14268_v48  ;;  %8039 = vmatpush1.bf16.msra.mxu1 %v14271_v50  ;;  %v14361_v48 = vld [vmem:[#allocation8 + $0x1a80] ss:$24 sps:$4 sm:$0xff]   ;;  %v14366_v50 = vld [vmem:[#allocation8 + $0x914] ss:$24 sps:$4 sm:$0xff]  }
 0x3ac   :  { %3430 = vmatprep.subr.bf16.mxu0 %v14276_v28  ;;  %8040 = vmatprep.subr.bf16.mxu1 %v14279_v56  ;;  %v14369_v28 = vld [vmem:[#allocation8 + $0x1ab4] ss:$24 sps:$4 sm:$0xff]   ;;  %v14364_v56 = vld [vmem:[#allocation8 + $0x910] ss:$24 sps:$4 sm:$0xff]  }
 0x3ad   :  { %3460 = vmatprep.mubr.bf16.mxu0 %v15441_v35 }
 0x3af   :  { %3431 = vmatpush1.bf16.msra.mxu0 %v14274_v42  ;;  %8041 = vmatpush1.bf16.msra.mxu1 %v14277_v58  ;;  %v14367_v42 = vld [vmem:[#allocation8 + $0x1ab0] ss:$24 sps:$4 sm:$0xff]   ;;  %v14372_v58 = vld [vmem:[#allocation8 + $0x944] ss:$24 sps:$4 sm:$0xff]  }
 0x3b0   :  { %3432 = vmatprep.subr.bf16.mxu0 %v14282_v59  ;;  %8067 = vmatprep.subr.bf16.mxu1 %v14285_v60  ;;  %v14375_v59 = vld [vmem:[#allocation8 + $0x1ae4] ss:$24 sps:$4 sm:$0xff]   ;;  %v14370_v60 = vld [vmem:[#allocation8 + $0x940] ss:$24 sps:$4 sm:$0xff]  }
 0x3b2   :  { %8059 = vmatmul.mubr.bf16.vlgmr.msra.gmra.mrb[4].mxu1 %v15827_v2 }
 0x3b3   :  { %3433 = vmatpush1.bf16.msra.mxu0 %v14280_v61  ;;  %8068 = vmatpush1.bf16.msra.mxu1 %v14283_v62  ;;  %v14373_v61 = vld [vmem:[#allocation8 + $0x1ae0] ss:$24 sps:$4 sm:$0xff]   ;;  %v14378_v62 = vld [vmem:[#allocation8 + $0x974] ss:$24 sps:$4 sm:$0xff]  }
 0x3b4   :  { %3434 = vmatprep.subr.bf16.mxu0 %v14288_v63  ;;  %8069 = vmatprep.subr.bf16.mxu1 %v14291_v0  ;;  %v14381_v63 = vld [vmem:[#allocation8 + $0x1b04] ss:$24 sps:$4 sm:$0xff]   ;;  %v14376_v0 = vld [vmem:[#allocation8 + $0x970] ss:$24 sps:$4 sm:$0xff]  }
 0x3b5   :  { %8099 = vmatprep.mubr.bf16.mxu1 %v15441_v35 }
 0x3b7   :  { %3435 = vmatpush1.bf16.msra.mxu0 %v14286_v51  ;;  %8070 = vmatpush1.bf16.msra.mxu1 %v14289_v19  ;;  %v14379_v51 = vld [vmem:[#allocation8 + $0x1b00] ss:$24 sps:$4 sm:$0xff]   ;;  %v14384_v19 = vld [vmem:[#allocation8 + $0x9a4] ss:$24 sps:$4 sm:$0xff]  }
 0x3b8   :  { %3436 = vmatprep.subr.bf16.mxu0 %v14294_v3  ;;  %8071 = vmatprep.subr.bf16.mxu1 %v14297_v57  ;;  %v14387_v3 = vld [vmem:[#allocation8 + $0x1b34] ss:$24 sps:$4 sm:$0xff]   ;;  %v14382_v57 = vld [vmem:[#allocation8 + $0x9a0] ss:$24 sps:$4 sm:$0xff]  }
 0x3bb   :  { %3437 = vmatpush1.bf16.msra.mxu0 %v14292_v4  ;;  %8072 = vmatpush1.bf16.msra.mxu1 %v14295_v5  ;;  %v14385_v4 = vld [vmem:[#allocation8 + $0x1b30] ss:$24 sps:$4 sm:$0xff]   ;;  %v14390_v5 = vld [vmem:[#allocation8 + $0x9d4] ss:$24 sps:$4 sm:$0xff]  }
 0x3bc   :  { %3438 = vmatprep.subr.bf16.mxu0 %v14300_v6  ;;  %8073 = vmatprep.subr.bf16.mxu1 %v14303_v7  ;;  %v14393_v6 = vld [vmem:[#allocation8 + $0x1b64] ss:$24 sps:$4 sm:$0xff]   ;;  %v14388_v7 = vld [vmem:[#allocation8 + $0x9d0] ss:$24 sps:$4 sm:$0xff]  }
 0x3bf   :  { %3439 = vmatpush1.bf16.msra.mxu0 %v14298_v8  ;;  %8074 = vmatpush1.bf16.msra.mxu1 %v14301_v9  ;;  %v14391_v8 = vld [vmem:[#allocation8 + $0x1b60] ss:$24 sps:$4 sm:$0xff]   ;;  %v14396_v9 = vld [vmem:[#allocation8 + $0xa04] ss:$24 sps:$4 sm:$0xff]  }
 0x3c0   :  { %3440 = vmatprep.subr.bf16.mxu0 %v14306_v10  ;;  %8075 = vmatprep.subr.bf16.mxu1 %v14309_v11  ;;  %v14399_v10 = vld [vmem:[#allocation8 + $0x1b94] ss:$24 sps:$4 sm:$0xff]   ;;  %v14397_v11 = vld [vmem:[#allocation8 + $0x1b90] ss:$24 sps:$4 sm:$0xff]  }
 0x3c3   :  { %3441 = vmatpush1.bf16.msra.mxu0 %v14304_v12  ;;  %8076 = vmatpush1.bf16.msra.mxu1 %v14307_v13  ;;  %v14402_v12 = vld [vmem:[#allocation8 + $0xa34] ss:$24 sps:$4 sm:$0xff]   ;;  %v14405_v13 = vld [vmem:[#allocation8 + $0x1bc4] ss:$24 sps:$4 sm:$0xff]  }
 0x3c4   :  { %3442 = vmatprep.subr.bf16.mxu0 %v14312_v14  ;;  %8077 = vmatprep.subr.bf16.mxu1 %v14315_v16  ;;  %v14400_v14 = vld [vmem:[#allocation8 + $0xa30] ss:$24 sps:$4 sm:$0xff]   ;;  %v14403_v16 = vld [vmem:[#allocation8 + $0x1bc0] ss:$24 sps:$4 sm:$0xff]  }
 0x3c7   :  { %3443 = vmatpush1.bf16.msra.mxu0 %v14310_v17  ;;  %8078 = vmatpush1.bf16.msra.mxu1 %v14313_v21  ;;  %v14408_v17 = vld [vmem:[#allocation8 + $0xa64] ss:$24 sps:$4 sm:$0xff]   ;;  %v14411_v21 = vld [vmem:[#allocation8 + $0x1bf4] ss:$24 sps:$4 sm:$0xff]  }
 0x3c8   :  { %3469 = vmatprep.subr.bf16.mxu0 %v14318_v15  ;;  %8079 = vmatprep.subr.bf16.mxu1 %v14321_v22  ;;  %v14406_v15 = vld [vmem:[#allocation8 + $0xa60] ss:$24 sps:$4 sm:$0xff]   ;;  %v14409_v22 = vld [vmem:[#allocation8 + $0x1bf0] ss:$24 sps:$4 sm:$0xff]  }
 0x3ca   :  { %3461 = vmatmul.mubr.bf16.vlgmr.msra.gmra.mrb[52].mxu0 %v15831_v27 }
 0x3cb   :  { %3470 = vmatpush1.bf16.msra.mxu0 %v14316_v23  ;;  %8080 = vmatpush1.bf16.msra.mxu1 %v14319_v24  ;;  %v14414_v23 = vld [vmem:[#allocation8 + $0xa84] ss:$24 sps:$4 sm:$0xff]  }
 0x3cc   :  { %3471 = vmatprep.subr.bf16.mxu0 %v14324_v25  ;;  %8081 = vmatprep.subr.bf16.mxu1 %v14327_v26  ;;  %v14417_v24 = vld [vmem:[#allocation8 + $0x1c24] ss:$24 sps:$4 sm:$0xff]   ;;  %v14412_v25 = vld [vmem:[#allocation8 + $0xa80] ss:$24 sps:$4 sm:$0xff]  }
 0x3cd   :  { %3501 = vmatprep.mubr.bf16.mxu0 %v15441_v35  ;;  %v14415_v26 = vld [vmem:[#allocation8 + $0x1c20] ss:$24 sps:$4 sm:$0xff]  }
 0x3cf   :  { %3472 = vmatpush1.bf16.msra.mxu0 %v14322_v1  ;;  %8082 = vmatpush1.bf16.msra.mxu1 %v14325_v29  ;;  %v14420_v1 = vld [vmem:[#allocation8 + $0xab4] ss:$24 sps:$4 sm:$0xff]  }
 0x3d0   :  { %3473 = vmatprep.subr.bf16.mxu0 %v14330_v20  ;;  %8108 = vmatprep.subr.bf16.mxu1 %v14333_v31  ;;  %v14423_v29 = vld [vmem:[#allocation8 + $0x1c54] ss:$24 sps:$4 sm:$0xff]   ;;  %v14418_v20 = vld [vmem:[#allocation8 + $0xab0] ss:$24 sps:$4 sm:$0xff]  }
 0x3d1   :  { %v14421_v31 = vld [vmem:[#allocation8 + $0x1c50] ss:$24 sps:$4 sm:$0xff]  }
 0x3d2   :  { %8100 = vmatmul.mubr.bf16.vlgmr.msra.gmra.mrb[8].mxu1 %v15827_v2 }
 0x3d3   :  { %3474 = vmatpush1.bf16.msra.mxu0 %v14328_v49  ;;  %8109 = vmatpush1.bf16.msra.mxu1 %v14331_v18  ;;  %v14426_v49 = vld [vmem:[#allocation8 + $0xae4] ss:$24 sps:$4 sm:$0xff]  }
 0x3d4   :  { %3475 = vmatprep.subr.bf16.mxu0 %v14336_v32  ;;  %8110 = vmatprep.subr.bf16.mxu1 %v14339_v33  ;;  %v14429_v18 = vld [vmem:[#allocation8 + $0x1b0c] ss:$24 sps:$4 sm:$0xff]   ;;  %v14424_v32 = vld [vmem:[#allocation8 + $0xae0] ss:$24 sps:$4 sm:$0xff]  }
 0x3d5   :  { %8140 = vmatprep.mubr.bf16.mxu1 %v15441_v35  ;;  %v14427_v33 = vld [vmem:[#allocation8 + $0x1b08] ss:$24 sps:$4 sm:$0xff]  }
 0x3d7   :  { %3476 = vmatpush1.bf16.msra.mxu0 %v14334_v53  ;;  %8111 = vmatpush1.bf16.msra.mxu1 %v14337_v34  ;;  %v14432_v53 = vld [vmem:[#allocation8 + $0xb14] ss:$24 sps:$4 sm:$0xff]  }
 0x3d8   :  { %3477 = vmatprep.subr.bf16.mxu0 %v14342_v36  ;;  %8112 = vmatprep.subr.bf16.mxu1 %v14345_v37  ;;  %v14435_v34 = vld [vmem:[#allocation8 + $0x1b3c] ss:$24 sps:$4 sm:$0xff]   ;;  %v15843_v36 = vld [vmem:[#allocation2 + $0x48] sm:$0xf]  ;;  %v14433_v37 = vld [vmem:[#allocation8 + $0x1b38] ss:$24 sps:$4 sm:$0xff]  }
 0x3db   :  { %3478 = vmatpush1.bf16.msra.mxu0 %v14340_v55  ;;  %8113 = vmatpush1.bf16.msra.mxu1 %v14343_v30  ;;  %v14438_v55 = vld [vmem:[#allocation8 + $0xb44] ss:$24 sps:$4 sm:$0xff]  }
 0x3dc   :  { %3479 = vmatprep.subr.bf16.mxu0 %v14348_v54  ;;  %8114 = vmatprep.subr.bf16.mxu1 %v14351_v52  ;;  %v14441_v30 = vld [vmem:[#allocation8 + $0x1b6c] ss:$24 sps:$4 sm:$0xff]   ;;  %v14436_v54 = vld [vmem:[#allocation8 + $0xb40] ss:$24 sps:$4 sm:$0xff]  }
 0x3dd   :  { %v14439_v52 = vld [vmem:[#allocation8 + $0x1b68] ss:$24 sps:$4 sm:$0xff]  }
 0x3df   :  { %3480 = vmatpush1.bf16.msra.mxu0 %v14346_v38  ;;  %8115 = vmatpush1.bf16.msra.mxu1 %v14349_v39  ;;  %v14444_v38 = vld [vmem:[#allocation8 + $0xb74] ss:$24 sps:$4 sm:$0xff]  }
 0x3e0   :  { %3481 = vmatprep.subr.bf16.mxu0 %v14354_v40  ;;  %8116 = vmatprep.subr.bf16.mxu1 %v14357_v41  ;;  %v14447_v39 = vld [vmem:[#allocation8 + $0x1b9c] ss:$24 sps:$4 sm:$0xff]   ;;  %v14442_v40 = vld [vmem:[#allocation8 + $0xb70] ss:$24 sps:$4 sm:$0xff]  }
 0x3e1   :  { %v14445_v41 = vld [vmem:[#allocation8 + $0x1b98] ss:$24 sps:$4 sm:$0xff]  }
 0x3e3   :  { %3482 = vmatpush1.bf16.msra.mxu0 %v14352_v43  ;;  %8117 = vmatpush1.bf16.msra.mxu1 %v14355_v44  ;;  %v14450_v43 = vld [vmem:[#allocation8 + $0xba4] ss:$24 sps:$4 sm:$0xff]  }
 0x3e4   :  { %3483 = vmatprep.subr.bf16.mxu0 %v14360_v45  ;;  %8118 = vmatprep.subr.bf16.mxu1 %v14363_v46  ;;  %v14453_v44 = vld [vmem:[#allocation8 + $0x1bcc] ss:$24 sps:$4 sm:$0xff]   ;;  %v14448_v45 = vld [vmem:[#allocation8 + $0xba0] ss:$24 sps:$4 sm:$0xff]  }
 0x3e5   :  { %v14451_v46 = vld [vmem:[#allocation8 + $0x1bc8] ss:$24 sps:$4 sm:$0xff]  }
 0x3e7   :  { %3484 = vmatpush1.bf16.msra.mxu0 %v14358_v47  ;;  %8119 = vmatpush1.bf16.msra.mxu1 %v14361_v48  ;;  %v14456_v47 = vld [vmem:[#allocation8 + $0xbd4] ss:$24 sps:$4 sm:$0xff]  }
 0x3e8   :  { %3510 = vmatprep.subr.bf16.mxu0 %v14366_v50  ;;  %8120 = vmatprep.subr.bf16.mxu1 %v14369_v28  ;;  %v14459_v48 = vld [vmem:[#allocation8 + $0x1bfc] ss:$24 sps:$4 sm:$0xff]   ;;  %v14454_v50 = vld [vmem:[#allocation8 + $0xbd0] ss:$24 sps:$4 sm:$0xff]  }
 0x3e9   :  { %v14457_v28 = vld [vmem:[#allocation8 + $0x1bf8] ss:$24 sps:$4 sm:$0xff]  }
 0x3ea   :  { %3502 = vmatmul.mubr.bf16.vlgmr.msra.gmra.mrb[56].mxu0 %v15831_v27 }
 0x3eb   :  { %3511 = vmatpush1.bf16.msra.mxu0 %v14364_v56  ;;  %8121 = vmatpush1.bf16.msra.mxu1 %v14367_v42  ;;  %v14462_v56 = vld [vmem:[#allocation8 + $0xa8c] ss:$24 sps:$4 sm:$0xff]  }
 0x3ec   :  { %3512 = vmatprep.subr.bf16.mxu0 %v14372_v58  ;;  %8122 = vmatprep.subr.bf16.mxu1 %v14375_v59  ;;  %v14465_v42 = vld [vmem:[#allocation8 + $0x1c2c] ss:$24 sps:$4 sm:$0xff]   ;;  %v14460_v58 = vld [vmem:[#allocation8 + $0xa88] ss:$24 sps:$4 sm:$0xff]  }
 0x3ed   :  { %3542 = vmatprep.mubr.bf16.mxu0 %v15441_v35  ;;  %v14463_v59 = vld [vmem:[#allocation8 + $0x1c28] ss:$24 sps:$4 sm:$0xff]  }
 0x3ef   :  { %3513 = vmatpush1.bf16.msra.mxu0 %v14370_v60  ;;  %8123 = vmatpush1.bf16.msra.mxu1 %v14373_v61  ;;  %v14468_v60 = vld [vmem:[#allocation8 + $0xabc] ss:$24 sps:$4 sm:$0xff]  }
 0x3f0   :  { %3514 = vmatprep.subr.bf16.mxu0 %v14378_v62  ;;  %8444 = vmatprep.subr.bf16.mxu1 %v14381_v63  ;;  %v14471_v61 = vld [vmem:[#allocation8 + $0x1c5c] ss:$24 sps:$4 sm:$0xff]   ;;  %v14466_v63 = vld [vmem:[#allocation8 + $0xab8] ss:$24 sps:$4 sm:$0xff]  }
 0x3f1   :  { %v15847_v62 = vld [vmem:[#allocation2 + $0x1c] sm:$0xf] }
 0x3f2   :  { %8141 = vmatmul.mubr.bf16.vlgmr.msra.gmra.mrb[0].mxu1 %v15827_v2  ;;  %v14394_v2 = vld [vmem:[#allocation8 + $0xa00] ss:$24 sps:$4 sm:$0xff]  }
 0x3f3   :  { %3515 = vmatpush1.bf16.msra.mxu0 %v14376_v0  ;;  %8445 = vmatpush1.bf16.msra.mxu1 %v14379_v51  ;;  %v14469_v0 = vld [vmem:[#allocation8 + $0x1c58] ss:$24 sps:$4 sm:$0xff]   ;;  %v14474_v51 = vld [vmem:[#allocation8 + $0xaec] ss:$24 sps:$4 sm:$0xff]  }
 0x3f4   :  { %3516 = vmatprep.subr.bf16.mxu0 %v14384_v19  ;;  %8446 = vmatprep.subr.bf16.mxu1 %v14387_v3  ;;  %v14477_v19 = vld [vmem:[#allocation8 + $0x1b14] ss:$24 sps:$4 sm:$0xff]   ;;  %v14472_v3 = vld [vmem:[#allocation8 + $0xae8] ss:$24 sps:$4 sm:$0xff]  }
 0x3f5   :  { %8476 = vmatprep.mubr.bf16.mxu1 %v15441_v35 }
 0x3f7   :  { %3517 = vmatpush1.bf16.msra.mxu0 %v14382_v57  ;;  %8447 = vmatpush1.bf16.msra.mxu1 %v14385_v4  ;;  %v14475_v57 = vld [vmem:[#allocation8 + $0x1b10] ss:$24 sps:$4 sm:$0xff]   ;;  %v14480_v4 = vld [vmem:[#allocation8 + $0xb1c] ss:$24 sps:$4 sm:$0xff]  }
 0x3f8   :  { %3518 = vmatprep.subr.bf16.mxu0 %v14390_v5  ;;  %8448 = vmatprep.subr.bf16.mxu1 %v14393_v6  ;;  %v14483_v5 = vld [vmem:[#allocation8 + $0x1b44] ss:$24 sps:$4 sm:$0xff]   ;;  %v14478_v6 = vld [vmem:[#allocation8 + $0xb18] ss:$24 sps:$4 sm:$0xff]  }
 0x3fb   :  { %3519 = vmatpush1.bf16.msra.mxu0 %v14388_v7  ;;  %8449 = vmatpush1.bf16.msra.mxu1 %v14391_v8  ;;  %v14481_v7 = vld [vmem:[#allocation8 + $0x1b40] ss:$24 sps:$4 sm:$0xff]   ;;  %v14486_v8 = vld [vmem:[#allocation8 + $0xb4c] ss:$24 sps:$4 sm:$0xff]  }
 0x3fc   :  { %3520 = vmatprep.subr.bf16.mxu0 %v14396_v9  ;;  %8450 = vmatprep.subr.bf16.mxu1 %v14399_v10  ;;  %v14489_v9 = vld [vmem:[#allocation8 + $0x1b74] ss:$24 sps:$4 sm:$0xff]   ;;  %v14484_v10 = vld [vmem:[#allocation8 + $0xb48] ss:$24 sps:$4 sm:$0xff]  }
 0x3ff   :  { %3521 = vmatpush1.bf16.msra.mxu0 %v14394_v2  ;;  %8451 = vmatpush1.bf16.msra.mxu1 %v14397_v11  ;;  %v14487_v2 = vld [vmem:[#allocation8 + $0x1b70] ss:$24 sps:$4 sm:$0xff]   ;;  %v14492_v11 = vld [vmem:[#allocation8 + $0xb7c] ss:$24 sps:$4 sm:$0xff]  }
 0x400   :  { %3522 = vmatprep.subr.bf16.mxu0 %v14402_v12  ;;  %8452 = vmatprep.subr.bf16.mxu1 %v14405_v13  ;;  %v14495_v12 = vld [vmem:[#allocation8 + $0x1ba4] ss:$24 sps:$4 sm:$0xff]   ;;  %v14490_v13 = vld [vmem:[#allocation8 + $0xb78] ss:$24 sps:$4 sm:$0xff]  }
 0x403   :  { %3523 = vmatpush1.bf16.msra.mxu0 %v14400_v14  ;;  %8453 = vmatpush1.bf16.msra.mxu1 %v14403_v16  ;;  %v14493_v14 = vld [vmem:[#allocation8 + $0x1ba0] ss:$24 sps:$4 sm:$0xff]   ;;  %v14498_v16 = vld [vmem:[#allocation8 + $0xbac] ss:$24 sps:$4 sm:$0xff]  }
 0x404   :  { %3524 = vmatprep.subr.bf16.mxu0 %v14408_v17  ;;  %8454 = vmatprep.subr.bf16.mxu1 %v14411_v21  ;;  %v14501_v17 = vld [vmem:[#allocation8 + $0x1bd4] ss:$24 sps:$4 sm:$0xff]   ;;  %v14496_v21 = vld [vmem:[#allocation8 + $0xba8] ss:$24 sps:$4 sm:$0xff]  }
 0x407   :  { %3525 = vmatpush1.bf16.msra.mxu0 %v14406_v15  ;;  %8455 = vmatpush1.bf16.msra.mxu1 %v14409_v22  ;;  %v14499_v15 = vld [vmem:[#allocation8 + $0x1bd0] ss:$24 sps:$4 sm:$0xff]   ;;  %v14504_v22 = vld [vmem:[#allocation8 + $0xbdc] ss:$24 sps:$4 sm:$0xff]  }
 0x408   :  { %3846 = vmatprep.subr.bf16.mxu0 %v14414_v23  ;;  %8456 = vmatprep.subr.bf16.mxu1 %v14417_v24  ;;  %v14507_v23 = vld [vmem:[#allocation8 + $0x1c04] ss:$24 sps:$4 sm:$0xff]   ;;  %v14502_v24 = vld [vmem:[#allocation8 + $0xbd8] ss:$24 sps:$4 sm:$0xff]  }
 0x40a   :  { %3543 = vmatmul.mubr.bf16.vlgmr.msra.gmra.mrb[60].mxu0 %v15831_v27  ;;  %v14430_v27 = vld [vmem:[#allocation8 + $0xb10] ss:$24 sps:$4 sm:$0xff]  }
 0x40b   :  { %3847 = vmatpush1.bf16.msra.mxu0 %v14412_v25  ;;  %8457 = vmatpush1.bf16.msra.mxu1 %v14415_v26  ;;  %v14505_v25 = vld [vmem:[#allocation8 + $0x1c00] ss:$24 sps:$4 sm:$0xff]   ;;  %v14510_v26 = vld [vmem:[#allocation8 + $0xa94] ss:$24 sps:$4 sm:$0xff]  }
 0x40c   :  { %3848 = vmatprep.subr.bf16.mxu0 %v14420_v1  ;;  %8458 = vmatprep.subr.bf16.mxu1 %v14423_v29  ;;  %v14513_v1 = vld [vmem:[#allocation8 + $0x1c34] ss:$24 sps:$4 sm:$0xff]   ;;  %v14508_v29 = vld [vmem:[#allocation8 + $0xa90] ss:$24 sps:$4 sm:$0xff]  }
 0x40d   :  { %3878 = vmatprep.mubr.bf16.mxu0 %v15441_v35 }
 0x40f   :  { %3849 = vmatpush1.bf16.msra.mxu0 %v14418_v20  ;;  %8459 = vmatpush1.bf16.msra.mxu1 %v14421_v31  ;;  %v14511_v20 = vld [vmem:[#allocation8 + $0x1c30] ss:$24 sps:$4 sm:$0xff]   ;;  %v14516_v31 = vld [vmem:[#allocation8 + $0xac4] ss:$24 sps:$4 sm:$0xff]  }
 0x410   :  { %3850 = vmatprep.subr.bf16.mxu0 %v14426_v49  ;;  %8485 = vmatprep.subr.bf16.mxu1 %v14429_v18  ;;  %v14519_v49 = vld [vmem:[#allocation8 + $0x1c64] ss:$24 sps:$4 sm:$0xff]   ;;  %v14514_v18 = vld [vmem:[#allocation8 + $0xac0] ss:$24 sps:$4 sm:$0xff]  }
 0x412   :  { %8477 = vmatmul.mubr.bf16.vlgmr.msra.gmra.mrb[4].mxu1 %v15843_v36 }
 0x413   :  { %3851 = vmatpush1.bf16.msra.mxu0 %v14424_v32  ;;  %8486 = vmatpush1.bf16.msra.mxu1 %v14427_v33  ;;  %v14517_v32 = vld [vmem:[#allocation8 + $0x1c60] ss:$24 sps:$4 sm:$0xff]   ;;  %v14522_v33 = vld [vmem:[#allocation8 + $0xaf4] ss:$24 sps:$4 sm:$0xff]  }
 0x414   :  { %3852 = vmatprep.subr.bf16.mxu0 %v14432_v53  ;;  %8487 = vmatprep.subr.bf16.mxu1 %v14435_v34  ;;  %v14525_v53 = vld [vmem:[#allocation8 + $0x1c84] ss:$24 sps:$4 sm:$0xff]   ;;  %v14520_v34 = vld [vmem:[#allocation8 + $0xaf0] ss:$24 sps:$4 sm:$0xff]  }
 0x415   :  { %8517 = vmatprep.mubr.bf16.mxu1 %v15441_v35 }
 0x417   :  { %3853 = vmatpush1.bf16.msra.mxu0 %v14430_v27  ;;  %8488 = vmatpush1.bf16.msra.mxu1 %v14433_v37  ;;  %v14523_v27 = vld [vmem:[#allocation8 + $0x1c80] ss:$24 sps:$4 sm:$0xff]   ;;  %v14528_v37 = vld [vmem:[#allocation8 + $0xb24] ss:$24 sps:$4 sm:$0xff]  }
 0x418   :  { %3854 = vmatprep.subr.bf16.mxu0 %v14438_v55  ;;  %8489 = vmatprep.subr.bf16.mxu1 %v14441_v30  ;;  %v14531_v55 = vld [vmem:[#allocation8 + $0x1cb4] ss:$24 sps:$4 sm:$0xff]   ;;  %v14526_v30 = vld [vmem:[#allocation8 + $0xb20] ss:$24 sps:$4 sm:$0xff]  }
 0x41b   :  { %3855 = vmatpush1.bf16.msra.mxu0 %v14436_v54  ;;  %8490 = vmatpush1.bf16.msra.mxu1 %v14439_v52  ;;  %v14529_v54 = vld [vmem:[#allocation8 + $0x1cb0] ss:$24 sps:$4 sm:$0xff]   ;;  %v14534_v52 = vld [vmem:[#allocation8 + $0xb54] ss:$24 sps:$4 sm:$0xff]  }
 0x41c   :  { %3856 = vmatprep.subr.bf16.mxu0 %v14444_v38  ;;  %8491 = vmatprep.subr.bf16.mxu1 %v14447_v39  ;;  %v14537_v38 = vld [vmem:[#allocation8 + $0x1ce4] ss:$24 sps:$4 sm:$0xff]   ;;  %v14532_v39 = vld [vmem:[#allocation8 + $0xb50] ss:$24 sps:$4 sm:$0xff]  }
 0x41f   :  { %3857 = vmatpush1.bf16.msra.mxu0 %v14442_v40  ;;  %8492 = vmatpush1.bf16.msra.mxu1 %v14445_v41  ;;  %v14535_v40 = vld [vmem:[#allocation8 + $0x1ce0] ss:$24 sps:$4 sm:$0xff]   ;;  %v14540_v41 = vld [vmem:[#allocation8 + $0xb84] ss:$24 sps:$4 sm:$0xff]  }
 0x420   :  { %3858 = vmatprep.subr.bf16.mxu0 %v14450_v43  ;;  %8493 = vmatprep.subr.bf16.mxu1 %v14453_v44  ;;  %v14543_v43 = vld [vmem:[#allocation8 + $0x1d14] ss:$24 sps:$4 sm:$0xff]   ;;  %v14541_v44 = vld [vmem:[#allocation8 + $0x1d10] ss:$24 sps:$4 sm:$0xff]  }
 0x423   :  { %3859 = vmatpush1.bf16.msra.mxu0 %v14448_v45  ;;  %8494 = vmatpush1.bf16.msra.mxu1 %v14451_v46  ;;  %v14546_v45 = vld [vmem:[#allocation8 + $0xbb4] ss:$24 sps:$4 sm:$0xff]   ;;  %v14549_v46 = vld [vmem:[#allocation8 + $0x1d44] ss:$24 sps:$4 sm:$0xff]  }
 0x424   :  { %3860 = vmatprep.subr.bf16.mxu0 %v14456_v47  ;;  %8495 = vmatprep.subr.bf16.mxu1 %v14459_v48  ;;  %v14544_v47 = vld [vmem:[#allocation8 + $0xbb0] ss:$24 sps:$4 sm:$0xff]   ;;  %v14547_v48 = vld [vmem:[#allocation8 + $0x1d40] ss:$24 sps:$4 sm:$0xff]  }
 0x427   :  { %3861 = vmatpush1.bf16.msra.mxu0 %v14454_v50  ;;  %8496 = vmatpush1.bf16.msra.mxu1 %v14457_v28  ;;  %v14552_v50 = vld [vmem:[#allocation8 + $0xbe4] ss:$24 sps:$4 sm:$0xff]   ;;  %v14555_v28 = vld [vmem:[#allocation8 + $0x1d74] ss:$24 sps:$4 sm:$0xff]  }
 0x428   :  { %3887 = vmatprep.subr.bf16.mxu0 %v14462_v56  ;;  %8497 = vmatprep.subr.bf16.mxu1 %v14465_v42  ;;  %v14550_v56 = vld [vmem:[#allocation8 + $0xbe0] ss:$24 sps:$4 sm:$0xff]   ;;  %v14553_v42 = vld [vmem:[#allocation8 + $0x1d70] ss:$24 sps:$4 sm:$0xff]  }
 0x42a   :  { %3879 = vmatmul.mubr.bf16.vlgmr.msra.gmra.mrb[52].mxu0 %v15847_v62 }
 0x42b   :  { %3888 = vmatpush1.bf16.msra.mxu0 %v14460_v58  ;;  %8498 = vmatpush1.bf16.msra.mxu1 %v14463_v59  ;;  %v14558_v58 = vld [vmem:[#allocation8 + $0xc04] ss:$24 sps:$4 sm:$0xff]  }
 0x42c   :  { %3889 = vmatprep.subr.bf16.mxu0 %v14468_v60  ;;  %8499 = vmatprep.subr.bf16.mxu1 %v14471_v61  ;;  %v14561_v59 = vld [vmem:[#allocation8 + $0x1da4] ss:$24 sps:$4 sm:$0xff]   ;;  %v14556_v60 = vld [vmem:[#allocation8 + $0xc00] ss:$24 sps:$4 sm:$0xff]  }
 0x42d   :  { %3919 = vmatprep.mubr.bf16.mxu0 %v15441_v35  ;;  %v14559_v61 = vld [vmem:[#allocation8 + $0x1da0] ss:$24 sps:$4 sm:$0xff]  }
 0x42f   :  { %3890 = vmatpush1.bf16.msra.mxu0 %v14466_v63  ;;  %8500 = vmatpush1.bf16.msra.mxu1 %v14469_v0  ;;  %v14564_v63 = vld [vmem:[#allocation8 + $0xc34] ss:$24 sps:$4 sm:$0xff]  }
 0x430   :  { %3891 = vmatprep.subr.bf16.mxu0 %v14474_v51  ;;  %8526 = vmatprep.subr.bf16.mxu1 %v14477_v19  ;;  %v14567_v0 = vld [vmem:[#allocation8 + $0x1dd4] ss:$24 sps:$4 sm:$0xff]   ;;  %v14562_v51 = vld [vmem:[#allocation8 + $0xc30] ss:$24 sps:$4 sm:$0xff]  }
 0x431   :  { %v14565_v19 = vld [vmem:[#allocation8 + $0x1dd0] ss:$24 sps:$4 sm:$0xff]  }
 0x432   :  { %8518 = vmatmul.mubr.bf16.vlgmr.msra.gmra.mrb[8].mxu1 %v15843_v36 }
 0x433   :  { %3892 = vmatpush1.bf16.msra.mxu0 %v14472_v3  ;;  %8527 = vmatpush1.bf16.msra.mxu1 %v14475_v57  ;;  %v14570_v3 = vld [vmem:[#allocation8 + $0xc64] ss:$24 sps:$4 sm:$0xff]  }
 0x434   :  { %3893 = vmatprep.subr.bf16.mxu0 %v14480_v4  ;;  %8528 = vmatprep.subr.bf16.mxu1 %v14483_v5  ;;  %v14573_v57 = vld [vmem:[#allocation8 + $0x1c8c] ss:$24 sps:$4 sm:$0xff]   ;;  %v14568_v4 = vld [vmem:[#allocation8 + $0xc60] ss:$24 sps:$4 sm:$0xff]  }
 0x435   :  { %8558 = vmatprep.mubr.bf16.mxu1 %v15441_v35  ;;  %v14571_v5 = vld [vmem:[#allocation8 + $0x1c88] ss:$24 sps:$4 sm:$0xff]  }
 0x437   :  { %3894 = vmatpush1.bf16.msra.mxu0 %v14478_v6  ;;  %8529 = vmatpush1.bf16.msra.mxu1 %v14481_v7  ;;  %v14576_v6 = vld [vmem:[#allocation8 + $0xc94] ss:$24 sps:$4 sm:$0xff]  }
 0x438   :  { %3895 = vmatprep.subr.bf16.mxu0 %v14486_v8  ;;  %8530 = vmatprep.subr.bf16.mxu1 %v14489_v9  ;;  %v14579_v7 = vld [vmem:[#allocation8 + $0x1cbc] ss:$24 sps:$4 sm:$0xff]   ;;  %v15859_v8 = vld [vmem:[#allocation2 + $0x4c] sm:$0xf]  ;;  %v14577_v9 = vld [vmem:[#allocation8 + $0x1cb8] ss:$24 sps:$4 sm:$0xff]  }
 0x43b   :  { %3896 = vmatpush1.bf16.msra.mxu0 %v14484_v10  ;;  %8531 = vmatpush1.bf16.msra.mxu1 %v14487_v2  ;;  %v14582_v10 = vld [vmem:[#allocation8 + $0xcc4] ss:$24 sps:$4 sm:$0xff]  }
 0x43c   :  { %3897 = vmatprep.subr.bf16.mxu0 %v14492_v11  ;;  %8532 = vmatprep.subr.bf16.mxu1 %v14495_v12  ;;  %v14585_v2 = vld [vmem:[#allocation8 + $0x1cec] ss:$24 sps:$4 sm:$0xff]   ;;  %v14580_v11 = vld [vmem:[#allocation8 + $0xcc0] ss:$24 sps:$4 sm:$0xff]  }
 0x43d   :  { %v14583_v12 = vld [vmem:[#allocation8 + $0x1ce8] ss:$24 sps:$4 sm:$0xff]  }
 0x43f   :  { %3898 = vmatpush1.bf16.msra.mxu0 %v14490_v13  ;;  %8533 = vmatpush1.bf16.msra.mxu1 %v14493_v14  ;;  %v14588_v13 = vld [vmem:[#allocation8 + $0xcf4] ss:$24 sps:$4 sm:$0xff]  }
 0x440   :  { %3899 = vmatprep.subr.bf16.mxu0 %v14498_v16  ;;  %8534 = vmatprep.subr.bf16.mxu1 %v14501_v17  ;;  %v14591_v14 = vld [vmem:[#allocation8 + $0x1d1c] ss:$24 sps:$4 sm:$0xff]   ;;  %v14586_v16 = vld [vmem:[#allocation8 + $0xcf0] ss:$24 sps:$4 sm:$0xff]  }
 0x441   :  { %v14589_v17 = vld [vmem:[#allocation8 + $0x1d18] ss:$24 sps:$4 sm:$0xff]  }
 0x443   :  { %3900 = vmatpush1.bf16.msra.mxu0 %v14496_v21  ;;  %8535 = vmatpush1.bf16.msra.mxu1 %v14499_v15  ;;  %v14594_v21 = vld [vmem:[#allocation8 + $0xd24] ss:$24 sps:$4 sm:$0xff]  }
 0x444   :  { %3901 = vmatprep.subr.bf16.mxu0 %v14504_v22  ;;  %8536 = vmatprep.subr.bf16.mxu1 %v14507_v23  ;;  %v14597_v15 = vld [vmem:[#allocation8 + $0x1d4c] ss:$24 sps:$4 sm:$0xff]   ;;  %v14592_v22 = vld [vmem:[#allocation8 + $0xd20] ss:$24 sps:$4 sm:$0xff]  }
 0x445   :  { %v14595_v23 = vld [vmem:[#allocation8 + $0x1d48] ss:$24 sps:$4 sm:$0xff]  }
 0x447   :  { %3902 = vmatpush1.bf16.msra.mxu0 %v14502_v24  ;;  %8537 = vmatpush1.bf16.msra.mxu1 %v14505_v25  ;;  %v14600_v24 = vld [vmem:[#allocation8 + $0xd54] ss:$24 sps:$4 sm:$0xff]  }
 0x448   :  { %3928 = vmatprep.subr.bf16.mxu0 %v14510_v26  ;;  %8538 = vmatprep.subr.bf16.mxu1 %v14513_v1  ;;  %v14603_v25 = vld [vmem:[#allocation8 + $0x1d7c] ss:$24 sps:$4 sm:$0xff]   ;;  %v14598_v26 = vld [vmem:[#allocation8 + $0xd50] ss:$24 sps:$4 sm:$0xff]  }
 0x449   :  { %v14601_v1 = vld [vmem:[#allocation8 + $0x1d78] ss:$24 sps:$4 sm:$0xff]  }
 0x44a   :  { %3920 = vmatmul.mubr.bf16.vlgmr.msra.gmra.mrb[56].mxu0 %v15847_v62 }
 0x44b   :  { %3929 = vmatpush1.bf16.msra.mxu0 %v14508_v29  ;;  %8539 = vmatpush1.bf16.msra.mxu1 %v14511_v20  ;;  %v14606_v29 = vld [vmem:[#allocation8 + $0xc0c] ss:$24 sps:$4 sm:$0xff]  }
 0x44c   :  { %3930 = vmatprep.subr.bf16.mxu0 %v14516_v31  ;;  %8540 = vmatprep.subr.bf16.mxu1 %v14519_v49  ;;  %v14609_v20 = vld [vmem:[#allocation8 + $0x1dac] ss:$24 sps:$4 sm:$0xff]   ;;  %v14604_v31 = vld [vmem:[#allocation8 + $0xc08] ss:$24 sps:$4 sm:$0xff]  }
 0x44d   :  { %3960 = vmatprep.mubr.bf16.mxu0 %v15441_v35  ;;  %v14607_v49 = vld [vmem:[#allocation8 + $0x1da8] ss:$24 sps:$4 sm:$0xff]  }
 0x44f   :  { %3931 = vmatpush1.bf16.msra.mxu0 %v14514_v18  ;;  %8541 = vmatpush1.bf16.msra.mxu1 %v14517_v32  ;;  %v14612_v18 = vld [vmem:[#allocation8 + $0xc3c] ss:$24 sps:$4 sm:$0xff]  }
 0x450   :  { %3932 = vmatprep.subr.bf16.mxu0 %v14522_v33  ;;  %8862 = vmatprep.subr.bf16.mxu1 %v14525_v53  ;;  %v14615_v32 = vld [vmem:[#allocation8 + $0x1ddc] ss:$24 sps:$4 sm:$0xff]   ;;  %v15863_v33 = vld [vmem:[#allocation2 + $0x20] sm:$0xf] }
 0x451   :  { %v14610_v53 = vld [vmem:[#allocation8 + $0xc38] ss:$24 sps:$4 sm:$0xff]  }
 0x452   :  { %8559 = vmatmul.mubr.bf16.vlgmr.msra.gmra.mrb[0].mxu1 %v15843_v36  ;;  %v14538_v36 = vld [vmem:[#allocation8 + $0xb80] ss:$24 sps:$4 sm:$0xff]  }
 0x453   :  { %3933 = vmatpush1.bf16.msra.mxu0 %v14520_v34  ;;  %8863 = vmatpush1.bf16.msra.mxu1 %v14523_v27  ;;  %v14613_v34 = vld [vmem:[#allocation8 + $0x1dd8] ss:$24 sps:$4 sm:$0xff]   ;;  %v14618_v27 = vld [vmem:[#allocation8 + $0xc6c] ss:$24 sps:$4 sm:$0xff]  }
 0x454   :  { %3934 = vmatprep.subr.bf16.mxu0 %v14528_v37  ;;  %8864 = vmatprep.subr.bf16.mxu1 %v14531_v55  ;;  %v14621_v37 = vld [vmem:[#allocation8 + $0x1c94] ss:$24 sps:$4 sm:$0xff]   ;;  %v14616_v55 = vld [vmem:[#allocation8 + $0xc68] ss:$24 sps:$4 sm:$0xff]  }
 0x455   :  { %8894 = vmatprep.mubr.bf16.mxu1 %v15441_v35 }
 0x457   :  { %3935 = vmatpush1.bf16.msra.mxu0 %v14526_v30  ;;  %8865 = vmatpush1.bf16.msra.mxu1 %v14529_v54  ;;  %v14619_v30 = vld [vmem:[#allocation8 + $0x1c90] ss:$24 sps:$4 sm:$0xff]   ;;  %v14624_v54 = vld [vmem:[#allocation8 + $0xc9c] ss:$24 sps:$4 sm:$0xff]  }
 0x458   :  { %3936 = vmatprep.subr.bf16.mxu0 %v14534_v52  ;;  %8866 = vmatprep.subr.bf16.mxu1 %v14537_v38  ;;  %v14627_v52 = vld [vmem:[#allocation8 + $0x1cc4] ss:$24 sps:$4 sm:$0xff]   ;;  %v14622_v38 = vld [vmem:[#allocation8 + $0xc98] ss:$24 sps:$4 sm:$0xff]  }
 0x45b   :  { %3937 = vmatpush1.bf16.msra.mxu0 %v14532_v39  ;;  %8867 = vmatpush1.bf16.msra.mxu1 %v14535_v40  ;;  %v14625_v39 = vld [vmem:[#allocation8 + $0x1cc0] ss:$24 sps:$4 sm:$0xff]   ;;  %v14630_v40 = vld [vmem:[#allocation8 + $0xccc] ss:$24 sps:$4 sm:$0xff]  }
 0x45c   :  { %3938 = vmatprep.subr.bf16.mxu0 %v14540_v41  ;;  %8868 = vmatprep.subr.bf16.mxu1 %v14543_v43  ;;  %v14633_v41 = vld [vmem:[#allocation8 + $0x1cf4] ss:$24 sps:$4 sm:$0xff]   ;;  %v14628_v43 = vld [vmem:[#allocation8 + $0xcc8] ss:$24 sps:$4 sm:$0xff]  }
 0x45f   :  { %3939 = vmatpush1.bf16.msra.mxu0 %v14538_v36  ;;  %8869 = vmatpush1.bf16.msra.mxu1 %v14541_v44  ;;  %v14631_v36 = vld [vmem:[#allocation8 + $0x1cf0] ss:$24 sps:$4 sm:$0xff]   ;;  %v14636_v44 = vld [vmem:[#allocation8 + $0xcfc] ss:$24 sps:$4 sm:$0xff]  }
 0x460   :  { %3940 = vmatprep.subr.bf16.mxu0 %v14546_v45  ;;  %8870 = vmatprep.subr.bf16.mxu1 %v14549_v46  ;;  %v14639_v45 = vld [vmem:[#allocation8 + $0x1d24] ss:$24 sps:$4 sm:$0xff]   ;;  %v14634_v46 = vld [vmem:[#allocation8 + $0xcf8] ss:$24 sps:$4 sm:$0xff]  }
 0x463   :  { %3941 = vmatpush1.bf16.msra.mxu0 %v14544_v47  ;;  %8871 = vmatpush1.bf16.msra.mxu1 %v14547_v48  ;;  %v14637_v47 = vld [vmem:[#allocation8 + $0x1d20] ss:$24 sps:$4 sm:$0xff]   ;;  %v14642_v48 = vld [vmem:[#allocation8 + $0xd2c] ss:$24 sps:$4 sm:$0xff]  }
 0x464   :  { %3942 = vmatprep.subr.bf16.mxu0 %v14552_v50  ;;  %8872 = vmatprep.subr.bf16.mxu1 %v14555_v28  ;;  %v14645_v50 = vld [vmem:[#allocation8 + $0x1d54] ss:$24 sps:$4 sm:$0xff]   ;;  %v14640_v28 = vld [vmem:[#allocation8 + $0xd28] ss:$24 sps:$4 sm:$0xff]  }
 0x467   :  { %3943 = vmatpush1.bf16.msra.mxu0 %v14550_v56  ;;  %8873 = vmatpush1.bf16.msra.mxu1 %v14553_v42  ;;  %v14643_v56 = vld [vmem:[#allocation8 + $0x1d50] ss:$24 sps:$4 sm:$0xff]   ;;  %v14648_v42 = vld [vmem:[#allocation8 + $0xd5c] ss:$24 sps:$4 sm:$0xff]  }
 0x468   :  { %4264 = vmatprep.subr.bf16.mxu0 %v14558_v58  ;;  %8874 = vmatprep.subr.bf16.mxu1 %v14561_v59  ;;  %v14651_v58 = vld [vmem:[#allocation8 + $0x1d84] ss:$24 sps:$4 sm:$0xff]   ;;  %v14646_v59 = vld [vmem:[#allocation8 + $0xd58] ss:$24 sps:$4 sm:$0xff]  }
 0x46a   :  { %3961 = vmatmul.mubr.bf16.vlgmr.msra.gmra.mrb[60].mxu0 %v15847_v62  ;;  %v14574_v62 = vld [vmem:[#allocation8 + $0xc90] ss:$24 sps:$4 sm:$0xff]  }
 0x46b   :  { %4265 = vmatpush1.bf16.msra.mxu0 %v14556_v60  ;;  %8875 = vmatpush1.bf16.msra.mxu1 %v14559_v61  ;;  %v14649_v60 = vld [vmem:[#allocation8 + $0x1d80] ss:$24 sps:$4 sm:$0xff]   ;;  %v14654_v61 = vld [vmem:[#allocation8 + $0xc14] ss:$24 sps:$4 sm:$0xff]  }
 0x46c   :  { %4266 = vmatprep.subr.bf16.mxu0 %v14564_v63  ;;  %8876 = vmatprep.subr.bf16.mxu1 %v14567_v0  ;;  %v14657_v63 = vld [vmem:[#allocation8 + $0x1db4] ss:$24 sps:$4 sm:$0xff]   ;;  %v14652_v0 = vld [vmem:[#allocation8 + $0xc10] ss:$24 sps:$4 sm:$0xff]  }
 0x46d   :  { %4296 = vmatprep.mubr.bf16.mxu0 %v15441_v35 }
 0x46f   :  { %4267 = vmatpush1.bf16.msra.mxu0 %v14562_v51  ;;  %8877 = vmatpush1.bf16.msra.mxu1 %v14565_v19  ;;  %v14655_v51 = vld [vmem:[#allocation8 + $0x1db0] ss:$24 sps:$4 sm:$0xff]   ;;  %v14660_v19 = vld [vmem:[#allocation8 + $0xc44] ss:$24 sps:$4 sm:$0xff]  }
 0x470   :  { %4268 = vmatprep.subr.bf16.mxu0 %v14570_v3  ;;  %8903 = vmatprep.subr.bf16.mxu1 %v14573_v57  ;;  %v14663_v3 = vld [vmem:[#allocation8 + $0x1de4] ss:$24 sps:$4 sm:$0xff]   ;;  %v14658_v57 = vld [vmem:[#allocation8 + $0xc40] ss:$24 sps:$4 sm:$0xff]  }
 0x472   :  { %8895 = vmatmul.mubr.bf16.vlgmr.msra.gmra.mrb[4].mxu1 %v15859_v8 }
 0x473   :  { %4269 = vmatpush1.bf16.msra.mxu0 %v14568_v4  ;;  %8904 = vmatpush1.bf16.msra.mxu1 %v14571_v5  ;;  %v14661_v4 = vld [vmem:[#allocation8 + $0x1de0] ss:$24 sps:$4 sm:$0xff]   ;;  %v14666_v5 = vld [vmem:[#allocation8 + $0xc74] ss:$24 sps:$4 sm:$0xff]  }
 0x474   :  { %4270 = vmatprep.subr.bf16.mxu0 %v14576_v6  ;;  %8905 = vmatprep.subr.bf16.mxu1 %v14579_v7  ;;  %v14669_v6 = vld [vmem:[#allocation8 + $0x1e04] ss:$24 sps:$4 sm:$0xff]   ;;  %v14664_v7 = vld [vmem:[#allocation8 + $0xc70] ss:$24 sps:$4 sm:$0xff]  }
 0x475   :  { %8935 = vmatprep.mubr.bf16.mxu1 %v15441_v35 }
 0x477   :  { %4271 = vmatpush1.bf16.msra.mxu0 %v14574_v62  ;;  %8906 = vmatpush1.bf16.msra.mxu1 %v14577_v9  ;;  %v14667_v62 = vld [vmem:[#allocation8 + $0x1e00] ss:$24 sps:$4 sm:$0xff]   ;;  %v14672_v9 = vld [vmem:[#allocation8 + $0xca4] ss:$24 sps:$4 sm:$0xff]  }
 0x478   :  { %4272 = vmatprep.subr.bf16.mxu0 %v14582_v10  ;;  %8907 = vmatprep.subr.bf16.mxu1 %v14585_v2  ;;  %v14675_v10 = vld [vmem:[#allocation8 + $0x1e34] ss:$24 sps:$4 sm:$0xff]   ;;  %v14670_v2 = vld [vmem:[#allocation8 + $0xca0] ss:$24 sps:$4 sm:$0xff]  }
 0x47b   :  { %4273 = vmatpush1.bf16.msra.mxu0 %v14580_v11  ;;  %8908 = vmatpush1.bf16.msra.mxu1 %v14583_v12  ;;  %v14673_v11 = vld [vmem:[#allocation8 + $0x1e30] ss:$24 sps:$4 sm:$0xff]   ;;  %v14678_v12 = vld [vmem:[#allocation8 + $0xcd4] ss:$24 sps:$4 sm:$0xff]  }
 0x47c   :  { %4274 = vmatprep.subr.bf16.mxu0 %v14588_v13  ;;  %8909 = vmatprep.subr.bf16.mxu1 %v14591_v14  ;;  %v14681_v13 = vld [vmem:[#allocation8 + $0x1e64] ss:$24 sps:$4 sm:$0xff]   ;;  %v14676_v14 = vld [vmem:[#allocation8 + $0xcd0] ss:$24 sps:$4 sm:$0xff]  }
 0x47f   :  { %4275 = vmatpush1.bf16.msra.mxu0 %v14586_v16  ;;  %8910 = vmatpush1.bf16.msra.mxu1 %v14589_v17  ;;  %v14679_v16 = vld [vmem:[#allocation8 + $0x1e60] ss:$24 sps:$4 sm:$0xff]   ;;  %v14684_v17 = vld [vmem:[#allocation8 + $0xd04] ss:$24 sps:$4 sm:$0xff]  }
 0x480   :  { %4276 = vmatprep.subr.bf16.mxu0 %v14594_v21  ;;  %8911 = vmatprep.subr.bf16.mxu1 %v14597_v15  ;;  %v14687_v21 = vld [vmem:[#allocation8 + $0x1e94] ss:$24 sps:$4 sm:$0xff]   ;;  %v14685_v15 = vld [vmem:[#allocation8 + $0x1e90] ss:$24 sps:$4 sm:$0xff]  }
 0x483   :  { %4277 = vmatpush1.bf16.msra.mxu0 %v14592_v22  ;;  %8912 = vmatpush1.bf16.msra.mxu1 %v14595_v23  ;;  %v14690_v22 = vld [vmem:[#allocation8 + $0xd34] ss:$24 sps:$4 sm:$0xff]   ;;  %v14693_v23 = vld [vmem:[#allocation8 + $0x1ec4] ss:$24 sps:$4 sm:$0xff]  }
 0x484   :  { %4278 = vmatprep.subr.bf16.mxu0 %v14600_v24  ;;  %8913 = vmatprep.subr.bf16.mxu1 %v14603_v25  ;;  %v14688_v24 = vld [vmem:[#allocation8 + $0xd30] ss:$24 sps:$4 sm:$0xff]   ;;  %v14691_v25 = vld [vmem:[#allocation8 + $0x1ec0] ss:$24 sps:$4 sm:$0xff]  }
 0x487   :  { %4279 = vmatpush1.bf16.msra.mxu0 %v14598_v26  ;;  %8914 = vmatpush1.bf16.msra.mxu1 %v14601_v1  ;;  %v14696_v26 = vld [vmem:[#allocation8 + $0xd64] ss:$24 sps:$4 sm:$0xff]   ;;  %v14699_v1 = vld [vmem:[#allocation8 + $0x1ef4] ss:$24 sps:$4 sm:$0xff]  }
 0x488   :  { %4305 = vmatprep.subr.bf16.mxu0 %v14606_v29  ;;  %8915 = vmatprep.subr.bf16.mxu1 %v14609_v20  ;;  %v14694_v29 = vld [vmem:[#allocation8 + $0xd60] ss:$24 sps:$4 sm:$0xff]   ;;  %v14697_v20 = vld [vmem:[#allocation8 + $0x1ef0] ss:$24 sps:$4 sm:$0xff]  }
 0x48a   :  { %4297 = vmatmul.mubr.bf16.vlgmr.msra.gmra.mrb[52].mxu0 %v15863_v33 }
 0x48b   :  { %4306 = vmatpush1.bf16.msra.mxu0 %v14604_v31  ;;  %8916 = vmatpush1.bf16.msra.mxu1 %v14607_v49  ;;  %v14702_v31 = vld [vmem:[#allocation8 + $0xd84] ss:$24 sps:$4 sm:$0xff]  }
 0x48c   :  { %4307 = vmatprep.subr.bf16.mxu0 %v14612_v18  ;;  %8917 = vmatprep.subr.bf16.mxu1 %v14615_v32  ;;  %v14705_v49 = vld [vmem:[#allocation8 + $0x1f24] ss:$24 sps:$4 sm:$0xff]   ;;  %v14700_v18 = vld [vmem:[#allocation8 + $0xd80] ss:$24 sps:$4 sm:$0xff]  }
 0x48d   :  { %4337 = vmatprep.mubr.bf16.mxu0 %v15441_v35  ;;  %v14703_v32 = vld [vmem:[#allocation8 + $0x1f20] ss:$24 sps:$4 sm:$0xff]  }
 0x48f   :  { %4308 = vmatpush1.bf16.msra.mxu0 %v14610_v53  ;;  %8918 = vmatpush1.bf16.msra.mxu1 %v14613_v34  ;;  %v14708_v53 = vld [vmem:[#allocation8 + $0xdb4] ss:$24 sps:$4 sm:$0xff]  }
 0x490   :  { %4309 = vmatprep.subr.bf16.mxu0 %v14618_v27  ;;  %8944 = vmatprep.subr.bf16.mxu1 %v14621_v37  ;;  %v14711_v34 = vld [vmem:[#allocation8 + $0x1f54] ss:$24 sps:$4 sm:$0xff]   ;;  %v14706_v27 = vld [vmem:[#allocation8 + $0xdb0] ss:$24 sps:$4 sm:$0xff]  }
 0x491   :  { %v14709_v37 = vld [vmem:[#allocation8 + $0x1f50] ss:$24 sps:$4 sm:$0xff]  }
 0x492   :  { %8936 = vmatmul.mubr.bf16.vlgmr.msra.gmra.mrb[8].mxu1 %v15859_v8 }
 0x493   :  { %4310 = vmatpush1.bf16.msra.mxu0 %v14616_v55  ;;  %8945 = vmatpush1.bf16.msra.mxu1 %v14619_v30  ;;  %v14714_v55 = vld [vmem:[#allocation8 + $0xde4] ss:$24 sps:$4 sm:$0xff]  }
 0x494   :  { %4311 = vmatprep.subr.bf16.mxu0 %v14624_v54  ;;  %8946 = vmatprep.subr.bf16.mxu1 %v14627_v52  ;;  %v14717_v30 = vld [vmem:[#allocation8 + $0x1e0c] ss:$24 sps:$4 sm:$0xff]   ;;  %v14712_v54 = vld [vmem:[#allocation8 + $0xde0] ss:$24 sps:$4 sm:$0xff]  }
 0x495   :  { %8976 = vmatprep.mubr.bf16.mxu1 %v15441_v35  ;;  %v14715_v52 = vld [vmem:[#allocation8 + $0x1e08] ss:$24 sps:$4 sm:$0xff]  }
 0x497   :  { %4312 = vmatpush1.bf16.msra.mxu0 %v14622_v38  ;;  %8947 = vmatpush1.bf16.msra.mxu1 %v14625_v39  ;;  %v14720_v38 = vld [vmem:[#allocation8 + $0xe14] ss:$24 sps:$4 sm:$0xff]  }
 0x498   :  { %4313 = vmatprep.subr.bf16.mxu0 %v14630_v40  ;;  %8948 = vmatprep.subr.bf16.mxu1 %v14633_v41  ;;  %v14723_v39 = vld [vmem:[#allocation8 + $0x1e3c] ss:$24 sps:$4 sm:$0xff]   ;;  %v15875_v40 = vld [vmem:[#allocation2 + $0x50] sm:$0xf]  ;;  %v14721_v41 = vld [vmem:[#allocation8 + $0x1e38] ss:$24 sps:$4 sm:$0xff]  }
 0x49b   :  { %4314 = vmatpush1.bf16.msra.mxu0 %v14628_v43  ;;  %8949 = vmatpush1.bf16.msra.mxu1 %v14631_v36  ;;  %v14726_v43 = vld [vmem:[#allocation8 + $0xe44] ss:$24 sps:$4 sm:$0xff]  }
 0x49c   :  { %4315 = vmatprep.subr.bf16.mxu0 %v14636_v44  ;;  %8950 = vmatprep.subr.bf16.mxu1 %v14639_v45  ;;  %v14729_v36 = vld [vmem:[#allocation8 + $0x1e6c] ss:$24 sps:$4 sm:$0xff]   ;;  %v14724_v44 = vld [vmem:[#allocation8 + $0xe40] ss:$24 sps:$4 sm:$0xff]  }
 0x49d   :  { %v14727_v45 = vld [vmem:[#allocation8 + $0x1e68] ss:$24 sps:$4 sm:$0xff]  }
 0x49f   :  { %4316 = vmatpush1.bf16.msra.mxu0 %v14634_v46  ;;  %8951 = vmatpush1.bf16.msra.mxu1 %v14637_v47  ;;  %v14732_v46 = vld [vmem:[#allocation8 + $0xe74] ss:$24 sps:$4 sm:$0xff]  }
 0x4a0   :  { %4317 = vmatprep.subr.bf16.mxu0 %v14642_v48  ;;  %8952 = vmatprep.subr.bf16.mxu1 %v14645_v50  ;;  %v14735_v47 = vld [vmem:[#allocation8 + $0x1e9c] ss:$24 sps:$4 sm:$0xff]   ;;  %v14730_v48 = vld [vmem:[#allocation8 + $0xe70] ss:$24 sps:$4 sm:$0xff]  }
 0x4a1   :  { %v14733_v50 = vld [vmem:[#allocation8 + $0x1e98] ss:$24 sps:$4 sm:$0xff]  }
 0x4a3   :  { %4318 = vmatpush1.bf16.msra.mxu0 %v14640_v28  ;;  %8953 = vmatpush1.bf16.msra.mxu1 %v14643_v56  ;;  %v14738_v28 = vld [vmem:[#allocation8 + $0xea4] ss:$24 sps:$4 sm:$0xff]  }
 0x4a4   :  { %4319 = vmatprep.subr.bf16.mxu0 %v14648_v42  ;;  %8954 = vmatprep.subr.bf16.mxu1 %v14651_v58  ;;  %v14741_v56 = vld [vmem:[#allocation8 + $0x1ecc] ss:$24 sps:$4 sm:$0xff]   ;;  %v14736_v42 = vld [vmem:[#allocation8 + $0xea0] ss:$24 sps:$4 sm:$0xff]  }
 0x4a5   :  { %v14739_v58 = vld [vmem:[#allocation8 + $0x1ec8] ss:$24 sps:$4 sm:$0xff]  }
 0x4a7   :  { %4320 = vmatpush1.bf16.msra.mxu0 %v14646_v59  ;;  %8955 = vmatpush1.bf16.msra.mxu1 %v14649_v60  ;;  %v14744_v59 = vld [vmem:[#allocation8 + $0xed4] ss:$24 sps:$4 sm:$0xff]  }
 0x4a8   :  { %4346 = vmatprep.subr.bf16.mxu0 %v14654_v61  ;;  %8956 = vmatprep.subr.bf16.mxu1 %v14657_v63  ;;  %v14747_v60 = vld [vmem:[#allocation8 + $0x1efc] ss:$24 sps:$4 sm:$0xff]   ;;  %v14742_v61 = vld [vmem:[#allocation8 + $0xed0] ss:$24 sps:$4 sm:$0xff]  }
 0x4a9   :  { %v14745_v63 = vld [vmem:[#allocation8 + $0x1ef8] ss:$24 sps:$4 sm:$0xff]  }
 0x4aa   :  { %4338 = vmatmul.mubr.bf16.vlgmr.msra.gmra.mrb[56].mxu0 %v15863_v33 }
 0x4ab   :  { %4347 = vmatpush1.bf16.msra.mxu0 %v14652_v0  ;;  %8957 = vmatpush1.bf16.msra.mxu1 %v14655_v51  ;;  %v14750_v0 = vld [vmem:[#allocation8 + $0xd8c] ss:$24 sps:$4 sm:$0xff]  }
 0x4ac   :  { %4348 = vmatprep.subr.bf16.mxu0 %v14660_v19  ;;  %8958 = vmatprep.subr.bf16.mxu1 %v14663_v3  ;;  %v14753_v51 = vld [vmem:[#allocation8 + $0x1f2c] ss:$24 sps:$4 sm:$0xff]   ;;  %v14748_v19 = vld [vmem:[#allocation8 + $0xd88] ss:$24 sps:$4 sm:$0xff]  }
 0x4ad   :  { %4378 = vmatprep.mubr.bf16.mxu0 %v15441_v35  ;;  %v14751_v3 = vld [vmem:[#allocation8 + $0x1f28] ss:$24 sps:$4 sm:$0xff]  }
 0x4af   :  { %4349 = vmatpush1.bf16.msra.mxu0 %v14658_v57  ;;  %8959 = vmatpush1.bf16.msra.mxu1 %v14661_v4  ;;  %v14756_v57 = vld [vmem:[#allocation8 + $0xdbc] ss:$24 sps:$4 sm:$0xff]  }
 0x4b0   :  { %4350 = vmatprep.subr.bf16.mxu0 %v14666_v5  ;;  %9280 = vmatprep.subr.bf16.mxu1 %v14669_v6  ;;  %v14759_v4 = vld [vmem:[#allocation8 + $0x1f5c] ss:$24 sps:$4 sm:$0xff]   ;;  %v14754_v6 = vld [vmem:[#allocation8 + $0xdb8] ss:$24 sps:$4 sm:$0xff]  }
 0x4b1   :  { %v15879_v5 = vld [vmem:[#allocation2 + $0x24] sm:$0xf] }
 0x4b2   :  { %8977 = vmatmul.mubr.bf16.vlgmr.msra.gmra.mrb[0].mxu1 %v15859_v8  ;;  %v14682_v8 = vld [vmem:[#allocation8 + $0xd00] ss:$24 sps:$4 sm:$0xff]  }
 0x4b3   :  { %4351 = vmatpush1.bf16.msra.mxu0 %v14664_v7  ;;  %9281 = vmatpush1.bf16.msra.mxu1 %v14667_v62  ;;  %v14757_v7 = vld [vmem:[#allocation8 + $0x1f58] ss:$24 sps:$4 sm:$0xff]   ;;  %v14762_v62 = vld [vmem:[#allocation8 + $0xdec] ss:$24 sps:$4 sm:$0xff]  }
 0x4b4   :  { %4352 = vmatprep.subr.bf16.mxu0 %v14672_v9  ;;  %9282 = vmatprep.subr.bf16.mxu1 %v14675_v10  ;;  %v14765_v9 = vld [vmem:[#allocation8 + $0x1e14] ss:$24 sps:$4 sm:$0xff]   ;;  %v14760_v10 = vld [vmem:[#allocation8 + $0xde8] ss:$24 sps:$4 sm:$0xff]  }
 0x4b5   :  { %9312 = vmatprep.mubr.bf16.mxu1 %v15441_v35 }
 0x4b7   :  { %4353 = vmatpush1.bf16.msra.mxu0 %v14670_v2  ;;  %9283 = vmatpush1.bf16.msra.mxu1 %v14673_v11  ;;  %v14763_v2 = vld [vmem:[#allocation8 + $0x1e10] ss:$24 sps:$4 sm:$0xff]   ;;  %v14768_v11 = vld [vmem:[#allocation8 + $0xe1c] ss:$24 sps:$4 sm:$0xff]  }
 0x4b8   :  { %4354 = vmatprep.subr.bf16.mxu0 %v14678_v12  ;;  %9284 = vmatprep.subr.bf16.mxu1 %v14681_v13  ;;  %v14771_v12 = vld [vmem:[#allocation8 + $0x1e44] ss:$24 sps:$4 sm:$0xff]   ;;  %v14766_v13 = vld [vmem:[#allocation8 + $0xe18] ss:$24 sps:$4 sm:$0xff]  }
 0x4bb   :  { %4355 = vmatpush1.bf16.msra.mxu0 %v14676_v14  ;;  %9285 = vmatpush1.bf16.msra.mxu1 %v14679_v16  ;;  %v14769_v14 = vld [vmem:[#allocation8 + $0x1e40] ss:$24 sps:$4 sm:$0xff]   ;;  %v14774_v16 = vld [vmem:[#allocation8 + $0xe4c] ss:$24 sps:$4 sm:$0xff]  }
 0x4bc   :  { %4356 = vmatprep.subr.bf16.mxu0 %v14684_v17  ;;  %9286 = vmatprep.subr.bf16.mxu1 %v14687_v21  ;;  %v14777_v17 = vld [vmem:[#allocation8 + $0x1e74] ss:$24 sps:$4 sm:$0xff]   ;;  %v14772_v21 = vld [vmem:[#allocation8 + $0xe48] ss:$24 sps:$4 sm:$0xff]  }
 0x4bf   :  { %4357 = vmatpush1.bf16.msra.mxu0 %v14682_v8  ;;  %9287 = vmatpush1.bf16.msra.mxu1 %v14685_v15  ;;  %v14775_v8 = vld [vmem:[#allocation8 + $0x1e70] ss:$24 sps:$4 sm:$0xff]   ;;  %v14780_v15 = vld [vmem:[#allocation8 + $0xe7c] ss:$24 sps:$4 sm:$0xff]  }
 0x4c0   :  { %4358 = vmatprep.subr.bf16.mxu0 %v14690_v22  ;;  %9288 = vmatprep.subr.bf16.mxu1 %v14693_v23  ;;  %v14783_v22 = vld [vmem:[#allocation8 + $0x1ea4] ss:$24 sps:$4 sm:$0xff]   ;;  %v14778_v23 = vld [vmem:[#allocation8 + $0xe78] ss:$24 sps:$4 sm:$0xff]  }
 0x4c3   :  { %4359 = vmatpush1.bf16.msra.mxu0 %v14688_v24  ;;  %9289 = vmatpush1.bf16.msra.mxu1 %v14691_v25  ;;  %v14781_v24 = vld [vmem:[#allocation8 + $0x1ea0] ss:$24 sps:$4 sm:$0xff]   ;;  %v14786_v25 = vld [vmem:[#allocation8 + $0xeac] ss:$24 sps:$4 sm:$0xff]  }
 0x4c4   :  { %4360 = vmatprep.subr.bf16.mxu0 %v14696_v26  ;;  %9290 = vmatprep.subr.bf16.mxu1 %v14699_v1  ;;  %v14789_v26 = vld [vmem:[#allocation8 + $0x1ed4] ss:$24 sps:$4 sm:$0xff]   ;;  %v14784_v1 = vld [vmem:[#allocation8 + $0xea8] ss:$24 sps:$4 sm:$0xff]  }
 0x4c7   :  { %4361 = vmatpush1.bf16.msra.mxu0 %v14694_v29  ;;  %9291 = vmatpush1.bf16.msra.mxu1 %v14697_v20  ;;  %v14787_v29 = vld [vmem:[#allocation8 + $0x1ed0] ss:$24 sps:$4 sm:$0xff]   ;;  %v14792_v20 = vld [vmem:[#allocation8 + $0xedc] ss:$24 sps:$4 sm:$0xff]  }
 0x4c8   :  { %4682 = vmatprep.subr.bf16.mxu0 %v14702_v31  ;;  %9292 = vmatprep.subr.bf16.mxu1 %v14705_v49  ;;  %v14795_v31 = vld [vmem:[#allocation8 + $0x1f04] ss:$24 sps:$4 sm:$0xff]   ;;  %v14790_v49 = vld [vmem:[#allocation8 + $0xed8] ss:$24 sps:$4 sm:$0xff]  }
 0x4ca   :  { %4379 = vmatmul.mubr.bf16.vlgmr.msra.gmra.mrb[60].mxu0 %v15863_v33  ;;  %v14718_v33 = vld [vmem:[#allocation8 + $0xe10] ss:$24 sps:$4 sm:$0xff]  }
 0x4cb   :  { %4683 = vmatpush1.bf16.msra.mxu0 %v14700_v18  ;;  %9293 = vmatpush1.bf16.msra.mxu1 %v14703_v32  ;;  %v14793_v18 = vld [vmem:[#allocation8 + $0x1f00] ss:$24 sps:$4 sm:$0xff]   ;;  %v14798_v32 = vld [vmem:[#allocation8 + $0xd94] ss:$24 sps:$4 sm:$0xff]  }
 0x4cc   :  { %4684 = vmatprep.subr.bf16.mxu0 %v14708_v53  ;;  %9294 = vmatprep.subr.bf16.mxu1 %v14711_v34  ;;  %v14801_v53 = vld [vmem:[#allocation8 + $0x1f34] ss:$24 sps:$4 sm:$0xff]   ;;  %v14796_v34 = vld [vmem:[#allocation8 + $0xd90] ss:$24 sps:$4 sm:$0xff]  }
 0x4cd   :  { %4714 = vmatprep.mubr.bf16.mxu0 %v15441_v35 }
 0x4cf   :  { %4685 = vmatpush1.bf16.msra.mxu0 %v14706_v27  ;;  %9295 = vmatpush1.bf16.msra.mxu1 %v14709_v37  ;;  %v14799_v27 = vld [vmem:[#allocation8 + $0x1f30] ss:$24 sps:$4 sm:$0xff]   ;;  %v14804_v37 = vld [vmem:[#allocation8 + $0xdc4] ss:$24 sps:$4 sm:$0xff]  }
 0x4d0   :  { %4686 = vmatprep.subr.bf16.mxu0 %v14714_v55  ;;  %9321 = vmatprep.subr.bf16.mxu1 %v14717_v30  ;;  %v14807_v55 = vld [vmem:[#allocation8 + $0x1f64] ss:$24 sps:$4 sm:$0xff]   ;;  %v14802_v30 = vld [vmem:[#allocation8 + $0xdc0] ss:$24 sps:$4 sm:$0xff]  }
 0x4d2   :  { %9313 = vmatmul.mubr.bf16.vlgmr.msra.gmra.mrb[4].mxu1 %v15875_v40 }
 0x4d3   :  { %4687 = vmatpush1.bf16.msra.mxu0 %v14712_v54  ;;  %9322 = vmatpush1.bf16.msra.mxu1 %v14715_v52  ;;  %v14805_v54 = vld [vmem:[#allocation8 + $0x1f60] ss:$24 sps:$4 sm:$0xff]   ;;  %v14810_v52 = vld [vmem:[#allocation8 + $0xdf4] ss:$24 sps:$4 sm:$0xff]  }
 0x4d4   :  { %4688 = vmatprep.subr.bf16.mxu0 %v14720_v38  ;;  %9323 = vmatprep.subr.bf16.mxu1 %v14723_v39  ;;  %v14813_v38 = vld [vmem:[#allocation8 + $0x1f84] ss:$24 sps:$4 sm:$0xff]   ;;  %v14808_v39 = vld [vmem:[#allocation8 + $0xdf0] ss:$24 sps:$4 sm:$0xff]  }
 0x4d5   :  { %9353 = vmatprep.mubr.bf16.mxu1 %v15441_v35 }
 0x4d7   :  { %4689 = vmatpush1.bf16.msra.mxu0 %v14718_v33  ;;  %9324 = vmatpush1.bf16.msra.mxu1 %v14721_v41  ;;  %v14811_v33 = vld [vmem:[#allocation8 + $0x1f80] ss:$24 sps:$4 sm:$0xff]   ;;  %v14816_v41 = vld [vmem:[#allocation8 + $0xe24] ss:$24 sps:$4 sm:$0xff]  }
 0x4d8   :  { %4690 = vmatprep.subr.bf16.mxu0 %v14726_v43  ;;  %9325 = vmatprep.subr.bf16.mxu1 %v14729_v36  ;;  %v14819_v43 = vld [vmem:[#allocation8 + $0x1fb4] ss:$24 sps:$4 sm:$0xff]   ;;  %v14814_v36 = vld [vmem:[#allocation8 + $0xe20] ss:$24 sps:$4 sm:$0xff]  }
 0x4db   :  { %4691 = vmatpush1.bf16.msra.mxu0 %v14724_v44  ;;  %9326 = vmatpush1.bf16.msra.mxu1 %v14727_v45  ;;  %v14817_v44 = vld [vmem:[#allocation8 + $0x1fb0] ss:$24 sps:$4 sm:$0xff]   ;;  %v14822_v45 = vld [vmem:[#allocation8 + $0xe54] ss:$24 sps:$4 sm:$0xff]  }
 0x4dc   :  { %4692 = vmatprep.subr.bf16.mxu0 %v14732_v46  ;;  %9327 = vmatprep.subr.bf16.mxu1 %v14735_v47  ;;  %v14825_v46 = vld [vmem:[#allocation8 + $0x1fe4] ss:$24 sps:$4 sm:$0xff]   ;;  %v14820_v47 = vld [vmem:[#allocation8 + $0xe50] ss:$24 sps:$4 sm:$0xff]  }
 0x4df   :  { %4693 = vmatpush1.bf16.msra.mxu0 %v14730_v48  ;;  %9328 = vmatpush1.bf16.msra.mxu1 %v14733_v50  ;;  %v14823_v48 = vld [vmem:[#allocation8 + $0x1fe0] ss:$24 sps:$4 sm:$0xff]   ;;  %v14828_v50 = vld [vmem:[#allocation8 + $0xe84] ss:$24 sps:$4 sm:$0xff]  }
 0x4e0   :  { %4694 = vmatprep.subr.bf16.mxu0 %v14738_v28  ;;  %9329 = vmatprep.subr.bf16.mxu1 %v14741_v56  ;;  %v14831_v28 = vld [vmem:[#allocation8 + $0x2014] ss:$24 sps:$4 sm:$0xff]   ;;  %v14829_v56 = vld [vmem:[#allocation8 + $0x2010] ss:$24 sps:$4 sm:$0xff]  }
 0x4e3   :  { %4695 = vmatpush1.bf16.msra.mxu0 %v14736_v42  ;;  %9330 = vmatpush1.bf16.msra.mxu1 %v14739_v58  ;;  %v14834_v42 = vld [vmem:[#allocation8 + $0xeb4] ss:$24 sps:$4 sm:$0xff]   ;;  %v14837_v58 = vld [vmem:[#allocation8 + $0x2044] ss:$24 sps:$4 sm:$0xff]  }
 0x4e4   :  { %4696 = vmatprep.subr.bf16.mxu0 %v14744_v59  ;;  %9331 = vmatprep.subr.bf16.mxu1 %v14747_v60  ;;  %v14832_v59 = vld [vmem:[#allocation8 + $0xeb0] ss:$24 sps:$4 sm:$0xff]   ;;  %v14835_v60 = vld [vmem:[#allocation8 + $0x2040] ss:$24 sps:$4 sm:$0xff]  }
 0x4e7   :  { %4697 = vmatpush1.bf16.msra.mxu0 %v14742_v61  ;;  %9332 = vmatpush1.bf16.msra.mxu1 %v14745_v63  ;;  %v14840_v61 = vld [vmem:[#allocation8 + $0xee4] ss:$24 sps:$4 sm:$0xff]   ;;  %v14843_v63 = vld [vmem:[#allocation8 + $0x2074] ss:$24 sps:$4 sm:$0xff]  }
 0x4e8   :  { %4723 = vmatprep.subr.bf16.mxu0 %v14750_v0  ;;  %9333 = vmatprep.subr.bf16.mxu1 %v14753_v51  ;;  %v14838_v0 = vld [vmem:[#allocation8 + $0xee0] ss:$24 sps:$4 sm:$0xff]   ;;  %v14841_v51 = vld [vmem:[#allocation8 + $0x2070] ss:$24 sps:$4 sm:$0xff]  }
 0x4ea   :  { %4715 = vmatmul.mubr.bf16.vlgmr.msra.gmra.mrb[52].mxu0 %v15879_v5 }
 0x4eb   :  { %4724 = vmatpush1.bf16.msra.mxu0 %v14748_v19  ;;  %9334 = vmatpush1.bf16.msra.mxu1 %v14751_v3  ;;  %v14846_v19 = vld [vmem:[#allocation8 + $0xf04] ss:$24 sps:$4 sm:$0xff]  }
 0x4ec   :  { %4725 = vmatprep.subr.bf16.mxu0 %v14756_v57  ;;  %9335 = vmatprep.subr.bf16.mxu1 %v14759_v4  ;;  %v14849_v3 = vld [vmem:[#allocation8 + $0x20a4] ss:$24 sps:$4 sm:$0xff]   ;;  %v14844_v57 = vld [vmem:[#allocation8 + $0xf00] ss:$24 sps:$4 sm:$0xff]  }
 0x4ed   :  { %4755 = vmatprep.mubr.bf16.mxu0 %v15441_v35  ;;  %v14847_v4 = vld [vmem:[#allocation8 + $0x20a0] ss:$24 sps:$4 sm:$0xff]  }
 0x4ef   :  { %4726 = vmatpush1.bf16.msra.mxu0 %v14754_v6  ;;  %9336 = vmatpush1.bf16.msra.mxu1 %v14757_v7  ;;  %v14852_v6 = vld [vmem:[#allocation8 + $0xf34] ss:$24 sps:$4 sm:$0xff]  }
 0x4f0   :  { %4727 = vmatprep.subr.bf16.mxu0 %v14762_v62  ;;  %9362 = vmatprep.subr.bf16.mxu1 %v14765_v9  ;;  %v14855_v7 = vld [vmem:[#allocation8 + $0x20d4] ss:$24 sps:$4 sm:$0xff]   ;;  %v14850_v62 = vld [vmem:[#allocation8 + $0xf30] ss:$24 sps:$4 sm:$0xff]  }
 0x4f1   :  { %v14853_v9 = vld [vmem:[#allocation8 + $0x20d0] ss:$24 sps:$4 sm:$0xff]  }
 0x4f2   :  { %9354 = vmatmul.mubr.bf16.vlgmr.msra.gmra.mrb[8].mxu1 %v15875_v40 }
 0x4f3   :  { %4728 = vmatpush1.bf16.msra.mxu0 %v14760_v10  ;;  %9363 = vmatpush1.bf16.msra.mxu1 %v14763_v2  ;;  %v14858_v10 = vld [vmem:[#allocation8 + $0xf64] ss:$24 sps:$4 sm:$0xff]  }
 0x4f4   :  { %4729 = vmatprep.subr.bf16.mxu0 %v14768_v11  ;;  %9364 = vmatprep.subr.bf16.mxu1 %v14771_v12  ;;  %v14861_v2 = vld [vmem:[#allocation8 + $0x1f8c] ss:$24 sps:$4 sm:$0xff]   ;;  %v14856_v11 = vld [vmem:[#allocation8 + $0xf60] ss:$24 sps:$4 sm:$0xff]  }
 0x4f5   :  { %9394 = vmatprep.mubr.bf16.mxu1 %v15441_v35  ;;  %v14859_v12 = vld [vmem:[#allocation8 + $0x1f88] ss:$24 sps:$4 sm:$0xff]  }
 0x4f7   :  { %4730 = vmatpush1.bf16.msra.mxu0 %v14766_v13  ;;  %9365 = vmatpush1.bf16.msra.mxu1 %v14769_v14  ;;  %v14864_v13 = vld [vmem:[#allocation8 + $0xf94] ss:$24 sps:$4 sm:$0xff]  }
 0x4f8   :  { %4731 = vmatprep.subr.bf16.mxu0 %v14774_v16  ;;  %9366 = vmatprep.subr.bf16.mxu1 %v14777_v17  ;;  %v14867_v14 = vld [vmem:[#allocation8 + $0x1fbc] ss:$24 sps:$4 sm:$0xff]   ;;  %v15891_v16 = vld [vmem:[#allocation2 + $0x54] sm:$0xf]  ;;  %v14865_v17 = vld [vmem:[#allocation8 + $0x1fb8] ss:$24 sps:$4 sm:$0xff]  }
 0x4fb   :  { %4732 = vmatpush1.bf16.msra.mxu0 %v14772_v21  ;;  %9367 = vmatpush1.bf16.msra.mxu1 %v14775_v8  ;;  %v14870_v21 = vld [vmem:[#allocation8 + $0xfc4] ss:$24 sps:$4 sm:$0xff]  }
 0x4fc   :  { %4733 = vmatprep.subr.bf16.mxu0 %v14780_v15  ;;  %9368 = vmatprep.subr.bf16.mxu1 %v14783_v22  ;;  %v14873_v8 = vld [vmem:[#allocation8 + $0x1fec] ss:$24 sps:$4 sm:$0xff]   ;;  %v14868_v15 = vld [vmem:[#allocation8 + $0xfc0] ss:$24 sps:$4 sm:$0xff]  }
 0x4fd   :  { %v14871_v22 = vld [vmem:[#allocation8 + $0x1fe8] ss:$24 sps:$4 sm:$0xff]  }
 0x4ff   :  { %4734 = vmatpush1.bf16.msra.mxu0 %v14778_v23  ;;  %9369 = vmatpush1.bf16.msra.mxu1 %v14781_v24  ;;  %v14876_v23 = vld [vmem:[#allocation8 + $0xff4] ss:$24 sps:$4 sm:$0xff]  }
 0x500   :  { %4735 = vmatprep.subr.bf16.mxu0 %v14786_v25  ;;  %9370 = vmatprep.subr.bf16.mxu1 %v14789_v26  ;;  %v14879_v24 = vld [vmem:[#allocation8 + $0x201c] ss:$24 sps:$4 sm:$0xff]   ;;  %v14874_v25 = vld [vmem:[#allocation8 + $0xff0] ss:$24 sps:$4 sm:$0xff]  }
 0x501   :  { %v14877_v26 = vld [vmem:[#allocation8 + $0x2018] ss:$24 sps:$4 sm:$0xff]  }
 0x503   :  { %4736 = vmatpush1.bf16.msra.mxu0 %v14784_v1  ;;  %9371 = vmatpush1.bf16.msra.mxu1 %v14787_v29  ;;  %v14882_v1 = vld [vmem:[#allocation8 + $0x1024] ss:$24 sps:$4 sm:$0xff]  }
 0x504   :  { %4737 = vmatprep.subr.bf16.mxu0 %v14792_v20  ;;  %9372 = vmatprep.subr.bf16.mxu1 %v14795_v31  ;;  %v14885_v29 = vld [vmem:[#allocation8 + $0x204c] ss:$24 sps:$4 sm:$0xff]   ;;  %v14880_v20 = vld [vmem:[#allocation8 + $0x1020] ss:$24 sps:$4 sm:$0xff]  }
 0x505   :  { %v14883_v31 = vld [vmem:[#allocation8 + $0x2048] ss:$24 sps:$4 sm:$0xff]  }
 0x507   :  { %4738 = vmatpush1.bf16.msra.mxu0 %v14790_v49  ;;  %9373 = vmatpush1.bf16.msra.mxu1 %v14793_v18  ;;  %v14888_v49 = vld [vmem:[#allocation8 + $0x1054] ss:$24 sps:$4 sm:$0xff]  }
 0x508   :  { %4764 = vmatprep.subr.bf16.mxu0 %v14798_v32  ;;  %9374 = vmatprep.subr.bf16.mxu1 %v14801_v53  ;;  %v14891_v18 = vld [vmem:[#allocation8 + $0x207c] ss:$24 sps:$4 sm:$0xff]   ;;  %v14886_v32 = vld [vmem:[#allocation8 + $0x1050] ss:$24 sps:$4 sm:$0xff]  }
 0x509   :  { %v14889_v53 = vld [vmem:[#allocation8 + $0x2078] ss:$24 sps:$4 sm:$0xff]  }
 0x50a   :  { %4756 = vmatmul.mubr.bf16.vlgmr.msra.gmra.mrb[56].mxu0 %v15879_v5 }
 0x50b   :  { %4765 = vmatpush1.bf16.msra.mxu0 %v14796_v34  ;;  %9375 = vmatpush1.bf16.msra.mxu1 %v14799_v27  ;;  %v14894_v34 = vld [vmem:[#allocation8 + $0xf0c] ss:$24 sps:$4 sm:$0xff]  }
 0x50c   :  { %4766 = vmatprep.subr.bf16.mxu0 %v14804_v37  ;;  %9376 = vmatprep.subr.bf16.mxu1 %v14807_v55  ;;  %v14897_v27 = vld [vmem:[#allocation8 + $0x20ac] ss:$24 sps:$4 sm:$0xff]   ;;  %v14892_v37 = vld [vmem:[#allocation8 + $0xf08] ss:$24 sps:$4 sm:$0xff]  }
 0x50d   :  { %4796 = vmatprep.mubr.bf16.mxu0 %v15441_v35  ;;  %v14895_v55 = vld [vmem:[#allocation8 + $0x20a8] ss:$24 sps:$4 sm:$0xff]  }
 0x50f   :  { %4767 = vmatpush1.bf16.msra.mxu0 %v14802_v30  ;;  %9377 = vmatpush1.bf16.msra.mxu1 %v14805_v54  ;;  %v14900_v30 = vld [vmem:[#allocation8 + $0xf3c] ss:$24 sps:$4 sm:$0xff]  }
 0x510   :  { %4768 = vmatprep.subr.bf16.mxu0 %v14810_v52  ;;  %9698 = vmatprep.subr.bf16.mxu1 %v14813_v38  ;;  %v14903_v54 = vld [vmem:[#allocation8 + $0x20dc] ss:$24 sps:$4 sm:$0xff]   ;;  %v15895_v52 = vld [vmem:[#allocation2 + $0x28] sm:$0xf]  ;;  %v14898_v38 = vld [vmem:[#allocation8 + $0xf38] ss:$24 sps:$4 sm:$0xff]  }
 0x512   :  { %9395 = vmatmul.mubr.bf16.vlgmr.msra.gmra.mrb[0].mxu1 %v15875_v40  ;;  %v14826_v40 = vld [vmem:[#allocation8 + $0xe80] ss:$24 sps:$4 sm:$0xff]  }
 0x513   :  { %4769 = vmatpush1.bf16.msra.mxu0 %v14808_v39  ;;  %9699 = vmatpush1.bf16.msra.mxu1 %v14811_v33  ;;  %v14901_v39 = vld [vmem:[#allocation8 + $0x20d8] ss:$24 sps:$4 sm:$0xff]   ;;  %v14906_v33 = vld [vmem:[#allocation8 + $0xf6c] ss:$24 sps:$4 sm:$0xff]  }
 0x514   :  { %4770 = vmatprep.subr.bf16.mxu0 %v14816_v41  ;;  %9700 = vmatprep.subr.bf16.mxu1 %v14819_v43  ;;  %v14909_v41 = vld [vmem:[#allocation8 + $0x1f94] ss:$24 sps:$4 sm:$0xff]   ;;  %v14904_v43 = vld [vmem:[#allocation8 + $0xf68] ss:$24 sps:$4 sm:$0xff]  }
 0x515   :  { %9730 = vmatprep.mubr.bf16.mxu1 %v15441_v35 }
 0x517   :  { %4771 = vmatpush1.bf16.msra.mxu0 %v14814_v36  ;;  %9701 = vmatpush1.bf16.msra.mxu1 %v14817_v44  ;;  %v14907_v36 = vld [vmem:[#allocation8 + $0x1f90] ss:$24 sps:$4 sm:$0xff]   ;;  %v14912_v44 = vld [vmem:[#allocation8 + $0xf9c] ss:$24 sps:$4 sm:$0xff]  }
 0x518   :  { %4772 = vmatprep.subr.bf16.mxu0 %v14822_v45  ;;  %9702 = vmatprep.subr.bf16.mxu1 %v14825_v46  ;;  %v14915_v45 = vld [vmem:[#allocation8 + $0x1fc4] ss:$24 sps:$4 sm:$0xff]   ;;  %v14910_v46 = vld [vmem:[#allocation8 + $0xf98] ss:$24 sps:$4 sm:$0xff]  }
 0x51b   :  { %4773 = vmatpush1.bf16.msra.mxu0 %v14820_v47  ;;  %9703 = vmatpush1.bf16.msra.mxu1 %v14823_v48  ;;  %v14913_v47 = vld [vmem:[#allocation8 + $0x1fc0] ss:$24 sps:$4 sm:$0xff]   ;;  %v14918_v48 = vld [vmem:[#allocation8 + $0xfcc] ss:$24 sps:$4 sm:$0xff]  }
 0x51c   :  { %4774 = vmatprep.subr.bf16.mxu0 %v14828_v50  ;;  %9704 = vmatprep.subr.bf16.mxu1 %v14831_v28  ;;  %v14921_v50 = vld [vmem:[#allocation8 + $0x1ff4] ss:$24 sps:$4 sm:$0xff]   ;;  %v14916_v28 = vld [vmem:[#allocation8 + $0xfc8] ss:$24 sps:$4 sm:$0xff]  }
 0x51f   :  { %4775 = vmatpush1.bf16.msra.mxu0 %v14826_v40  ;;  %9705 = vmatpush1.bf16.msra.mxu1 %v14829_v56  ;;  %v14919_v40 = vld [vmem:[#allocation8 + $0x1ff0] ss:$24 sps:$4 sm:$0xff]   ;;  %v14924_v56 = vld [vmem:[#allocation8 + $0xffc] ss:$24 sps:$4 sm:$0xff]  }
 0x520   :  { %4776 = vmatprep.subr.bf16.mxu0 %v14834_v42  ;;  %9706 = vmatprep.subr.bf16.mxu1 %v14837_v58  ;;  %v14927_v42 = vld [vmem:[#allocation8 + $0x2024] ss:$24 sps:$4 sm:$0xff]   ;;  %v14922_v58 = vld [vmem:[#allocation8 + $0xff8] ss:$24 sps:$4 sm:$0xff]  }
 0x523   :  { %4777 = vmatpush1.bf16.msra.mxu0 %v14832_v59  ;;  %9707 = vmatpush1.bf16.msra.mxu1 %v14835_v60  ;;  %v14925_v59 = vld [vmem:[#allocation8 + $0x2020] ss:$24 sps:$4 sm:$0xff]   ;;  %v14930_v60 = vld [vmem:[#allocation8 + $0x102c] ss:$24 sps:$4 sm:$0xff]  }
 0x524   :  { %4778 = vmatprep.subr.bf16.mxu0 %v14840_v61  ;;  %9708 = vmatprep.subr.bf16.mxu1 %v14843_v63  ;;  %v14933_v61 = vld [vmem:[#allocation8 + $0x2054] ss:$24 sps:$4 sm:$0xff]   ;;  %v14928_v63 = vld [vmem:[#allocation8 + $0x1028] ss:$24 sps:$4 sm:$0xff]  }
 0x527   :  { %4779 = vmatpush1.bf16.msra.mxu0 %v14838_v0  ;;  %9709 = vmatpush1.bf16.msra.mxu1 %v14841_v51  ;;  %v14931_v0 = vld [vmem:[#allocation8 + $0x2050] ss:$24 sps:$4 sm:$0xff]   ;;  %v14936_v51 = vld [vmem:[#allocation8 + $0x105c] ss:$24 sps:$4 sm:$0xff]  }
 0x528   :  { %5100 = vmatprep.subr.bf16.mxu0 %v14846_v19  ;;  %9710 = vmatprep.subr.bf16.mxu1 %v14849_v3  ;;  %v14939_v19 = vld [vmem:[#allocation8 + $0x2084] ss:$24 sps:$4 sm:$0xff]   ;;  %v14934_v3 = vld [vmem:[#allocation8 + $0x1058] ss:$24 sps:$4 sm:$0xff]  }
 0x52a   :  { %4797 = vmatmul.mubr.bf16.vlgmr.msra.gmra.mrb[60].mxu0 %v15879_v5  ;;  %v14862_v5 = vld [vmem:[#allocation8 + $0xf90] ss:$24 sps:$4 sm:$0xff]  }
 0x52b   :  { %5101 = vmatpush1.bf16.msra.mxu0 %v14844_v57  ;;  %9711 = vmatpush1.bf16.msra.mxu1 %v14847_v4  ;;  %v14937_v57 = vld [vmem:[#allocation8 + $0x2080] ss:$24 sps:$4 sm:$0xff]   ;;  %v14942_v4 = vld [vmem:[#allocation8 + $0xf14] ss:$24 sps:$4 sm:$0xff]  }
 0x52c   :  { %5102 = vmatprep.subr.bf16.mxu0 %v14852_v6  ;;  %9712 = vmatprep.subr.bf16.mxu1 %v14855_v7  ;;  %v14945_v6 = vld [vmem:[#allocation8 + $0x20b4] ss:$24 sps:$4 sm:$0xff]   ;;  %v14940_v7 = vld [vmem:[#allocation8 + $0xf10] ss:$24 sps:$4 sm:$0xff]  }
 0x52d   :  { %5132 = vmatprep.mubr.bf16.mxu0 %v15441_v35 }
 0x52f   :  { %5103 = vmatpush1.bf16.msra.mxu0 %v14850_v62  ;;  %9713 = vmatpush1.bf16.msra.mxu1 %v14853_v9  ;;  %v14943_v62 = vld [vmem:[#allocation8 + $0x20b0] ss:$24 sps:$4 sm:$0xff]   ;;  %v14948_v9 = vld [vmem:[#allocation8 + $0xf44] ss:$24 sps:$4 sm:$0xff]  }
 0x530   :  { %5104 = vmatprep.subr.bf16.mxu0 %v14858_v10  ;;  %9739 = vmatprep.subr.bf16.mxu1 %v14861_v2  ;;  %v14951_v10 = vld [vmem:[#allocation8 + $0x20e4] ss:$24 sps:$4 sm:$0xff]   ;;  %v14946_v2 = vld [vmem:[#allocation8 + $0xf40] ss:$24 sps:$4 sm:$0xff]  }
 0x532   :  { %9731 = vmatmul.mubr.bf16.vlgmr.msra.gmra.mrb[4].mxu1 %v15891_v16 }
 0x533   :  { %5105 = vmatpush1.bf16.msra.mxu0 %v14856_v11  ;;  %9740 = vmatpush1.bf16.msra.mxu1 %v14859_v12  ;;  %v14949_v11 = vld [vmem:[#allocation8 + $0x20e0] ss:$24 sps:$4 sm:$0xff]   ;;  %v14954_v12 = vld [vmem:[#allocation8 + $0xf74] ss:$24 sps:$4 sm:$0xff]  }
 0x534   :  { %5106 = vmatprep.subr.bf16.mxu0 %v14864_v13  ;;  %9741 = vmatprep.subr.bf16.mxu1 %v14867_v14  ;;  %v14957_v13 = vld [vmem:[#allocation8 + $0x2104] ss:$24 sps:$4 sm:$0xff]   ;;  %v14952_v14 = vld [vmem:[#allocation8 + $0xf70] ss:$24 sps:$4 sm:$0xff]  }
 0x535   :  { %9771 = vmatprep.mubr.bf16.mxu1 %v15441_v35 }
 0x537   :  { %5107 = vmatpush1.bf16.msra.mxu0 %v14862_v5  ;;  %9742 = vmatpush1.bf16.msra.mxu1 %v14865_v17  ;;  %v14955_v5 = vld [vmem:[#allocation8 + $0x2100] ss:$24 sps:$4 sm:$0xff]   ;;  %v14960_v17 = vld [vmem:[#allocation8 + $0xfa4] ss:$24 sps:$4 sm:$0xff]  }
 0x538   :  { %5108 = vmatprep.subr.bf16.mxu0 %v14870_v21  ;;  %9743 = vmatprep.subr.bf16.mxu1 %v14873_v8  ;;  %v14963_v21 = vld [vmem:[#allocation8 + $0x2134] ss:$24 sps:$4 sm:$0xff]   ;;  %v14958_v8 = vld [vmem:[#allocation8 + $0xfa0] ss:$24 sps:$4 sm:$0xff]  }
 0x53b   :  { %5109 = vmatpush1.bf16.msra.mxu0 %v14868_v15  ;;  %9744 = vmatpush1.bf16.msra.mxu1 %v14871_v22  ;;  %v14961_v15 = vld [vmem:[#allocation8 + $0x2130] ss:$24 sps:$4 sm:$0xff]   ;;  %v14966_v22 = vld [vmem:[#allocation8 + $0xfd4] ss:$24 sps:$4 sm:$0xff]  }
 0x53c   :  { %5110 = vmatprep.subr.bf16.mxu0 %v14876_v23  ;;  %9745 = vmatprep.subr.bf16.mxu1 %v14879_v24  ;;  %v14969_v23 = vld [vmem:[#allocation8 + $0x2164] ss:$24 sps:$4 sm:$0xff]   ;;  %v14964_v24 = vld [vmem:[#allocation8 + $0xfd0] ss:$24 sps:$4 sm:$0xff]  }
 0x53f   :  { %5111 = vmatpush1.bf16.msra.mxu0 %v14874_v25  ;;  %9746 = vmatpush1.bf16.msra.mxu1 %v14877_v26  ;;  %v14967_v25 = vld [vmem:[#allocation8 + $0x2160] ss:$24 sps:$4 sm:$0xff]   ;;  %v14972_v26 = vld [vmem:[#allocation8 + $0x1004] ss:$24 sps:$4 sm:$0xff]  }
 0x540   :  { %5112 = vmatprep.subr.bf16.mxu0 %v14882_v1  ;;  %9747 = vmatprep.subr.bf16.mxu1 %v14885_v29  ;;  %v14975_v1 = vld [vmem:[#allocation8 + $0x2194] ss:$24 sps:$4 sm:$0xff]   ;;  %v14973_v29 = vld [vmem:[#allocation8 + $0x2190] ss:$24 sps:$4 sm:$0xff]  }
 0x543   :  { %5113 = vmatpush1.bf16.msra.mxu0 %v14880_v20  ;;  %9748 = vmatpush1.bf16.msra.mxu1 %v14883_v31  ;;  %v14978_v20 = vld [vmem:[#allocation8 + $0x1034] ss:$24 sps:$4 sm:$0xff]   ;;  %v14981_v31 = vld [vmem:[#allocation8 + $0x21c4] ss:$24 sps:$4 sm:$0xff]  }
 0x544   :  { %5114 = vmatprep.subr.bf16.mxu0 %v14888_v49  ;;  %9749 = vmatprep.subr.bf16.mxu1 %v14891_v18  ;;  %v14976_v49 = vld [vmem:[#allocation8 + $0x1030] ss:$24 sps:$4 sm:$0xff]   ;;  %v14979_v18 = vld [vmem:[#allocation8 + $0x21c0] ss:$24 sps:$4 sm:$0xff]  }
 0x547   :  { %5115 = vmatpush1.bf16.msra.mxu0 %v14886_v32  ;;  %9750 = vmatpush1.bf16.msra.mxu1 %v14889_v53  ;;  %v14984_v32 = vld [vmem:[#allocation8 + $0x1064] ss:$24 sps:$4 sm:$0xff]   ;;  %v14987_v53 = vld [vmem:[#allocation8 + $0x21f4] ss:$24 sps:$4 sm:$0xff]  }
 0x548   :  { %5141 = vmatprep.subr.bf16.mxu0 %v14894_v34  ;;  %9751 = vmatprep.subr.bf16.mxu1 %v14897_v27  ;;  %v14982_v34 = vld [vmem:[#allocation8 + $0x1060] ss:$24 sps:$4 sm:$0xff]   ;;  %v14985_v27 = vld [vmem:[#allocation8 + $0x21f0] ss:$24 sps:$4 sm:$0xff]  }
 0x54a   :  { %5133 = vmatmul.mubr.bf16.vlgmr.msra.gmra.mrb[52].mxu0 %v15895_v52 }
 0x54b   :  { %5142 = vmatpush1.bf16.msra.mxu0 %v14892_v37  ;;  %9752 = vmatpush1.bf16.msra.mxu1 %v14895_v55  ;;  %v14990_v37 = vld [vmem:[#allocation8 + $0x1084] ss:$24 sps:$4 sm:$0xff]  }
 0x54c   :  { %5143 = vmatprep.subr.bf16.mxu0 %v14900_v30  ;;  %9753 = vmatprep.subr.bf16.mxu1 %v14903_v54  ;;  %v14993_v55 = vld [vmem:[#allocation8 + $0x2224] ss:$24 sps:$4 sm:$0xff]   ;;  %v14988_v30 = vld [vmem:[#allocation8 + $0x1080] ss:$24 sps:$4 sm:$0xff]  }
 0x54d   :  { %5173 = vmatprep.mubr.bf16.mxu0 %v15441_v35  ;;  %v14991_v54 = vld [vmem:[#allocation8 + $0x2220] ss:$24 sps:$4 sm:$0xff]  }
 0x54f   :  { %5144 = vmatpush1.bf16.msra.mxu0 %v14898_v38  ;;  %9754 = vmatpush1.bf16.msra.mxu1 %v14901_v39  ;;  %v14996_v38 = vld [vmem:[#allocation8 + $0x10b4] ss:$24 sps:$4 sm:$0xff]  }
 0x550   :  { %5145 = vmatprep.subr.bf16.mxu0 %v14906_v33  ;;  %9780 = vmatprep.subr.bf16.mxu1 %v14909_v41  ;;  %v14999_v39 = vld [vmem:[#allocation8 + $0x2254] ss:$24 sps:$4 sm:$0xff]   ;;  %v14994_v33 = vld [vmem:[#allocation8 + $0x10b0] ss:$24 sps:$4 sm:$0xff]  }
 0x551   :  { %v14997_v41 = vld [vmem:[#allocation8 + $0x2250] ss:$24 sps:$4 sm:$0xff]  }
 0x552   :  { %9772 = vmatmul.mubr.bf16.vlgmr.msra.gmra.mrb[8].mxu1 %v15891_v16 }
 0x553   :  { %5146 = vmatpush1.bf16.msra.mxu0 %v14904_v43  ;;  %9781 = vmatpush1.bf16.msra.mxu1 %v14907_v36  ;;  %v15002_v43 = vld [vmem:[#allocation8 + $0x10e4] ss:$24 sps:$4 sm:$0xff]  }
 0x554   :  { %5147 = vmatprep.subr.bf16.mxu0 %v14912_v44  ;;  %9782 = vmatprep.subr.bf16.mxu1 %v14915_v45  ;;  %v15005_v36 = vld [vmem:[#allocation8 + $0x210c] ss:$24 sps:$4 sm:$0xff]   ;;  %v15000_v44 = vld [vmem:[#allocation8 + $0x10e0] ss:$24 sps:$4 sm:$0xff]  }
 0x555   :  { %9812 = vmatprep.mubr.bf16.mxu1 %v15441_v35  ;;  %v15003_v45 = vld [vmem:[#allocation8 + $0x2108] ss:$24 sps:$4 sm:$0xff]  }
 0x557   :  { %5148 = vmatpush1.bf16.msra.mxu0 %v14910_v46  ;;  %9783 = vmatpush1.bf16.msra.mxu1 %v14913_v47  ;;  %v15008_v46 = vld [vmem:[#allocation8 + $0x1114] ss:$24 sps:$4 sm:$0xff]  }
 0x558   :  { %5149 = vmatprep.subr.bf16.mxu0 %v14918_v48  ;;  %9784 = vmatprep.subr.bf16.mxu1 %v14921_v50  ;;  %v15011_v47 = vld [vmem:[#allocation8 + $0x213c] ss:$24 sps:$4 sm:$0xff]   ;;  %v15907_v48 = vld [vmem:[#allocation2 + $0x58] sm:$0xf] }
 0x559   :  { %v15009_v50 = vld [vmem:[#allocation8 + $0x2138] ss:$24 sps:$4 sm:$0xff]  }
 0x55b   :  { %5150 = vmatpush1.bf16.msra.mxu0 %v14916_v28  ;;  %9785 = vmatpush1.bf16.msra.mxu1 %v14919_v40  ;;  %v15014_v28 = vld [vmem:[#allocation8 + $0x1144] ss:$24 sps:$4 sm:$0xff]  }
 0x55c   :  { %5151 = vmatprep.subr.bf16.mxu0 %v14924_v56  ;;  %9786 = vmatprep.subr.bf16.mxu1 %v14927_v42  ;;  %v15017_v40 = vld [vmem:[#allocation8 + $0x216c] ss:$24 sps:$4 sm:$0xff]   ;;  %v15012_v56 = vld [vmem:[#allocation8 + $0x1140] ss:$24 sps:$4 sm:$0xff]  }
 0x55d   :  { %v15015_v42 = vld [vmem:[#allocation8 + $0x2168] ss:$24 sps:$4 sm:$0xff]  }
 0x55f   :  { %5152 = vmatpush1.bf16.msra.mxu0 %v14922_v58  ;;  %9787 = vmatpush1.bf16.msra.mxu1 %v14925_v59  ;;  %v15020_v58 = vld [vmem:[#allocation8 + $0x1174] ss:$24 sps:$4 sm:$0xff]  }
 0x560   :  { %5153 = vmatprep.subr.bf16.mxu0 %v14930_v60  ;;  %9788 = vmatprep.subr.bf16.mxu1 %v14933_v61  ;;  %v15023_v59 = vld [vmem:[#allocation8 + $0x219c] ss:$24 sps:$4 sm:$0xff]   ;;  %v15018_v60 = vld [vmem:[#allocation8 + $0x1170] ss:$24 sps:$4 sm:$0xff]  }
 0x561   :  { %v15021_v61 = vld [vmem:[#allocation8 + $0x2198] ss:$24 sps:$4 sm:$0xff]  }
 0x563   :  { %5154 = vmatpush1.bf16.msra.mxu0 %v14928_v63  ;;  %9789 = vmatpush1.bf16.msra.mxu1 %v14931_v0  ;;  %v15026_v63 = vld [vmem:[#allocation8 + $0x11a4] ss:$24 sps:$4 sm:$0xff]  }
 0x564   :  { %5155 = vmatprep.subr.bf16.mxu0 %v14936_v51  ;;  %9790 = vmatprep.subr.bf16.mxu1 %v14939_v19  ;;  %v15029_v0 = vld [vmem:[#allocation8 + $0x21cc] ss:$24 sps:$4 sm:$0xff]   ;;  %v15024_v51 = vld [vmem:[#allocation8 + $0x11a0] ss:$24 sps:$4 sm:$0xff]  }
 0x565   :  { %v15027_v19 = vld [vmem:[#allocation8 + $0x21c8] ss:$24 sps:$4 sm:$0xff]  }
 0x567   :  { %5156 = vmatpush1.bf16.msra.mxu0 %v14934_v3  ;;  %9791 = vmatpush1.bf16.msra.mxu1 %v14937_v57  ;;  %v15032_v3 = vld [vmem:[#allocation8 + $0x11d4] ss:$24 sps:$4 sm:$0xff]  }
 0x568   :  { %5182 = vmatprep.subr.bf16.mxu0 %v14942_v4  ;;  %9792 = vmatprep.subr.bf16.mxu1 %v14945_v6  ;;  %v15035_v57 = vld [vmem:[#allocation8 + $0x21fc] ss:$24 sps:$4 sm:$0xff]   ;;  %v15030_v4 = vld [vmem:[#allocation8 + $0x11d0] ss:$24 sps:$4 sm:$0xff]  }
 0x569   :  { %v15033_v6 = vld [vmem:[#allocation8 + $0x21f8] ss:$24 sps:$4 sm:$0xff]  }
 0x56a   :  { %5174 = vmatmul.mubr.bf16.vlgmr.msra.gmra.mrb[56].mxu0 %v15895_v52 }
 0x56b   :  { %5183 = vmatpush1.bf16.msra.mxu0 %v14940_v7  ;;  %9793 = vmatpush1.bf16.msra.mxu1 %v14943_v62  ;;  %v15038_v7 = vld [vmem:[#allocation8 + $0x108c] ss:$24 sps:$4 sm:$0xff]  }
 0x56c   :  { %5184 = vmatprep.subr.bf16.mxu0 %v14948_v9  ;;  %9794 = vmatprep.subr.bf16.mxu1 %v14951_v10  ;;  %v15041_v62 = vld [vmem:[#allocation8 + $0x222c] ss:$24 sps:$4 sm:$0xff]   ;;  %v15036_v9 = vld [vmem:[#allocation8 + $0x1088] ss:$24 sps:$4 sm:$0xff]  }
 0x56d   :  { %5214 = vmatprep.mubr.bf16.mxu0 %v15441_v35  ;;  %v15039_v10 = vld [vmem:[#allocation8 + $0x2228] ss:$24 sps:$4 sm:$0xff]  }
 0x56f   :  { %5185 = vmatpush1.bf16.msra.mxu0 %v14946_v2  ;;  %9795 = vmatpush1.bf16.msra.mxu1 %v14949_v11  ;;  %v15044_v2 = vld [vmem:[#allocation8 + $0x10bc] ss:$24 sps:$4 sm:$0xff]  }
 0x570   :  { %5186 = vmatprep.subr.bf16.mxu0 %v14954_v12  ;;  %10116 = vmatprep.subr.bf16.mxu1 %v14957_v13  ;;  %v15047_v11 = vld [vmem:[#allocation8 + $0x225c] ss:$24 sps:$4 sm:$0xff]   ;;  %v15911_v12 = vld [vmem:[#allocation2 + $0x2c] sm:$0xf]  ;;  %v15042_v13 = vld [vmem:[#allocation8 + $0x10b8] ss:$24 sps:$4 sm:$0xff]  }
 0x572   :  { %9813 = vmatmul.mubr.bf16.vlgmr.msra.gmra.mrb[0].mxu1 %v15891_v16  ;;  %v14970_v16 = vld [vmem:[#allocation8 + $0x1000] ss:$24 sps:$4 sm:$0xff]  }
 0x573   :  { %5187 = vmatpush1.bf16.msra.mxu0 %v14952_v14  ;;  %10117 = vmatpush1.bf16.msra.mxu1 %v14955_v5  ;;  %v15045_v14 = vld [vmem:[#allocation8 + $0x2258] ss:$24 sps:$4 sm:$0xff]   ;;  %v15050_v5 = vld [vmem:[#allocation8 + $0x10ec] ss:$24 sps:$4 sm:$0xff]  }
 0x574   :  { %5188 = vmatprep.subr.bf16.mxu0 %v14960_v17  ;;  %10118 = vmatprep.subr.bf16.mxu1 %v14963_v21  ;;  %v15053_v17 = vld [vmem:[#allocation8 + $0x2114] ss:$24 sps:$4 sm:$0xff]   ;;  %v15048_v21 = vld [vmem:[#allocation8 + $0x10e8] ss:$24 sps:$4 sm:$0xff]  }
 0x575   :  { %10148 = vmatprep.mubr.bf16.mxu1 %v15441_v35 }
 0x577   :  { %5189 = vmatpush1.bf16.msra.mxu0 %v14958_v8  ;;  %10119 = vmatpush1.bf16.msra.mxu1 %v14961_v15  ;;  %v15051_v8 = vld [vmem:[#allocation8 + $0x2110] ss:$24 sps:$4 sm:$0xff]   ;;  %v15056_v15 = vld [vmem:[#allocation8 + $0x111c] ss:$24 sps:$4 sm:$0xff]  }
 0x578   :  { %5190 = vmatprep.subr.bf16.mxu0 %v14966_v22  ;;  %10120 = vmatprep.subr.bf16.mxu1 %v14969_v23  ;;  %v15059_v22 = vld [vmem:[#allocation8 + $0x2144] ss:$24 sps:$4 sm:$0xff]   ;;  %v15054_v23 = vld [vmem:[#allocation8 + $0x1118] ss:$24 sps:$4 sm:$0xff]  }
 0x57b   :  { %5191 = vmatpush1.bf16.msra.mxu0 %v14964_v24  ;;  %10121 = vmatpush1.bf16.msra.mxu1 %v14967_v25  ;;  %v15057_v24 = vld [vmem:[#allocation8 + $0x2140] ss:$24 sps:$4 sm:$0xff]   ;;  %v15062_v25 = vld [vmem:[#allocation8 + $0x114c] ss:$24 sps:$4 sm:$0xff]  }
 0x57c   :  { %5192 = vmatprep.subr.bf16.mxu0 %v14972_v26  ;;  %10122 = vmatprep.subr.bf16.mxu1 %v14975_v1  ;;  %v15065_v26 = vld [vmem:[#allocation8 + $0x2174] ss:$24 sps:$4 sm:$0xff]   ;;  %v15060_v1 = vld [vmem:[#allocation8 + $0x1148] ss:$24 sps:$4 sm:$0xff]  }
 0x57f   :  { %5193 = vmatpush1.bf16.msra.mxu0 %v14970_v16  ;;  %10123 = vmatpush1.bf16.msra.mxu1 %v14973_v29  ;;  %v15063_v16 = vld [vmem:[#allocation8 + $0x2170] ss:$24 sps:$4 sm:$0xff]   ;;  %v15068_v29 = vld [vmem:[#allocation8 + $0x117c] ss:$24 sps:$4 sm:$0xff]  }
 0x580   :  { %5194 = vmatprep.subr.bf16.mxu0 %v14978_v20  ;;  %10124 = vmatprep.subr.bf16.mxu1 %v14981_v31  ;;  %v15071_v20 = vld [vmem:[#allocation8 + $0x21a4] ss:$24 sps:$4 sm:$0xff]   ;;  %v15066_v31 = vld [vmem:[#allocation8 + $0x1178] ss:$24 sps:$4 sm:$0xff]  }
 0x583   :  { %5195 = vmatpush1.bf16.msra.mxu0 %v14976_v49  ;;  %10125 = vmatpush1.bf16.msra.mxu1 %v14979_v18  ;;  %v15069_v49 = vld [vmem:[#allocation8 + $0x21a0] ss:$24 sps:$4 sm:$0xff]   ;;  %v15074_v18 = vld [vmem:[#allocation8 + $0x11ac] ss:$24 sps:$4 sm:$0xff]  }
 0x584   :  { %5196 = vmatprep.subr.bf16.mxu0 %v14984_v32  ;;  %10126 = vmatprep.subr.bf16.mxu1 %v14987_v53  ;;  %v15077_v32 = vld [vmem:[#allocation8 + $0x21d4] ss:$24 sps:$4 sm:$0xff]   ;;  %v15072_v53 = vld [vmem:[#allocation8 + $0x11a8] ss:$24 sps:$4 sm:$0xff]  }
 0x587   :  { %5197 = vmatpush1.bf16.msra.mxu0 %v14982_v34  ;;  %10127 = vmatpush1.bf16.msra.mxu1 %v14985_v27  ;;  %v15075_v34 = vld [vmem:[#allocation8 + $0x21d0] ss:$24 sps:$4 sm:$0xff]   ;;  %v15080_v27 = vld [vmem:[#allocation8 + $0x11dc] ss:$24 sps:$4 sm:$0xff]  }
 0x588   :  { %5518 = vmatprep.subr.bf16.mxu0 %v14990_v37  ;;  %10128 = vmatprep.subr.bf16.mxu1 %v14993_v55  ;;  %v15083_v37 = vld [vmem:[#allocation8 + $0x2204] ss:$24 sps:$4 sm:$0xff]   ;;  %v15078_v55 = vld [vmem:[#allocation8 + $0x11d8] ss:$24 sps:$4 sm:$0xff]  }
 0x58a   :  { %5215 = vmatmul.mubr.bf16.vlgmr.msra.gmra.mrb[60].mxu0 %v15895_v52  ;;  %v15006_v52 = vld [vmem:[#allocation8 + $0x1110] ss:$24 sps:$4 sm:$0xff]  }
 0x58b   :  { %5519 = vmatpush1.bf16.msra.mxu0 %v14988_v30  ;;  %10129 = vmatpush1.bf16.msra.mxu1 %v14991_v54  ;;  %v15081_v30 = vld [vmem:[#allocation8 + $0x2200] ss:$24 sps:$4 sm:$0xff]   ;;  %v15086_v54 = vld [vmem:[#allocation8 + $0x2234] ss:$24 sps:$4 sm:$0xff]  }
 0x58c   :  { %5520 = vmatprep.subr.bf16.mxu0 %v14996_v38  ;;  %10130 = vmatprep.subr.bf16.mxu1 %v14999_v39  ;;  %v15084_v38 = vld [vmem:[#allocation8 + $0x2230] ss:$24 sps:$4 sm:$0xff]   ;;  %v15089_v39 = vld [vmem:[#allocation8 + $0x2264] ss:$24 sps:$4 sm:$0xff]  }
 0x58d   :  { %5550 = vmatprep.mubr.bf16.mxu0 %v15441_v35 }
 0x58f   :  { %5521 = vmatpush1.bf16.msra.mxu0 %v14994_v33  ;;  %10131 = vmatpush1.bf16.msra.mxu1 %v14997_v41  ;;  %v15087_v33 = vld [vmem:[#allocation8 + $0x2260] ss:$24 sps:$4 sm:$0xff]   ;;  %v15092_v41 = vld [vmem:[#allocation8 + $0x2284] ss:$24 sps:$4 sm:$0xff]  }
 0x590   :  { %5522 = vmatprep.subr.bf16.mxu0 %v15002_v43  ;;  %10157 = vmatprep.subr.bf16.mxu1 %v15005_v36  ;;  %v15090_v43 = vld [vmem:[#allocation8 + $0x2280] ss:$24 sps:$4 sm:$0xff]   ;;  %v15095_v36 = vld [vmem:[#allocation8 + $0x22b4] ss:$24 sps:$4 sm:$0xff]  }
 0x592   :  { %10149 = vmatmul.mubr.bf16.vlgmr.msra.gmra.mrb[4].mxu1 %v15907_v48 }
 0x593   :  { %5523 = vmatpush1.bf16.msra.mxu0 %v15000_v44  ;;  %10158 = vmatpush1.bf16.msra.mxu1 %v15003_v45  ;;  %v15093_v44 = vld [vmem:[#allocation8 + $0x22b0] ss:$24 sps:$4 sm:$0xff]   ;;  %v15098_v45 = vld [vmem:[#allocation8 + $0x22e4] ss:$24 sps:$4 sm:$0xff]  }
 0x594   :  { %5524 = vmatprep.subr.bf16.mxu0 %v15008_v46  ;;  %10159 = vmatprep.subr.bf16.mxu1 %v15011_v47  ;;  %v15096_v46 = vld [vmem:[#allocation8 + $0x22e0] ss:$24 sps:$4 sm:$0xff]   ;;  %v15101_v47 = vld [vmem:[#allocation8 + $0x2314] ss:$24 sps:$4 sm:$0xff]  }
 0x595   :  { %10189 = vmatprep.mubr.bf16.mxu1 %v15441_v35 }
 0x597   :  { %5525 = vmatpush1.bf16.msra.mxu0 %v15006_v52  ;;  %10160 = vmatpush1.bf16.msra.mxu1 %v15009_v50  ;;  %v15099_v52 = vld [vmem:[#allocation8 + $0x2310] ss:$24 sps:$4 sm:$0xff]   ;;  %v15104_v50 = vld [vmem:[#allocation8 + $0x2344] ss:$24 sps:$4 sm:$0xff]  }
 0x598   :  { %5526 = vmatprep.subr.bf16.mxu0 %v15014_v28  ;;  %10161 = vmatprep.subr.bf16.mxu1 %v15017_v40  ;;  %v15102_v28 = vld [vmem:[#allocation8 + $0x2340] ss:$24 sps:$4 sm:$0xff]   ;;  %v15107_v40 = vld [vmem:[#allocation8 + $0x2374] ss:$24 sps:$4 sm:$0xff]  }
 0x59b   :  { %5527 = vmatpush1.bf16.msra.mxu0 %v15012_v56  ;;  %10162 = vmatpush1.bf16.msra.mxu1 %v15015_v42  ;;  %v15110_v56 = vld [vmem:[#allocation8 + $0x23a4] ss:$24 sps:$4 sm:$0xff]   ;;  %v15108_v42 = vld [vmem:[#allocation8 + $0x23a0] ss:$24 sps:$4 sm:$0xff]  }
 0x59c   :  { %5528 = vmatprep.subr.bf16.mxu0 %v15020_v58  ;;  %10163 = vmatprep.subr.bf16.mxu1 %v15023_v59  ;;  %v15113_v58 = vld [vmem:[#allocation8 + $0x23d4] ss:$24 sps:$4 sm:$0xff]   ;;  %v15111_v59 = vld [vmem:[#allocation8 + $0x23d0] ss:$24 sps:$4 sm:$0xff]  }
 0x59f   :  { %5529 = vmatpush1.bf16.msra.mxu0 %v15018_v60  ;;  %10164 = vmatpush1.bf16.msra.mxu1 %v15021_v61  ;;  %v15116_v60 = vld [vmem:[#allocation8 + $0x228c] ss:$24 sps:$4 sm:$0xff]   ;;  %v15114_v61 = vld [vmem:[#allocation8 + $0x2288] ss:$24 sps:$4 sm:$0xff]  }
 0x5a0   :  { %5530 = vmatprep.subr.bf16.mxu0 %v15026_v63  ;;  %10165 = vmatprep.subr.bf16.mxu1 %v15029_v0  ;;  %v15119_v63 = vld [vmem:[#allocation8 + $0x22bc] ss:$24 sps:$4 sm:$0xff]  }
 0x5a1   :  { %v15920_v0 = vld [vmem:[#allocation2 + $0x5c] sm:$0xf] }
 0x5a3   :  { %5531 = vmatpush1.bf16.msra.mxu0 %v15024_v51  ;;  %10166 = vmatpush1.bf16.msra.mxu1 %v15027_v19  ;;  %v15117_v51 = vld [vmem:[#allocation8 + $0x22b8] ss:$24 sps:$4 sm:$0xff]   ;;  %v15122_v19 = vld [vmem:[#allocation8 + $0x22ec] ss:$24 sps:$4 sm:$0xff]  }
 0x5a4   :  { %5532 = vmatprep.subr.bf16.mxu0 %v15032_v3  ;;  %10167 = vmatprep.subr.bf16.mxu1 %v15035_v57  ;;  %v15120_v3 = vld [vmem:[#allocation8 + $0x22e8] ss:$24 sps:$4 sm:$0xff]   ;;  %v15125_v57 = vld [vmem:[#allocation8 + $0x231c] ss:$24 sps:$4 sm:$0xff]  }
 0x5a7   :  { %5533 = vmatpush1.bf16.msra.mxu0 %v15030_v4  ;;  %10168 = vmatpush1.bf16.msra.mxu1 %v15033_v6  ;;  %v15123_v4 = vld [vmem:[#allocation8 + $0x2318] ss:$24 sps:$4 sm:$0xff]   ;;  %v15128_v6 = vld [vmem:[#allocation8 + $0x234c] ss:$24 sps:$4 sm:$0xff]  }
 0x5a8   :  { %5559 = vmatprep.subr.bf16.mxu0 %v15038_v7  ;;  %10169 = vmatprep.subr.bf16.mxu1 %v15041_v62  ;;  %v15126_v7 = vld [vmem:[#allocation8 + $0x2348] ss:$24 sps:$4 sm:$0xff]   ;;  %v15131_v62 = vld [vmem:[#allocation8 + $0x237c] ss:$24 sps:$4 sm:$0xff]  }
 0x5aa   :  { %5551 = vmatmul.mubr.bf16.vlgmr.msra.gmra.mrb[52].mxu0 %v15911_v12 }
 0x5ab   :  { %5560 = vmatpush1.bf16.msra.mxu0 %v15036_v9  ;;  %10170 = vmatpush1.bf16.msra.mxu1 %v15039_v10  ;;  %v15129_v9 = vld [vmem:[#allocation8 + $0x2378] ss:$24 sps:$4 sm:$0xff]   ;;  %v15134_v10 = vld [vmem:[#allocation8 + $0x23ac] ss:$24 sps:$4 sm:$0xff]  }
 0x5ac   :  { %5561 = vmatprep.subr.bf16.mxu0 %v15044_v2  ;;  %10171 = vmatprep.subr.bf16.mxu1 %v15047_v11  ;;  %v15132_v2 = vld [vmem:[#allocation8 + $0x23a8] ss:$24 sps:$4 sm:$0xff]   ;;  %v15137_v11 = vld [vmem:[#allocation8 + $0x23dc] ss:$24 sps:$4 sm:$0xff]  }
 0x5ad   :  { %5591 = vmatprep.mubr.bf16.mxu0 %v15441_v35 }
 0x5af   :  { %5562 = vmatpush1.bf16.msra.mxu0 %v15042_v13  ;;  %10172 = vmatpush1.bf16.msra.mxu1 %v15045_v14  ;;  %v15140_v13 = vld [vmem:[#allocation8 + $0x2294] ss:$24 sps:$4 sm:$0xff]   ;;  %v15138_v14 = vld [vmem:[#allocation8 + $0x2290] ss:$24 sps:$4 sm:$0xff]  }
 0x5b0   :  { %5563 = vmatprep.subr.bf16.mxu0 %v15050_v5  ;;  %10198 = vmatprep.subr.bf16.mxu1 %v15053_v17  ;;  %v15143_v5 = vld [vmem:[#allocation8 + $0x22c4] ss:$24 sps:$4 sm:$0xff]   ;;  %v15141_v17 = vld [vmem:[#allocation8 + $0x22c0] ss:$24 sps:$4 sm:$0xff]  }
 0x5b2   :  { %10190 = vmatmul.mubr.bf16.vlgmr.msra.gmra.mrb[8].mxu1 %v15907_v48 }
 0x5b3   :  { %5564 = vmatpush1.bf16.msra.mxu0 %v15048_v21  ;;  %10199 = vmatpush1.bf16.msra.mxu1 %v15051_v8  ;;  %v15146_v21 = vld [vmem:[#allocation8 + $0x22f4] ss:$24 sps:$4 sm:$0xff]   ;;  %v15144_v8 = vld [vmem:[#allocation8 + $0x22f0] ss:$24 sps:$4 sm:$0xff]  }
 0x5b4   :  { %5565 = vmatprep.subr.bf16.mxu0 %v15056_v15  ;;  %10200 = vmatprep.subr.bf16.mxu1 %v15059_v22  ;;  %v15149_v15 = vld [vmem:[#allocation8 + $0x2324] ss:$24 sps:$4 sm:$0xff]   ;;  %v15147_v22 = vld [vmem:[#allocation8 + $0x2320] ss:$24 sps:$4 sm:$0xff]  }
 0x5b5   :  { %10230 = vmatprep.mubr.bf16.mxu1 %v15441_v35 }
 0x5b7   :  { %5566 = vmatpush1.bf16.msra.mxu0 %v15054_v23  ;;  %10201 = vmatpush1.bf16.msra.mxu1 %v15057_v24  ;;  %v15152_v23 = vld [vmem:[#allocation8 + $0x2354] ss:$24 sps:$4 sm:$0xff]   ;;  %v15150_v24 = vld [vmem:[#allocation8 + $0x2350] ss:$24 sps:$4 sm:$0xff]  }
 0x5b8   :  { %5567 = vmatprep.subr.bf16.mxu0 %v15062_v25  ;;  %10202 = vmatprep.subr.bf16.mxu1 %v15065_v26  ;;  %v15155_v25 = vld [vmem:[#allocation8 + $0x2384] ss:$24 sps:$4 sm:$0xff]   ;;  %v11179_v26 = vld [vmem:[#allocation13 + $0x80] sm:$0xff] }
 0x5bb   :  { %5568 = vmatpush1.bf16.msra.mxu0 %v15060_v1  ;;  %10203 = vmatpush1.bf16.msra.mxu1 %v15063_v16  ;;  %v11180_v1 = vld [vmem:[#allocation13 + $0x88] sm:$0xff]  ;;  %v11163_v16 = vld [vmem:[#allocation13] sm:$0xff] }
 0x5bc   :  { %5569 = vmatprep.subr.bf16.mxu0 %v15068_v29  ;;  %10204 = vmatprep.subr.bf16.mxu1 %v15071_v20  ;;  %v13022_v29 = vpack.c.bf16 %v11180_v1, %v11179_v26  ;;  %v11164_v20 = vld [vmem:[#allocation13 + $0x8] sm:$0xff]  ;;  %v15200_v26 = vld [vmem:[#allocation8 + $0x24cc] ss:$24 sps:$4 sm:$0xff]  }
 0x5bf   :  { %5570 = vmatpush1.bf16.msra.mxu0 %v15066_v31  ;;  %10205 = vmatpush1.bf16.msra.mxu1 %v15069_v49  ;;  %v11181_v31 = vld [vmem:[#allocation13 + $0x90] sm:$0xff]  ;;  %v11182_v49 = vld [vmem:[#allocation13 + $0x98] sm:$0xff] }
 0x5c0   :  { %5571 = vmatprep.subr.bf16.mxu0 %v15074_v18  ;;  %10206 = vmatprep.subr.bf16.mxu1 %v15077_v32  ;;  %v13024_v18 = vpack.c.bf16 %v11164_v20, %v11163_v16  ;;  %v13026_v32 = vpack.c.bf16 %v11182_v49, %v11181_v31  ;;  %v15198_v20 = vld [vmem:[#allocation8 + $0x24c8] ss:$24 sps:$4 sm:$0xff]   ;;  %v15203_v49 = vld [vmem:[#allocation8 + $0x24fc] ss:$24 sps:$4 sm:$0xff]  }
 0x5c3   :  { %5572 = vmatpush1.bf16.msra.mxu0 %v15072_v53  ;;  %10207 = vmatpush1.bf16.msra.mxu1 %v15075_v34  ;;  %v11165_v53 = vld [vmem:[#allocation13 + $0x10] sm:$0xff]  ;;  %v11166_v34 = vld [vmem:[#allocation13 + $0x18] sm:$0xff] }
 0x5c4   :  { %5573 = vmatprep.subr.bf16.mxu0 %v15080_v27  ;;  %10208 = vmatprep.subr.bf16.mxu1 %v15083_v37  ;;  %v11183_v27 = vld [vmem:[#allocation13 + $0xa0] sm:$0xff]  ;;  %v15153_v37 = vld [vmem:[#allocation8 + $0x2380] ss:$24 sps:$4 sm:$0xff]  }
 0x5c7   :  { %5574 = vmatpush1.bf16.msra.mxu0 %v15078_v55  ;;  %10209 = vmatpush1.bf16.msra.mxu1 %v15081_v30  ;;  %v11184_v55 = vld [vmem:[#allocation13 + $0xa8] sm:$0xff] }
 0x5c8   :  { %10210 = vmatprep.subr.bf16.mxu1 %v15086_v54  ;;  %13023 = vmatprep.subr.bf16.mxu0 %v13022_v29  ;;  %v15158_v30 = vld [vmem:[#allocation8 + $0x23b4] ss:$24 sps:$4 sm:$0xff]   ;;  %v13028_v54 = vpack.c.bf16 %v11166_v34, %v11165_v53  ;;  %v15204_v53 = vld [vmem:[#allocation8 + $0x2528] ss:$24 sps:$4 sm:$0xff]  }
 0x5c9   :  { %v15209_v34 = vld [vmem:[#allocation8 + $0x255c] ss:$24 sps:$4 sm:$0xff]  }
 0x5ca   :  { %5592 = vmatmul.mubr.bf16.vlgmr.msra.gmra.mrb[56].mxu0 %v15911_v12  ;;  %v15135_v12 = vld [vmem:[#allocation8 + $0x23d8] ss:$24 sps:$4 sm:$0xff]  }
 0x5cb   :  { %10211 = vmatpush1.bf16.msra.mxu1 %v15084_v38  ;;  %13025 = vmatpush3.bf16.msra.mxu0 %v13024_v18  ;;  %v13030_v38 = vpack.c.bf16 %v11184_v55, %v11183_v27  ;;  %v15201_v18 = vld [vmem:[#allocation8 + $0x24f8] ss:$24 sps:$4 sm:$0xff]  }
 0x5cc   :  { %10212 = vmatprep.subr.bf16.mxu1 %v15089_v39  ;;  %13027 = vmatprep.subr.bf16.mxu0 %v13026_v32  ;;  %v11167_v39 = vld [vmem:[#allocation13 + $0x20] sm:$0xff] }
 0x5cd   :  { %v15206_v32 = vld [vmem:[#allocation8 + $0x252c] ss:$24 sps:$4 sm:$0xff]   ;;  %v15207_v27 = vld [vmem:[#allocation8 + $0x2558] ss:$24 sps:$4 sm:$0xff]  }
 0x5ce   :  { %v15210_v55 = vld [vmem:[#allocation8 + $0x2410] ss:$24 sps:$4 sm:$0xff]  }
 0x5cf   :  { %10213 = vmatpush1.bf16.msra.mxu1 %v15087_v33  ;;  %v11168_v33 = vld [vmem:[#allocation13 + $0x28] sm:$0xff]  ;;  %13029 = vmatpush3.bf16.msra.mxu0 %v13028_v54 }
 0x5d0   :  { %10534 = vmatprep.subr.bf16.mxu1 %v15092_v41  ;;  %v11185_v41 = vld [vmem:[#allocation13 + $0xb0] sm:$0xff]  ;;  %13031 = vmatprep.subr.bf16.mxu0 %v13030_v38  ;;  %v15218_v38 = vld [vmem:[#allocation8 + $0x2474] ss:$24 sps:$4 sm:$0xff]  }
 0x5d1   :  { %v15213_v54 = vld [vmem:[#allocation8 + $0x2440] ss:$24 sps:$4 sm:$0xff]  }
 0x5d2   :  { %10231 = vmatmul.mubr.bf16.vlgmr.msra.gmra.mrb[0].mxu1 %v15907_v48  ;;  %v15105_v48 = vld [vmem:[#allocation8 + $0x2370] ss:$24 sps:$4 sm:$0xff]  }
 0x5d3   :  { %10535 = vmatpush1.bf16.msra.mxu1 %v15090_v43  ;;  %10566 = vmatprep.mubr.bf16.mxu1 %v15441_v35  ;;  %v11186_v43 = vld [vmem:[#allocation13 + $0xb8] sm:$0xff] }
 0x5d4   :  { %10536 = vmatprep.subr.bf16.mxu1 %v15095_v36  ;;  %v15156_v36 = vld [vmem:[#allocation8 + $0x23b0] ss:$24 sps:$4 sm:$0xff]  }
 0x5d7   :  { %10537 = vmatpush1.bf16.msra.mxu1 %v15093_v44  ;;  %v15161_v44 = vld [vmem:[#allocation8 + $0x23e4] ss:$24 sps:$4 sm:$0xff]  }
 0x5d8   :  { %10538 = vmatprep.subr.bf16.mxu1 %v15098_v45  ;;  %v13032_v45 = vpack.c.bf16 %v11168_v33, %v11167_v39  ;;  %v15216_v39 = vld [vmem:[#allocation8 + $0x2470] ss:$24 sps:$4 sm:$0xff]   ;;  %v15221_v33 = vld [vmem:[#allocation8 + $0x24a4] ss:$24 sps:$4 sm:$0xff]  }
 0x5da   :  { %13033 = vmatpush3.bf16.msra.mxu0 %v13032_v45 }
 0x5db   :  { %10539 = vmatpush1.bf16.msra.mxu1 %v15096_v46  ;;  %v13034_v46 = vpack.c.bf16 %v11186_v43, %v11185_v41  ;;  %v15219_v41 = vld [vmem:[#allocation8 + $0x24a0] ss:$24 sps:$4 sm:$0xff]   ;;  %v15224_v43 = vld [vmem:[#allocation8 + $0x24d4] ss:$24 sps:$4 sm:$0xff]  }
 0x5dc   :  { %10540 = vmatprep.subr.bf16.mxu1 %v15101_v47  ;;  %v11169_v47 = vld [vmem:[#allocation13 + $0x30] sm:$0xff] }
 0x5dd   :  { %13035 = vmatprep.subr.bf16.mxu0 %v13034_v46  ;;  %v15222_v46 = vld [vmem:[#allocation8 + $0x24d0] ss:$24 sps:$4 sm:$0xff]  }
 0x5df   :  { %10541 = vmatpush1.bf16.msra.mxu1 %v15099_v52  ;;  %v11170_v52 = vld [vmem:[#allocation13 + $0x38] sm:$0xff] }
 0x5e0   :  { %10542 = vmatprep.subr.bf16.mxu1 %v15104_v50  ;;  %v11187_v50 = vld [vmem:[#allocation13 + $0xc0] sm:$0xff] }
 0x5e3   :  { %10543 = vmatpush1.bf16.msra.mxu1 %v15102_v28  ;;  %v11188_v28 = vld [vmem:[#allocation13 + $0xc8] sm:$0xff] }
 0x5e4   :  { %10544 = vmatprep.subr.bf16.mxu1 %v15107_v40  ;;  %v15159_v40 = vld [vmem:[#allocation8 + $0x23e0] ss:$24 sps:$4 sm:$0xff]  }
 0x5e7   :  { %10545 = vmatpush1.bf16.msra.mxu1 %v15105_v48  ;;  %v15164_v48 = vld [vmem:[#allocation8 + $0x2404] ss:$24 sps:$4 sm:$0xff]  }
 0x5e8   :  { %10546 = vmatprep.subr.bf16.mxu1 %v15110_v56  ;;  %v13036_v56 = vpack.c.bf16 %v11170_v52, %v11169_v47  ;;  %v15227_v52 = vld [vmem:[#allocation8 + $0x2504] ss:$24 sps:$4 sm:$0xff]  }
 0x5ea   :  { %13037 = vmatpush3.bf16.msra.mxu0 %v13036_v56 }
 0x5eb   :  { %10547 = vmatpush1.bf16.msra.mxu1 %v15108_v42  ;;  %v13038_v42 = vpack.c.bf16 %v11188_v28, %v11187_v50  ;;  %v15230_v50 = vld [vmem:[#allocation8 + $0x2534] ss:$24 sps:$4 sm:$0xff]   ;;  %v15228_v28 = vld [vmem:[#allocation8 + $0x2530] ss:$24 sps:$4 sm:$0xff]  }
 0x5ec   :  { %10548 = vmatprep.subr.bf16.mxu1 %v15113_v58  ;;  %v11171_v58 = vld [vmem:[#allocation13 + $0x40] sm:$0xff] }
 0x5ed   :  { %13039 = vmatprep.subr.bf16.mxu0 %v13038_v42 }
 0x5ef   :  { %10549 = vmatpush1.bf16.msra.mxu1 %v15111_v59  ;;  %v11172_v59 = vld [vmem:[#allocation13 + $0x48] sm:$0xff] }
 0x5f0   :  { %10575 = vmatprep.subr.bf16.mxu1 %v15116_v60  ;;  %v11189_v60 = vld [vmem:[#allocation13 + $0xd0] sm:$0xff] }
 0x5f2   :  { %10567 = vmatmul.mubr.bf16.vlgmr.msra.gmra.mrb[4].mxu1 %v15920_v0 }
 0x5f3   :  { %10576 = vmatpush1.bf16.msra.mxu1 %v15114_v61  ;;  %10607 = vmatprep.mubr.bf16.mxu1 %v15441_v35  ;;  %v11190_v61 = vld [vmem:[#allocation13 + $0xd8] sm:$0xff] }
 0x5f4   :  { %10577 = vmatprep.subr.bf16.mxu1 %v15119_v63  ;;  %v15162_v63 = vld [vmem:[#allocation8 + $0x2400] ss:$24 sps:$4 sm:$0xff]  }
 0x5f7   :  { %10578 = vmatpush1.bf16.msra.mxu1 %v15117_v51  ;;  %v15167_v51 = vld [vmem:[#allocation8 + $0x2434] ss:$24 sps:$4 sm:$0xff]  }
 0x5f8   :  { %10579 = vmatprep.subr.bf16.mxu1 %v15122_v19  ;;  %v13040_v19 = vpack.c.bf16 %v11172_v59, %v11171_v58 }
 0x5fa   :  { %13041 = vmatpush3.bf16.msra.mxu0 %v13040_v19  ;;  %v11192_v19 = vld [vmem:[#allocation13 + $0xe8] sm:$0xff] }
 0x5fb   :  { %10580 = vmatpush1.bf16.msra.mxu1 %v15120_v3  ;;  %v13042_v3 = vpack.c.bf16 %v11190_v61, %v11189_v60  ;;  %v11173_v60 = vld [vmem:[#allocation13 + $0x50] sm:$0xff]  ;;  %v11174_v61 = vld [vmem:[#allocation13 + $0x58] sm:$0xff] }
 0x5fc   :  { %10581 = vmatprep.subr.bf16.mxu1 %v15125_v57  ;;  %v15165_v57 = vld [vmem:[#allocation8 + $0x2430] ss:$24 sps:$4 sm:$0xff]  }
 0x5fd   :  { %13043 = vmatprep.subr.bf16.mxu0 %v13042_v3  ;;  %v11175_v3 = vld [vmem:[#allocation13 + $0x60] sm:$0xff] }
 0x5ff   :  { %10582 = vmatpush1.bf16.msra.mxu1 %v15123_v4  ;;  %v15170_v4 = vld [vmem:[#allocation8 + $0x2464] ss:$24 sps:$4 sm:$0xff]  }
 0x600   :  { %10583 = vmatprep.subr.bf16.mxu1 %v15128_v6  ;;  %v15168_v6 = vld [vmem:[#allocation8 + $0x2460] ss:$24 sps:$4 sm:$0xff]  }
 0x603   :  { %10584 = vmatpush1.bf16.msra.mxu1 %v15126_v7  ;;  %v15173_v7 = vld [vmem:[#allocation8 + $0x2494] ss:$24 sps:$4 sm:$0xff]  }
 0x604   :  { %10585 = vmatprep.subr.bf16.mxu1 %v15131_v62  ;;  %v15171_v62 = vld [vmem:[#allocation8 + $0x2490] ss:$24 sps:$4 sm:$0xff]  }
 0x607   :  { %10586 = vmatpush1.bf16.msra.mxu1 %v15129_v9  ;;  %v15176_v9 = vld [vmem:[#allocation8 + $0x24c4] ss:$24 sps:$4 sm:$0xff]  }
 0x608   :  { %10587 = vmatprep.subr.bf16.mxu1 %v15134_v10  ;;  %v15174_v10 = vld [vmem:[#allocation8 + $0x24c0] ss:$24 sps:$4 sm:$0xff]  }
 0x60b   :  { %10588 = vmatpush1.bf16.msra.mxu1 %v15132_v2  ;;  %v15177_v2 = vld [vmem:[#allocation8 + $0x24f0] ss:$24 sps:$4 sm:$0xff]  }
 0x60c   :  { %10589 = vmatprep.subr.bf16.mxu1 %v15137_v11  ;;  %v15182_v11 = vld [vmem:[#allocation8 + $0x2524] ss:$24 sps:$4 sm:$0xff]  }
 0x60f   :  { %10590 = vmatpush1.bf16.msra.mxu1 %v15135_v12  ;;  %v15180_v12 = vld [vmem:[#allocation8 + $0x2520] ss:$24 sps:$4 sm:$0xff]  }
 0x610   :  { %10616 = vmatprep.subr.bf16.mxu1 %v15140_v13  ;;  %v15185_v13 = vld [vmem:[#allocation8 + $0x2554] ss:$24 sps:$4 sm:$0xff]  }
 0x612   :  { %10608 = vmatmul.mubr.bf16.vlgmr.msra.gmra.mrb[8].mxu1 %v15920_v0 }
 0x613   :  { %10617 = vmatpush1.bf16.msra.mxu1 %v15138_v14  ;;  %10648 = vmatprep.mubr.bf16.mxu1 %v15441_v35  ;;  %v15183_v14 = vld [vmem:[#allocation8 + $0x2550] ss:$24 sps:$4 sm:$0xff]  }
 0x614   :  { %10618 = vmatprep.subr.bf16.mxu1 %v15143_v5  ;;  %v15188_v5 = vld [vmem:[#allocation8 + $0x240c] ss:$24 sps:$4 sm:$0xff]  }
 0x617   :  { %10619 = vmatpush1.bf16.msra.mxu1 %v15141_v17  ;;  %v15186_v17 = vld [vmem:[#allocation8 + $0x2408] ss:$24 sps:$4 sm:$0xff]  }
 0x618   :  { %10620 = vmatprep.subr.bf16.mxu1 %v15146_v21  ;;  %v15191_v21 = vld [vmem:[#allocation8 + $0x243c] ss:$24 sps:$4 sm:$0xff]  }
 0x61b   :  { %10621 = vmatpush1.bf16.msra.mxu1 %v15144_v8  ;;  %v15928_v8 = vld [vmem:[#allocation2 + $0x60] sm:$0xf] }
 0x61c   :  { %10622 = vmatprep.subr.bf16.mxu1 %v15149_v15  ;;  %v15189_v15 = vld [vmem:[#allocation8 + $0x2438] ss:$24 sps:$4 sm:$0xff]  }
 0x61f   :  { %10623 = vmatpush1.bf16.msra.mxu1 %v15147_v22  ;;  %v15194_v22 = vld [vmem:[#allocation8 + $0x246c] ss:$24 sps:$4 sm:$0xff]  }
 0x620   :  { %10624 = vmatprep.subr.bf16.mxu1 %v15152_v23  ;;  %v15192_v23 = vld [vmem:[#allocation8 + $0x2468] ss:$24 sps:$4 sm:$0xff]  }
 0x623   :  { %10625 = vmatpush1.bf16.msra.mxu1 %v15150_v24  ;;  %v15197_v24 = vld [vmem:[#allocation8 + $0x249c] ss:$24 sps:$4 sm:$0xff]  }
 0x624   :  { %10626 = vmatprep.subr.bf16.mxu1 %v15155_v25  ;;  %v15195_v25 = vld [vmem:[#allocation8 + $0x2498] ss:$24 sps:$4 sm:$0xff]  }
 0x627   :  { %10627 = vmatpush1.bf16.msra.mxu1 %v15153_v37  ;;  %v15212_v37 = vld [vmem:[#allocation8 + $0x2414] ss:$24 sps:$4 sm:$0xff]  }
 0x628   :  { %10628 = vmatprep.subr.bf16.mxu1 %v15158_v30  ;;  %v15215_v30 = vld [vmem:[#allocation8 + $0x2444] ss:$24 sps:$4 sm:$0xff]  }
 0x62b   :  { %10629 = vmatpush1.bf16.msra.mxu1 %v15156_v36 }
 0x62c   :  { %10630 = vmatprep.subr.bf16.mxu1 %v15161_v44 }
 0x62f   :  { %10631 = vmatpush1.bf16.msra.mxu1 %v15159_v40  ;;  %v15233_v40 = vld [vmem:[#allocation8 + $0x2564] ss:$24 sps:$4 sm:$0xff]  }
 0x630   :  { %10952 = vmatprep.subr.bf16.mxu1 %v15164_v48  ;;  %v15231_v48 = vld [vmem:[#allocation8 + $0x2560] ss:$24 sps:$4 sm:$0xff]  }
 0x632   :  { %10649 = vmatmul.mubr.bf16.vlgmr.msra.gmra.mrb[0].mxu1 %v15920_v0  ;;  %v15179_v0 = vld [vmem:[#allocation8 + $0x24f4] ss:$24 sps:$4 sm:$0xff]  }
 0x633   :  { %10953 = vmatpush1.bf16.msra.mxu1 %v15162_v63  ;;  %10984 = vmatprep.mubr.bf16.mxu1 %v15441_v35  ;;  %v11191_v63 = vld [vmem:[#allocation13 + $0xe0] sm:$0xff] }
 0x634   :  { %10954 = vmatprep.subr.bf16.mxu1 %v15167_v51  ;;  %v13044_v51 = vpack.c.bf16 %v11174_v61, %v11173_v60  ;;  %v11219_v60 = vld [vmem:[#allocation13 + $0x1c0] sm:$0xff]  ;;  %v11220_v61 = vld [vmem:[#allocation13 + $0x1c8] sm:$0xff] }
 0x636   :  { %13045 = vmatpush3.bf16.msra.mxu0 %v13044_v51  ;;  %v13070_v51 = vpack.c.bf16 %v11220_v61, %v11219_v60  ;;  %v11232_v60 = vld [vmem:[#allocation13 + $0x228] sm:$0xff]  ;;  %v11249_v61 = vld [vmem:[#allocation13 + $0x2b0] sm:$0xff] }
 0x637   :  { %10955 = vmatpush1.bf16.msra.mxu1 %v15165_v57  ;;  %v11176_v57 = vld [vmem:[#allocation13 + $0x68] sm:$0xff] }
 0x638   :  { %10956 = vmatprep.subr.bf16.mxu1 %v15170_v4  ;;  %v13046_v4 = vpack.c.bf16 %v11192_v19, %v11191_v63  ;;  %v11203_v19 = vld [vmem:[#allocation13 + $0x140] sm:$0xff] }
 0x63a   :  { %13047 = vmatprep.subr.bf16.mxu0 %v13046_v4  ;;  %v11222_v4 = vld [vmem:[#allocation13 + $0x1d8] sm:$0xff] }
 0x63b   :  { %10957 = vmatpush1.bf16.msra.mxu1 %v15168_v6  ;;  %v11193_v6 = vld [vmem:[#allocation13 + $0xf0] sm:$0xff] }
 0x63c   :  { %10958 = vmatprep.subr.bf16.mxu1 %v15173_v7  ;;  %v11194_v7 = vld [vmem:[#allocation13 + $0xf8] sm:$0xff] }
 0x63f   :  { %10959 = vmatpush1.bf16.msra.mxu1 %v15171_v62  ;;  %v13048_v62 = vpack.c.bf16 %v11176_v57, %v11175_v3  ;;  %v11204_v3 = vld [vmem:[#allocation13 + $0x148] sm:$0xff]  ;;  %v11221_v57 = vld [vmem:[#allocation13 + $0x1d0] sm:$0xff] }
 0x640   :  { %10960 = vmatprep.subr.bf16.mxu1 %v15176_v9  ;;  %v13050_v9 = vpack.c.bf16 %v11194_v7, %v11193_v6  ;;  %v13072_v6 = vpack.c.bf16 %v11204_v3, %v11203_v19  ;;  %v13074_v7 = vpack.c.bf16 %v11222_v4, %v11221_v57  ;;  %v11233_v3 = vld [vmem:[#allocation13 + $0x230] sm:$0xff]  ;;  %v11234_v57 = vld [vmem:[#allocation13 + $0x238] sm:$0xff]  ;;  %v11251_v4 = vld [vmem:[#allocation13 + $0x2c0] sm:$0xff] }
 0x641   :  { %13049 = vmatpush3.bf16.msra.mxu0 %v13048_v62  ;;  %v11205_v62 = vld [vmem:[#allocation13 + $0x150] sm:$0xff] }
 0x642   :  { %13051 = vmatprep.subr.bf16.mxu0 %v13050_v9  ;;  %v11206_v9 = vld [vmem:[#allocation13 + $0x158] sm:$0xff] }
 0x643   :  { %10961 = vmatpush1.bf16.msra.mxu1 %v15174_v10  ;;  %v11177_v10 = vld [vmem:[#allocation13 + $0x70] sm:$0xff] }
 0x644   :  { %10962 = vmatprep.subr.bf16.mxu1 %v15179_v0  ;;  %v11178_v0 = vld [vmem:[#allocation13 + $0x78] sm:$0xff] }
 0x647   :  { %10963 = vmatpush1.bf16.msra.mxu1 %v15177_v2  ;;  %v11211_v2 = vld [vmem:[#allocation13 + $0x180] sm:$0xff] }
 0x648   :  { %10964 = vmatprep.subr.bf16.mxu1 %v15182_v11  ;;  %v11212_v11 = vld [vmem:[#allocation13 + $0x188] sm:$0xff] }
 0x64b   :  { %10965 = vmatpush1.bf16.msra.mxu1 %v15180_v12  ;;  %v13052_v12 = vpack.c.bf16 %v11178_v0, %v11177_v10  ;;  %v11223_v10 = vld [vmem:[#allocation13 + $0x1e0] sm:$0xff]  ;;  %v11224_v0 = vld [vmem:[#allocation13 + $0x1e8] sm:$0xff] }
 0x64c   :  { %10966 = vmatprep.subr.bf16.mxu1 %v15185_v13  ;;  %v13054_v13 = vpack.c.bf16 %v11212_v11, %v11211_v2  ;;  %v13076_v11 = vpack.c.bf16 %v11206_v9, %v11205_v62  ;;  %v11235_v9 = vld [vmem:[#allocation13 + $0x240] sm:$0xff] }
 0x64d   :  { %13053 = vmatpush3.bf16.msra.mxu0 %v13052_v12 }
 0x64e   :  { %13055 = vmatprep.subr.bf16.mxu0 %v13054_v13  ;;  %v13078_v13 = vpack.c.bf16 %v11224_v0, %v11223_v10  ;;  %v11236_v10 = vld [vmem:[#allocation13 + $0x248] sm:$0xff]  ;;  %v11253_v0 = vld [vmem:[#allocation13 + $0x2d0] sm:$0xff] }
 0x64f   :  { %10967 = vmatpush1.bf16.msra.mxu1 %v15183_v14  ;;  %v11083_v14 = vlaneseq }
 0x650   :  { %10993 = vmatprep.subr.bf16.mxu1 %v15188_v5 }
 0x651   :  { %v15943_v5 = vshrl.u32 %v11083_v14, 7  ;;  %v11207_v14 = vld [vmem:[#allocation13 + $0x160] sm:$0xff] }
 0x652   :  { %10985 = vmatmul.mubr.bf16.vlgmr.msra.gmra.mrb[4].mxu1 %v15928_v8 }
 0x653   :  { %10994 = vmatpush1.bf16.msra.mxu1 %v15186_v17  ;;  %11025 = vmatprep.mubr.bf16.mxu1 %v15441_v35  ;;  %v11085_v17 = vsub.s32 0, %v15943_v5  ;;  %v11093_v2 = vsub.s32 2, %v15943_v5  ;;  %v11097_v12 = vsub.s32 3, %v15943_v5 }
 0x654   :  { %10995 = vmatprep.subr.bf16.mxu1 %v15191_v21  ;;  %v15946_v21 = vld [vmem:[#allocation10] sm:$0x3f] }
 0x657   :  { %10996 = vmatpush1.bf16.msra.mxu1 %v15189_v15  ;;  %v15949_v15 = vld [vmem:[#allocation11] sm:$0x3f] }
 0x658   :  { %10997 = vmatprep.subr.bf16.mxu1 %v15194_v22  ;;  %v11086_v22 = vrot.slane %v15946_v21, %v11085_v17 }
 0x65b   :  { %10998 = vmatpush1.bf16.msra.mxu1 %v15192_v23 }
 0x65c   :  { %10999 = vmatprep.subr.bf16.mxu1 %v15197_v24 }
 0x65d   :  { %v15932_v1 = vpop.f32.mrb[60].mxu0 }
 0x65e   :  { %v15934_v16 = vpop.f32.mrb[61].mxu0 }
 0x65f   :  { %v5220_v29 = vpop.f32.mrb[62].mxu0  ;;  %11000 = vmatpush1.bf16.msra.mxu1 %v15195_v25 }
 0x660   :  { %v5221_v31 = vpop.f32.mrb[63].mxu0  ;;  %11001 = vmatprep.subr.bf16.mxu1 %v15200_v26  ;;  %v11124_v26 = vrot.slane %v15949_v15, %v11085_v17  ;;  %v11208_v17 = vld [vmem:[#allocation13 + $0x168] sm:$0xff] }
 0x663   :  { %11002 = vmatpush1.bf16.msra.mxu1 %v15198_v20 }
 0x664   :  { %11003 = vmatprep.subr.bf16.mxu1 %v15203_v49 }
 0x667   :  { %11004 = vmatpush1.bf16.msra.mxu1 %v15201_v18 }
 0x668   :  { %11005 = vmatprep.subr.bf16.mxu1 %v15206_v32 }
 0x66b   :  { %11006 = vmatpush1.bf16.msra.mxu1 %v15204_v53 }
 0x66c   :  { %11007 = vmatprep.subr.bf16.mxu1 %v15209_v34 }
 0x66f   :  { %11008 = vmatpush1.bf16.msra.mxu1 %v15207_v27  ;;  %v11195_v27 = vld [vmem:[#allocation13 + $0x100] sm:$0xff] }
 0x670   :  { %11034 = vmatprep.subr.bf16.mxu1 %v15212_v37  ;;  %v11196_v37 = vld [vmem:[#allocation13 + $0x108] sm:$0xff] }
 0x672   :  { %11026 = vmatmul.mubr.bf16.vlgmr.msra.gmra.mrb[8].mxu1 %v15928_v8 }
 0x673   :  { %11035 = vmatpush1.bf16.msra.mxu1 %v15210_v55  ;;  %11066 = vmatprep.mubr.bf16.mxu1 %v15441_v35  ;;  %v15225_v35 = vld [vmem:[#allocation8 + $0x2500] ss:$24 sps:$4 sm:$0xff]  }
 0x674   :  { %11036 = vmatprep.subr.bf16.mxu1 %v15215_v30  ;;  %v11213_v30 = vld [vmem:[#allocation13 + $0x190] sm:$0xff] }
 0x677   :  { %11037 = vmatpush1.bf16.msra.mxu1 %v15213_v54  ;;  %v11214_v54 = vld [vmem:[#allocation13 + $0x198] sm:$0xff] }
 0x678   :  { %11038 = vmatprep.subr.bf16.mxu1 %v15218_v38 }
 0x67b   :  { %11039 = vmatpush1.bf16.msra.mxu1 %v15216_v39  ;;  %v13056_v39 = vpack.c.bf16 %v11196_v37, %v11195_v27  ;;  %v11136_v27 = vrot.slane %v15949_v15, %v11097_v12  ;;  %v11243_v37 = vld [vmem:[#allocation13 + $0x280] sm:$0xff] }
 0x67c   :  { %11040 = vmatprep.subr.bf16.mxu1 %v15221_v33 }
 0x67d   :  { %v5552_v36 = vpop.f32.mrb[52].mxu0 }
 0x67e   :  { %v5554_v44 = vpop.f32.mrb[53].mxu0 }
 0x67f   :  { %v5556_v45 = vpop.f32.mrb[54].mxu0  ;;  %11041 = vmatpush1.bf16.msra.mxu1 %v15219_v41  ;;  %v13058_v41 = vpack.c.bf16 %v11214_v54, %v11213_v30 }
 0x680   :  { %v5557_v47 = vpop.f32.mrb[55].mxu0  ;;  %11042 = vmatprep.subr.bf16.mxu1 %v15224_v43  ;;  %v11197_v43 = vld [vmem:[#allocation13 + $0x110] sm:$0xff]  ;;  %v11216_v45 = vld [vmem:[#allocation13 + $0x1a8] sm:$0xff] }
 0x683   :  { %11043 = vmatpush1.bf16.msra.mxu1 %v15222_v46 }
 0x684   :  { %11044 = vmatprep.subr.bf16.mxu1 %v15227_v52  ;;  %v11199_v52 = vld [vmem:[#allocation13 + $0x120] sm:$0xff] }
 0x687   :  { %11045 = vmatpush1.bf16.msra.mxu1 %v15225_v35  ;;  %v11200_v35 = vld [vmem:[#allocation13 + $0x128] sm:$0xff] }
 0x688   :  { %11046 = vmatprep.subr.bf16.mxu1 %v15230_v50  ;;  %v11217_v50 = vld [vmem:[#allocation13 + $0x1b0] sm:$0xff] }
 0x68b   :  { %11047 = vmatpush1.bf16.msra.mxu1 %v15228_v28  ;;  %v11218_v28 = vld [vmem:[#allocation13 + $0x1b8] sm:$0xff] }
 0x68c   :  { %11048 = vmatprep.subr.bf16.mxu1 %v15233_v40  ;;  %v13064_v40 = vpack.c.bf16 %v11200_v35, %v11199_v52  ;;  %v11229_v35 = vld [vmem:[#allocation13 + $0x210] sm:$0xff] }
 0x68f   :  { %11049 = vmatpush1.bf16.msra.mxu1 %v15231_v48  ;;  %v13066_v48 = vpack.c.bf16 %v11218_v28, %v11217_v50  ;;  %v11230_v50 = vld [vmem:[#allocation13 + $0x218] sm:$0xff]  ;;  %v11247_v28 = vld [vmem:[#allocation13 + $0x2a0] sm:$0xff] }
 0x692   :  { %11067 = vmatmul.mubr.bf16.vlgmr.msra.gmra.mrb[0].mxu1 %v15928_v8  ;;  %v11089_v8 = vsub.s32 1, %v15943_v5 }
 0x694   :  { %v11090_v24 = vrot.slane %v15946_v21, %v11089_v8  ;;  %v11128_v49 = vrot.slane %v15949_v15, %v11089_v8  ;;  %v11225_v8 = vld [vmem:[#allocation13 + $0x1f0] sm:$0xff] }
 0x69d   :  { %v15939_v56 = vpop.f32.mrb[56].mxu0 }
 0x69e   :  { %v15941_v42 = vpop.f32.mrb[57].mxu0 }
 0x69f   :  { %v5597_v58 = vpop.f32.mrb[58].mxu0 }
 0x6a0   :  { %v5598_v59 = vpop.f32.mrb[59].mxu0  ;;  %v11201_v58 = vld [vmem:[#allocation13 + $0x130] sm:$0xff] }
 0x6a1   :  { %v11202_v59 = vld [vmem:[#allocation13 + $0x138] sm:$0xff] }
 0x6a2   :  { %v13068_v63 = vpack.c.bf16 %v11202_v59, %v11201_v58  ;;  %v11231_v59 = vld [vmem:[#allocation13 + $0x220] sm:$0xff] }
 0x725   :  { %v10986_v23 = vpop.f32.mrb[4].mxu1 }
 0x726   :  { %v13118_v25 = vadd.f32 %v10986_v23, %v5552_v36  ;;  %v10988_v29 = vpop.f32.mrb[5].mxu1  ;;  %v11198_v36 = vld [vmem:[#allocation13 + $0x118] sm:$0xff]  ;;  %v11094_v23 = vrot.slane %v15946_v21, %v11093_v2 }
 0x727   :  { %v13119_v20 = vadd.f32 %v10988_v29, %v5554_v44  ;;  %v10990_v31 = vpop.f32.mrb[6].mxu1  ;;  %v11215_v44 = vld [vmem:[#allocation13 + $0x1a0] sm:$0xff]  ;;  %v13060_v46 = vpack.c.bf16 %v11198_v36, %v11197_v43  ;;  %v11228_v43 = vld [vmem:[#allocation13 + $0x208] sm:$0xff] }
 0x728   :  { %v11113_v18 = vmul.f32 %v13118_v25, %v11086_v22  ;;  %v10991_v32 = vpop.f32.mrb[7].mxu1  ;;  %v13062_v47 = vpack.c.bf16 %v11216_v45, %v11215_v44  ;;  %v11226_v22 = vld [vmem:[#allocation13 + $0x1f8] sm:$0xff]  ;;  %v11098_v25 = vrot.slane %v15946_v21, %v11097_v12  ;;  %v11245_v44 = vld [vmem:[#allocation13 + $0x290] sm:$0xff] }
 0x729   :  { %v11114_v53 = vmul.f32 %v13119_v20, %v11090_v24  ;;  %v11132_v20 = vrot.slane %v15949_v15, %v11093_v2  ;;  %v11210_v32 = vld [vmem:[#allocation13 + $0x178] sm:$0xff] }
 0x72a   :  { %v11151_v34 = vadd.f32 %v11124_v26, %v11113_v18  ;;  %v13080_v26 = vpack.c.bf16 %v11208_v17, %v11207_v14  ;;  %v11209_v18 = vld [vmem:[#allocation13 + $0x170] sm:$0xff]  ;;  %v11246_v45 = vld [vmem:[#allocation13 + $0x298] sm:$0xff]  ;;  %v11255_v17 = vld [vmem:[#allocation13 + $0x2e0] sm:$0xff] }
 0x72b   :  { %v11152_v55 = vadd.f32 %v11128_v49, %v11114_v53  ;;  %v13082_v49 = vpack.c.bf16 %v11226_v22, %v11225_v8  ;;  %v13090_v52 = vpack.c.bf16 %v11246_v45, %v11245_v44  ;;  %v11254_v2 = vld [vmem:[#allocation13 + $0x2d8] sm:$0xff]  ;;  %v11256_v8 = vld [vmem:[#allocation13 + $0x2e8] sm:$0xff]  ;;  %v11101_v22 = vsub.s32 4, %v15943_v5 }
 0x72c   :  { %v11157_v33 = vmax.f32 %v11151_v34, 0.0  ;;  %v13106_v12 = vpack.c.bf16 %v11254_v2, %v11253_v0  ;;  %v11238_v14 = vld [vmem:[#allocation13 + $0x258] sm:$0xff] }
 0x72d   :  { %v11158_v38 = vmax.f32 %v11152_v55, 0.0  ;;  %v11244_v55 = vld [vmem:[#allocation13 + $0x288] sm:$0xff] }
 0x72f   :  { %11330 = vmatprep.mubr.f32.mxu0 %v11158_v38 }
 0x730   :  { %11331 = vmatmul.mubr.f32.vlgmr.msra.gmra.mrb[64].mxu0 %v11157_v33  ;;  %v13086_v33 = vpack.c.bf16 %v11244_v55, %v11243_v37  ;;  %v11241_v55 = vld [vmem:[#allocation13 + $0x270] sm:$0xff] }
 0x731   :  { %13057 = vmatpush3.bf16.msra.mxu0 %v13056_v39  ;;  %v13084_v39 = vpack.c.bf16 %v11210_v32, %v11209_v18 }
 0x732   :  { %13059 = vmatprep.subr.bf16.mxu0 %v13058_v41  ;;  %v11227_v41 = vld [vmem:[#allocation13 + $0x200] sm:$0xff] }
 0x735   :  { %13061 = vmatpush3.bf16.msra.mxu0 %v13060_v46  ;;  %v13088_v46 = vpack.c.bf16 %v11228_v43, %v11227_v41 }
 0x736   :  { %13063 = vmatprep.subr.bf16.mxu0 %v13062_v47 }
 0x739   :  { %13065 = vmatpush3.bf16.msra.mxu0 %v13064_v40  ;;  %v11248_v40 = vld [vmem:[#allocation13 + $0x2a8] sm:$0xff] }
 0x73a   :  { %13067 = vmatprep.subr.bf16.mxu0 %v13066_v48  ;;  %v13092_v48 = vpack.c.bf16 %v11230_v50, %v11229_v35  ;;  %v13094_v58 = vpack.c.bf16 %v11248_v40, %v11247_v28 }
 0x73d   :  { %13069 = vmatpush3.bf16.msra.mxu0 %v13068_v63  ;;  %v11250_v63 = vld [vmem:[#allocation13 + $0x2b8] sm:$0xff] }
 0x73e   :  { %13071 = vmatprep.subr.bf16.mxu0 %v13070_v51  ;;  %v13096_v51 = vpack.c.bf16 %v11232_v60, %v11231_v59  ;;  %v13098_v19 = vpack.c.bf16 %v11250_v63, %v11249_v61 }
 0x741   :  { %13073 = vmatpush3.bf16.msra.mxu0 %v13072_v6  ;;  %v11252_v6 = vld [vmem:[#allocation13 + $0x2c8] sm:$0xff] }
 0x742   :  { %13075 = vmatprep.subr.bf16.mxu0 %v13074_v7  ;;  %v13100_v7 = vpack.c.bf16 %v11234_v57, %v11233_v3  ;;  %v13102_v62 = vpack.c.bf16 %v11252_v6, %v11251_v4 }
 0x745   :  { %v11027_v24 = vpop.f32.mrb[8].mxu1  ;;  %13077 = vmatpush3.bf16.msra.mxu0 %v13076_v11  ;;  %v13104_v11 = vpack.c.bf16 %v11236_v10, %v11235_v9 }
 0x746   :  { %v13120_v29 = vadd.f32 %v11027_v24, %v15939_v56  ;;  %v11029_v31 = vpop.f32.mrb[9].mxu1  ;;  %13079 = vmatprep.subr.bf16.mxu0 %v13078_v13  ;;  %v11237_v13 = vld [vmem:[#allocation13 + $0x250] sm:$0xff]  ;;  %v11105_v24 = vsub.s32 5, %v15943_v5 }
 0x747   :  { %v13121_v53 = vadd.f32 %v11029_v31, %v15941_v42  ;;  %v11031_v34 = vpop.f32.mrb[10].mxu1  ;;  %v11258_v31 = vld [vmem:[#allocation13 + $0x2f8] sm:$0xff] }
 0x748   :  { %v11115_v30 = vmul.f32 %v13120_v29, %v11094_v23  ;;  %v11032_v54 = vpop.f32.mrb[11].mxu1  ;;  %v13108_v23 = vpack.c.bf16 %v11238_v14, %v11237_v13  ;;  %v11240_v29 = vld [vmem:[#allocation13 + $0x268] sm:$0xff]  ;;  %v11106_v32 = vrot.slane %v15946_v21, %v11105_v24 }
 0x749   :  { %v11116_v38 = vmul.f32 %v13121_v53, %v11098_v25  ;;  %13081 = vmatpush3.bf16.msra.mxu0 %v13080_v26  ;;  %v13110_v25 = vpack.c.bf16 %v11256_v8, %v11255_v17  ;;  %v11239_v26 = vld [vmem:[#allocation13 + $0x260] sm:$0xff] }
 0x74a   :  { %v11153_v56 = vadd.f32 %v11132_v20, %v11115_v30  ;;  %13083 = vmatprep.subr.bf16.mxu0 %v13082_v49  ;;  %v11257_v20 = vld [vmem:[#allocation13 + $0x2f0] sm:$0xff]  ;;  %v11102_v49 = vrot.slane %v15946_v21, %v11101_v22  ;;  %v13112_v53 = vpack.c.bf16 %v11240_v29, %v11239_v26  ;;  %v11242_v30 = vld [vmem:[#allocation13 + $0x278] sm:$0xff] }
 0x74b   :  { %v11154_v36 = vadd.f32 %v11136_v27, %v11116_v38  ;;  %v11140_v27 = vrot.slane %v15949_v15, %v11101_v22  ;;  %v13114_v5 = vpack.c.bf16 %v11258_v31, %v11257_v20  ;;  %v13116_v21 = vpack.c.bf16 %v11242_v30, %v11241_v55 }
 0x74c   :  { %v11159_v47 = vmax.f32 %v11153_v56, 0.0 }
 0x74d   :  { %13085 = vmatpush3.bf16.msra.mxu0 %v13084_v39  ;;  %v11160_v42 = vmax.f32 %v11154_v36, 0.0  ;;  %v11144_v39 = vrot.slane %v15949_v15, %v11105_v24 }
 0x74e   :  { %13087 = vmatprep.subr.bf16.mxu0 %v13086_v33 }
 0x74f   :  { %11400 = vmatprep.mubr.f32.mxu0 %v11160_v42 }
 0x750   :  { %11401 = vmatmul.mubr.f32.vlgmr.msra.gmra.mrb[66].mxu0 %v11159_v47 }
 0x751   :  { %13089 = vmatpush3.bf16.msra.mxu0 %v13088_v46 }
 0x752   :  { %13091 = vmatprep.subr.bf16.mxu0 %v13090_v52 }
 0x755   :  { %13093 = vmatpush3.bf16.msra.mxu0 %v13092_v48 }
 0x756   :  { %13095 = vmatprep.subr.bf16.mxu0 %v13094_v58 }
 0x759   :  { %13097 = vmatpush3.bf16.msra.mxu0 %v13096_v51 }
 0x75a   :  { %13099 = vmatprep.subr.bf16.mxu0 %v13098_v19 }
 0x75d   :  { %13101 = vmatpush3.bf16.msra.mxu0 %v13100_v7 }
 0x75e   :  { %13103 = vmatprep.subr.bf16.mxu0 %v13102_v62 }
 0x761   :  { %13105 = vmatpush3.bf16.msra.mxu0 %v13104_v11 }
 0x762   :  { %13107 = vmatprep.subr.bf16.mxu0 %v13106_v12 }
 0x765   :  { %v11068_v18 = vpop.f32.mrb[0].mxu1  ;;  %13109 = vmatpush3.bf16.msra.mxu0 %v13108_v23 }
 0x766   :  { %v13122_v34 = vadd.f32 %v11068_v18, %v15932_v1  ;;  %v11070_v37 = vpop.f32.mrb[1].mxu1  ;;  %13111 = vmatprep.subr.bf16.mxu0 %v13110_v25 }
 0x767   :  { %v13123_v54 = vadd.f32 %v11070_v37, %v15934_v16  ;;  %v11072_v38 = vpop.f32.mrb[2].mxu1  ;;  %v12743_v16 = vld [vmem:[#allocation14] ss:$0 sm:$0xff] }
 0x768   :  { %v11117_v56 = vmul.f32 %v13122_v34, %v11102_v49  ;;  %v11073_v33 = vpop.f32.mrb[3].mxu1 }
 0x769   :  { %v11118_v41 = vmul.f32 %v13123_v54, %v11106_v32  ;;  %13113 = vmatpush3.bf16.msra.mxu0 %v13112_v53 }
 0x76a   :  { %v11155_v43 = vadd.f32 %v11140_v27, %v11117_v56  ;;  %13115 = vmatprep.subr.bf16.mxu0 %v13114_v5 }
 0x76b   :  { %v11156_v1 = vadd.f32 %v11144_v39, %v11118_v41 }
 0x76c   :  { %v11161_v44 = vmax.f32 %v11155_v43, 0.0 }
 0x76d   :  { %13117 = vmatpush3.bf16.msra.mxu0 %v13116_v21  ;;  %v11162_v36 = vmax.f32 %v11156_v1, 0.0 }
 0x76f   :  { %11470 = vmatprep.mubr.f32.mxu0 %v11162_v36 }
 0x770   :  { %11471 = vmatmul.mubr.f32.vlgmr.msra.gmra.mrb[68].mxu0 %v11161_v44 }
 0x803   :  { %v12889_v45 = vpop.f32.mrb[64].mxu0 }
 0x804   :  { %v12890_v42 = vpop.f32.mrb[65].mxu0 }
 0x805   :  { %v12891_v46 = vadd.f32 %v12890_v42, %v12889_v45 }
 0x807   :  { %v11333_v15 = vadd.f32 %v12891_v46, %v12743_v16 }
 0x823   :  { %v12924_v47 = vpop.f32.mrb[66].mxu0 }
 0x824   :  { %v12925_v52 = vpop.f32.mrb[67].mxu0 }
 0x825   :  { %v12926_v35 = vadd.f32 %v12925_v52, %v12924_v47 }
 0x827   :  { %v11403_v50 = vadd.f32 %v12926_v35, %v11333_v15 }
 0x843   :  { %v12959_v28 = vpop.f32.mrb[68].mxu0 }
 0x844   :  { %v12960_v40 = vpop.f32.mrb[69].mxu0 }
 0x845   :  { %v12961_v48 = vadd.f32 %v12960_v40, %v12959_v28 }
 0x847   :  { %v11473_v58 = vadd.f32 %v12961_v48, %v11403_v50 }
 0x849   :  { %11476 = vst [vmem:[%s15983_s9] sm:$0xff] %v11473_v58 }
 0x84a   :  { %11481 = vsyncpa [#allocation4], 1 }
 0x84b   :  { %11482 = vsyncpa [#allocation6], 1 }
 0x84c   :  { %11483 = vsyncpa [#allocation9], 1 }
 0x84d   :  { %11484 = vsyncpa [#allocation12], 1 }
 0x84e   :  { %11485 = vsyncpa [#allocation15], 1 }

</bundles_post_ra>
